<compile_context>
chip_gen: v7x
topology: tpu7x:2x2x1
jax: 0.10.0
libtpu: 0.0.40
codegen_flags: <defaults>
</compile_context>

<pallas_src>
import jax
import jax.numpy as jnp
import numpy as np
from jax.experimental import pallas as pl
from jax.experimental.pallas import tpu as pltpu

BN_EPS = 1e-5
CONV_DEFS = ((32, 8, 4), (64, 4, 2), (64, 3, 1))   # (out_channels, kernel, stride)

# MXU operand dtype.  float32 keeps exact parity with the f32 reference (see
# header); set to jnp.bfloat16 on v6e/v7x with a well-conditioned batch-BN
# (B*OH*OW >> 1) to halve weight DMA and use the native bf16 MXU path.
MATMUL_DTYPE = jnp.float32


def _conv_out(size, k, s):
    return (size - (k - 1) - 1) // s + 1


# ---------------------------------------------------------------------------
# Parameters (PyTorch-shaped "raw" params, used by the pure-JAX reference)
# ---------------------------------------------------------------------------
def make_params(key, C, H, num_actions):
    conv_size = H
    for (_, k, s) in CONV_DEFS:
        conv_size = _conv_out(conv_size, k, s)
    linear_input_size = conv_size * conv_size * 64

    keys = jax.random.split(key, 8)
    conv_shapes = [(32, C, 8, 8), (64, 32, 4, 4), (64, 64, 3, 3)]
    conv_params = []
    for i, shp in enumerate(conv_shapes):
        oc = shp[0]
        fan_in = shp[1] * shp[2] * shp[3]
        w = jax.random.normal(keys[2 * i], shp, jnp.float32) * (1.0 / np.sqrt(fan_in))
        b = jax.random.normal(keys[2 * i + 1], (oc,), jnp.float32) * 0.01
        gamma = jnp.ones((oc,), jnp.float32)     # BatchNorm default init
        beta = jnp.zeros((oc,), jnp.float32)
        conv_params.append((w, b, gamma, beta))

    fc_in = linear_input_size + 1
    fc_w = jax.random.normal(keys[6], (fc_in, 512), jnp.float32) * (1.0 / np.sqrt(fc_in))
    fc_b = jax.random.normal(keys[7], (512,), jnp.float32) * 0.01
    # TODO(synk): fc_pi / fc_sigma / fc_v heads and pi()/v() are dead/incomplete
    # in the source module (forward() returns before using them), so they are
    # not implemented here.
    return conv_params, (fc_w, fc_b)


# ---------------------------------------------------------------------------
# One-time host-side repacking of parameters into the kernel layout
# ---------------------------------------------------------------------------
def pack_params(conv_params, fc_params, C, H):
    sizes = [(H, H, C)]
    for (oc, k, s) in CONV_DEFS:
        h, w, _ = sizes[-1]
        sizes.append((_conv_out(h, k, s), _conv_out(w, k, s), oc))

    # Padded lane width of each conv layer's output row (ow*oc): conv2's
    # 3*64=192 is padded to 256 so its output / act2 scratch / conv3's K stay
    # lane-dense multiples of 128.  The pad block is numerically inert.
    out_w = []
    for li in range(len(CONV_DEFS)):
        _, ow, oc = sizes[li + 1]
        w = ow * oc
        out_w.append(w if (w <= 128 or w % 128 == 0) else ((w + 127) // 128) * 128)

    layers = []
    for li, ((w, b, gamma, beta), (oc, k, s)) in enumerate(zip(conv_params, CONV_DEFS)):
        hin, win, cin = sizes[li]
        oh, ow, _ = sizes[li + 1]
        in_w = win * cin if li == 0 else out_w[li - 1]
        w_hwio = np.transpose(np.asarray(w), (2, 3, 1, 0))          # (kh, kw, ic, oc)
        # Block-Toeplitz expansion: every kw offset folded into a dense
        # (in_w, out_w) matrix, one per kernel row kh.
        wt = np.zeros((k, in_w, out_w[li]), np.float32)
        for kh in range(k):
            for owi in range(ow):
                for kw in range(k):
                    wc = owi * s + kw
                    wt[kh, wc * cin:(wc + 1) * cin, owi * oc:(owi + 1) * oc] = \
                        w_hwio[kh, kw]
        if li == 0:
            # conv1: kh folded into the contraction dim -> one MXU matmul.
            wmat = jnp.asarray(wt.reshape(k * in_w, out_w[li])).astype(MATMUL_DTYPE)
        else:
            wmat = jnp.asarray(wt).astype(MATMUL_DTYPE)

        def _tile_pad(v, _ow=ow, _w=out_w[li], _oc=oc):
            t = np.zeros((1, _w), np.float32)
            t[0, :_ow * _oc] = np.tile(np.asarray(v), _ow)
            return jnp.asarray(t)

        layers.append(dict(w=wmat, b=_tile_pad(b), gamma=_tile_pad(gamma),
                           beta=_tile_pad(beta)))

    fc_w, fc_b = fc_params
    ohf, owf, ocf = sizes[-1]
    lin = ohf * owf * ocf
    fc_packed = (jnp.asarray(fc_w[:lin, :]).astype(MATMUL_DTYPE),   # conv-feature cols
                 fc_w[lin:, :],                                     # timedelta column
                 fc_b.reshape(1, -1))
    return layers, fc_packed, sizes


# ---------------------------------------------------------------------------
# Fused forward
# ---------------------------------------------------------------------------
def _full_spec(shape):
    nd = len(shape)
    return pl.BlockSpec(shape, lambda i, _nd=nd: (0,) * _nd)


def ppo_forward(pixels, timedeltas, layers, fc_packed, sizes):
    """Equivalent of PPO.forward((pixels, timedeltas)) -> feature (B, 512)."""
    B, C, H, W = pixels.shape
    (_, _, _), (OH1, OW1, OC1), (OH2, OW2, OC2), (OH3, OW3, OC3) = sizes
    (_, K1, S1), (_, K2, S2), (_, K3, S3) = CONV_DEFS

    # Flatten-order equivalence with PyTorch's NCHW Flatten requires the final
    # map to be 1x1; the phase-split act1 layout requires S2 | OH1 and S3 == 1.
    assert OH3 == 1 and OW3 == 1
    assert OH1 % S2 == 0 and S3 == 1

    l1, l2, l3 = layers
    fcw_c, fcw_td, fcb = fc_packed
    W1o = l1["w"].shape[-1]                    # 256
    W2o = l2["w"].shape[-1]                    # 256 (padded from 192)
    W3o = l3["w"].shape[-1]                    # 64
    ow_blk1, ow_blk2 = W1o // OC1, W2o // OC2  # lane blocks incl. zero pad
    cdt = l1["w"].dtype

    # Rows-only im2col for conv1 in the wrapper (fuses with the NCHW->row
    # transpose): LHS row (oh, b) = input rows oh*S1 .. oh*S1+K1-1 of batch b,
    # flattened as (kh, w, c) -> lane-dense (OH1*B, K1*W*C) = (16, 1152).
    x = jnp.transpose(pixels, (2, 0, 3, 1)).reshape(H, B, W * C)         # (H,B,WC)
    win = jnp.stack([x[oh * S1: oh * S1 + K1] for oh in range(OH1)], 0)  # (OH1,K1,B,WC)
    lhs1 = jnp.transpose(win, (0, 2, 1, 3)).reshape(OH1 * B, K1 * W * C)
    lhs1 = lhs1.astype(cdt)

    n1 = float(B * OH1 * OW1)
    n2 = float(B * OH2 * OW2)
    n3 = float(B * OH3 * OW3)

    def kernel(lhs1_ref, w1_ref, b1_ref, g1_ref, be1_ref,
               w2_hbm, b2_ref, g2_ref, be2_ref,
               w3_hbm, b3_ref, g3_ref, be3_ref,
               fcw_hbm, fcwtd_ref, fcb_ref, td_ref,
               out_ref,
               act1_ref, act2_ref, w2_ref, w3_ref, fcw_ref, dsem):

        # [R4] Prefetch later-layer weights; the DMAs overlap conv1's matmul.
        cp_w2 = pltpu.make_async_copy(w2_hbm, w2_ref, dsem.at[0])
        cp_w3 = pltpu.make_async_copy(w3_hbm, w3_ref, dsem.at[1])
        cp_fc = pltpu.make_async_copy(fcw_hbm, fcw_ref, dsem.at[2])
        cp_w2.start()
        cp_w3.start()
        cp_fc.start()

        # [R1] per-channel pooling over the ow lane blocks via XLU lane rolls;
        # also re-broadcasts the pooled sums over ow (like the old tiled-eye
        # matmul did), so no lane reshapes are needed.
        def lane_pool(s, n_blk, oc):
            if n_blk == 1:
                return s
            if n_blk & (n_blk - 1) == 0:                  # log-tree of roll+add
                shift = oc
                while shift < n_blk * oc:
                    s = s + pltpu.roll(s, shift, axis=s.ndim - 1)
                    shift *= 2
                return s
            total = s                                     # general: all cyclic shifts
            for j in range(1, n_blk):
                total = total + pltpu.roll(s, j * oc, axis=s.ndim - 1)
            return total

        # [R2] train-mode BatchNorm with one-pass batch statistics.
        def bn_relu(y, g, be, count, n_blk, oc):
            s = jnp.concatenate(
                [jnp.sum(y, axis=0, keepdims=True),
                 jnp.sum(y * y, axis=0, keepdims=True)], axis=0)   # (2, lanes)
            s = lane_pool(s, n_blk, oc) * (1.0 / count)
            mean, ex2 = s[0:1], s[1:2]
            var = ex2 - mean * mean                       # biased batch variance
            y = (y - mean) * jax.lax.rsqrt(var + BN_EPS) * g + be
            return jnp.maximum(y, 0.0)

        # ---- conv1: [R3] single matmul over the whole (kh, kw, cin) contraction.
        y1 = jnp.dot(lhs1_ref[...], w1_ref[...],
                     preferred_element_type=jnp.float32) + b1_ref[...]
        h1 = bn_relu(y1, g1_ref[...], be1_ref[...], n1, ow_blk1, OC1)
        act1_ref[...] = h1.reshape(OH1 // S2, S2, B, W1o)

        # ---- conv2: per-kernel-row matmuls on the phase-split act1 layout.
        cp_w2.wait()
        acc = None
        for kh in range(K2):
            q, r = divmod(kh, S2)
            slab = act1_ref[pl.ds(q, OH2), r].reshape(OH2 * B, W1o).astype(cdt)
            part = jnp.dot(slab, w2_ref[kh], preferred_element_type=jnp.float32)
            acc = part if acc is None else acc + part
        h2 = bn_relu(acc + b2_ref[...], g2_ref[...], be2_ref[...], n2, ow_blk2, OC2)
        act2_ref[...] = h2.reshape(OH2, B, W2o)

        # ---- conv3 (stride 1, 1x1 output map)
        cp_w3.wait()
        acc = None
        for kh in range(K3):
            slab = act2_ref[kh].astype(cdt)               # (B, W2o)
            part = jnp.dot(slab, w3_ref[kh], preferred_element_type=jnp.float32)
            acc = part if acc is None else acc + part
        h3 = bn_relu(acc + b3_ref[...], g3_ref[...], be3_ref[...], n3, 1, OC3)
        # h3 == flattened conv feature (B, 64); identical to NCHW flatten since
        # the spatial map is 1x1.

        # ---- fc: timedelta folded in as a rank-1 update (no concat).
        cp_fc.wait()
        feat = jnp.dot(h3.astype(cdt), fcw_ref[...],
                       preferred_element_type=jnp.float32)
        feat = feat + td_ref[...] * fcwtd_ref[...] + fcb_ref[...]
        out_ref[...] = jnp.maximum(feat, 0.0)             # lane-dense (B, 512)

    inputs = [lhs1,
              l1["w"], l1["b"], l1["gamma"], l1["beta"],
              l2["w"], l2["b"], l2["gamma"], l2["beta"],
              l3["w"], l3["b"], l3["gamma"], l3["beta"],
              fcw_c, fcw_td, fcb, timedeltas]
    any_idx = {5, 9, 13}                                   # w2, w3, fcw -> manual DMA
    in_specs = [pl.BlockSpec(memory_space=pl.ANY) if i in any_idx
                else _full_spec(a.shape) for i, a in enumerate(inputs)]

    flops = 2 * ((OH1 * B) * (K1 * W * C) * W1o
                 + K2 * (OH2 * B) * W1o * W2o
                 + K3 * B * W2o * W3o
                 + B * W3o * 512)
    bytes_accessed = int(sum(int(np.prod(a.shape)) * a.dtype.itemsize for a in inputs)
                         + B * 512 * 4)

    return pl.pallas_call(
        kernel,
        out_shape=jax.ShapeDtypeStruct((B, 512), jnp.float32),
        grid=(1,),
        in_specs=in_specs,
        out_specs=_full_spec((B, 512)),
        scratch_shapes=[
            pltpu.VMEM((OH1 // S2, S2, B, W1o), jnp.float32),  # conv1 activations
            pltpu.VMEM((OH2, B, W2o), jnp.float32),            # conv2 activations
            pltpu.VMEM(l2["w"].shape, l2["w"].dtype),          # conv2 weights (DMA dst)
            pltpu.VMEM(l3["w"].shape, l3["w"].dtype),          # conv3 weights (DMA dst)
            pltpu.VMEM(fcw_c.shape, fcw_c.dtype),              # fc weights   (DMA dst)
            pltpu.SemaphoreType.DMA((3,)),
        ],
        compiler_params=pltpu.CompilerParams(dimension_semantics=("arbitrary",)),
        cost_estimate=pl.CostEstimate(flops=flops, transcendentals=0,
                                      bytes_accessed=bytes_accessed),
    )(*inputs)


# ---------------------------------------------------------------------------
# Pure-JAX reference (PyTorch semantics) for correctness checking
# ---------------------------------------------------------------------------
def ppo_forward_ref(pixels, timedeltas, conv_params, fc_params):
    x = pixels
    for (w, b, gamma, beta), (_, k, s) in zip(conv_params, CONV_DEFS):
        x = jax.lax.conv_general_dilated(
            x, w, (s, s), "VALID", dimension_numbers=("NCHW", "OIHW", "NCHW"))
        x = x + b.reshape(1, -1, 1, 1)
        mean = x.mean(axis=(0, 2, 3), keepdims=True)
        var = ((x - mean) ** 2).mean(axis=(0, 2, 3), keepdims=True)
        x = (x - mean) * jax.lax.rsqrt(var + BN_EPS)
        x = x * gamma.reshape(1, -1, 1, 1) + beta.reshape(1, -1, 1, 1)
        x = jnp.maximum(x, 0.0)
    flat = x.reshape(x.shape[0], -1)
    cat = jnp.concatenate([flat, timedeltas], axis=1)
    fc_w, fc_b = fc_params
    return jnp.maximum(cat @ fc_w + fc_b, 0.0)


if __name__ == "__main__":
    # Smallest shapes the conv stack supports: C=4, H=W=36 -> final map 1x1,
    # linear_input_size = 64, fc input = 65.  Batch = 2.
    B, C, H, num_actions = 2, 4, 36, 3

    key = jax.random.PRNGKey(0)
    kp, kx, kt = jax.random.split(key, 3)
    conv_params, fc_params = make_params(kp, C, H, num_actions)
    layers, fc_packed, sizes = pack_params(conv_params, fc_params, C, H)

    pixels = jax.random.normal(kx, (B, C, H, H), jnp.float32)
    timedeltas = jax.random.uniform(kt, (B, 1), jnp.float32)

    fwd = jax.jit(lambda px, td: ppo_forward(px, td, layers, fc_packed, sizes))
    feature = jax.block_until_ready(fwd(pixels, timedeltas))
    assert feature.shape == (B, 512), feature.shape

    ref = jax.block_until_ready(
        ppo_forward_ref(pixels, timedeltas, conv_params, fc_params))
    # f32 end-to-end; small slack for the one-pass BN variance (E[y^2]-mean^2)
    # and the different matmul/conv reduction orders.
    err = np.abs(np.asarray(feature) - np.asarray(ref)).max()
    assert np.allclose(np.asarray(feature), np.asarray(ref),
                       rtol=2e-3, atol=2e-3), err

    print("KERNEL_OK")
</pallas_src>

<mosaic_0001>
module attributes {stable_mosaic.version = 11 : i64} {
  func.func @kernel(%arg0: i32, %arg1: memref<16x1152xf32, #tpu.memory_space<vmem>>, %arg2: memref<1152x256xf32, #tpu.memory_space<vmem>>, %arg3: memref<1x256xf32, #tpu.memory_space<vmem>>, %arg4: memref<1x256xf32, #tpu.memory_space<vmem>>, %arg5: memref<1x256xf32, #tpu.memory_space<vmem>>, %arg6: memref<4x256x256xf32, #tpu.memory_space<any>>, %arg7: memref<1x256xf32, #tpu.memory_space<vmem>>, %arg8: memref<1x256xf32, #tpu.memory_space<vmem>>, %arg9: memref<1x256xf32, #tpu.memory_space<vmem>>, %arg10: memref<3x256x64xf32, #tpu.memory_space<any>>, %arg11: memref<1x64xf32, #tpu.memory_space<vmem>>, %arg12: memref<1x64xf32, #tpu.memory_space<vmem>>, %arg13: memref<1x64xf32, #tpu.memory_space<vmem>>, %arg14: memref<64x512xf32, #tpu.memory_space<any>>, %arg15: memref<1x512xf32, #tpu.memory_space<vmem>>, %arg16: memref<1x512xf32, #tpu.memory_space<vmem>>, %arg17: memref<2x1xf32, #tpu.memory_space<vmem>>, %arg18: memref<2x512xf32, #tpu.memory_space<vmem>>, %arg19: memref<4x2x2x256xf32, #tpu.memory_space<vmem>>, %arg20: memref<3x2x256xf32, #tpu.memory_space<vmem>>, %arg21: memref<4x256x256xf32, #tpu.memory_space<vmem>>, %arg22: memref<3x256x64xf32, #tpu.memory_space<vmem>>, %arg23: memref<64x512xf32, #tpu.memory_space<vmem>>, %arg24: memref<3x!tpu.dma_semaphore, #tpu.memory_space<semaphore_mem>>) attributes {dimension_semantics = [#tpu.dimension_semantics<arbitrary>], iteration_bounds = array<i64: 1>, scalar_prefetch = 0 : i64, scratch_operands = 6 : i64, tpu.core_type = #tpu.core_type<tc>, window_params = [{pipeline_mode = #tpu.pipeline_mode<synchronous>, transform_indices = @transform_0, window_bounds = array<i64: 16, 1152>}, {pipeline_mode = #tpu.pipeline_mode<synchronous>, transform_indices = @transform_1, window_bounds = array<i64: 1152, 256>}, {pipeline_mode = #tpu.pipeline_mode<synchronous>, transform_indices = @transform_2, window_bounds = array<i64: 1, 256>}, {pipeline_mode = #tpu.pipeline_mode<synchronous>, transform_indices = @transform_3, window_bounds = array<i64: 1, 256>}, {pipeline_mode = #tpu.pipeline_mode<synchronous>, transform_indices = @transform_4, window_bounds = array<i64: 1, 256>}, {}, {pipeline_mode = #tpu.pipeline_mode<synchronous>, transform_indices = @transform_6, window_bounds = array<i64: 1, 256>}, {pipeline_mode = #tpu.pipeline_mode<synchronous>, transform_indices = @transform_7, window_bounds = array<i64: 1, 256>}, {pipeline_mode = #tpu.pipeline_mode<synchronous>, transform_indices = @transform_8, window_bounds = array<i64: 1, 256>}, {}, {pipeline_mode = #tpu.pipeline_mode<synchronous>, transform_indices = @transform_10, window_bounds = array<i64: 1, 64>}, {pipeline_mode = #tpu.pipeline_mode<synchronous>, transform_indices = @transform_11, window_bounds = array<i64: 1, 64>}, {pipeline_mode = #tpu.pipeline_mode<synchronous>, transform_indices = @transform_12, window_bounds = array<i64: 1, 64>}, {}, {pipeline_mode = #tpu.pipeline_mode<synchronous>, transform_indices = @transform_14, window_bounds = array<i64: 1, 512>}, {pipeline_mode = #tpu.pipeline_mode<synchronous>, transform_indices = @transform_15, window_bounds = array<i64: 1, 512>}, {pipeline_mode = #tpu.pipeline_mode<synchronous>, transform_indices = @transform_16, window_bounds = array<i64: 2, 1>}, {pipeline_mode = #tpu.pipeline_mode<synchronous>, transform_indices = @transform_17, window_bounds = array<i64: 2, 512>}]} {
    %c0_i32 = arith.constant 0 : i32
    %0 = tpu.memref_slice %arg24[%c0_i32] : memref<3x!tpu.dma_semaphore, #tpu.memory_space<semaphore_mem>> -> memref<1x!tpu.dma_semaphore, #tpu.memory_space<semaphore_mem>>
    %1 = tpu.memref_squeeze %0 : memref<1x!tpu.dma_semaphore, #tpu.memory_space<semaphore_mem>> -> memref<!tpu.dma_semaphore, #tpu.memory_space<semaphore_mem>>
    tpu.enqueue_dma source(%arg6 : memref<4x256x256xf32, #tpu.memory_space<any>>) target(%arg21 : memref<4x256x256xf32, #tpu.memory_space<vmem>>) target_semaphore(%1 : memref<!tpu.dma_semaphore, #tpu.memory_space<semaphore_mem>>)
    %c1_i32 = arith.constant 1 : i32
    %2 = tpu.memref_slice %arg24[%c1_i32] : memref<3x!tpu.dma_semaphore, #tpu.memory_space<semaphore_mem>> -> memref<1x!tpu.dma_semaphore, #tpu.memory_space<semaphore_mem>>
    %3 = tpu.memref_squeeze %2 : memref<1x!tpu.dma_semaphore, #tpu.memory_space<semaphore_mem>> -> memref<!tpu.dma_semaphore, #tpu.memory_space<semaphore_mem>>
    tpu.enqueue_dma source(%arg10 : memref<3x256x64xf32, #tpu.memory_space<any>>) target(%arg22 : memref<3x256x64xf32, #tpu.memory_space<vmem>>) target_semaphore(%3 : memref<!tpu.dma_semaphore, #tpu.memory_space<semaphore_mem>>)
    %c2_i32 = arith.constant 2 : i32
    %4 = tpu.memref_slice %arg24[%c2_i32] : memref<3x!tpu.dma_semaphore, #tpu.memory_space<semaphore_mem>> -> memref<1x!tpu.dma_semaphore, #tpu.memory_space<semaphore_mem>>
    %5 = tpu.memref_squeeze %4 : memref<1x!tpu.dma_semaphore, #tpu.memory_space<semaphore_mem>> -> memref<!tpu.dma_semaphore, #tpu.memory_space<semaphore_mem>>
    tpu.enqueue_dma source(%arg14 : memref<64x512xf32, #tpu.memory_space<any>>) target(%arg23 : memref<64x512xf32, #tpu.memory_space<vmem>>) target_semaphore(%5 : memref<!tpu.dma_semaphore, #tpu.memory_space<semaphore_mem>>)
    %c0 = arith.constant 0 : index
    %c0_0 = arith.constant 0 : index
    %6 = vector.load %arg1[%c0, %c0_0] : memref<16x1152xf32, #tpu.memory_space<vmem>>, vector<16x1152xf32>
    %c0_1 = arith.constant 0 : index
    %c0_2 = arith.constant 0 : index
    %7 = vector.load %arg2[%c0_1, %c0_2] : memref<1152x256xf32, #tpu.memory_space<vmem>>, vector<1152x256xf32>
    %cst = arith.constant dense<0.000000e+00> : vector<16x256xf32>
    %8 = tpu.matmul %6, %7, %cst {dimension_numbers = #tpu.dot_dimension_numbers<[1], [0], [0], [1], [0, 0, 1, 1], [], []>} : vector<16x1152xf32>, vector<1152x256xf32>, vector<16x256xf32> -> vector<16x256xf32>
    %c0_3 = arith.constant 0 : index
    %c0_4 = arith.constant 0 : index
    %9 = vector.load %arg3[%c0_3, %c0_4] : memref<1x256xf32, #tpu.memory_space<vmem>>, vector<1x256xf32>
    %10 = vector.broadcast %9 : vector<1x256xf32> to vector<16x256xf32>
    %11 = arith.addf %8, %10 : vector<16x256xf32>
    %c0_5 = arith.constant 0 : index
    %c0_6 = arith.constant 0 : index
    %12 = vector.load %arg4[%c0_5, %c0_6] : memref<1x256xf32, #tpu.memory_space<vmem>>, vector<1x256xf32>
    %c0_7 = arith.constant 0 : index
    %c0_8 = arith.constant 0 : index
    %13 = vector.load %arg5[%c0_7, %c0_8] : memref<1x256xf32, #tpu.memory_space<vmem>>, vector<1x256xf32>
    %cst_9 = arith.constant dense<0.000000e+00> : vector<256xf32>
    %14 = vector.multi_reduction <add>, %11, %cst_9 [0] : vector<16x256xf32> to vector<256xf32>
    %15 = vector.shape_cast %14 : vector<256xf32> to vector<1x256xf32>
    %16 = arith.mulf %11, %11 : vector<16x256xf32>
    %cst_10 = arith.constant dense<0.000000e+00> : vector<256xf32>
    %17 = vector.multi_reduction <add>, %16, %cst_10 [0] : vector<16x256xf32> to vector<256xf32>
    %18 = vector.shape_cast %17 : vector<256xf32> to vector<1x256xf32>
    %19 = tpu.concatenate %15, %18 in 0 : vector<1x256xf32>, vector<1x256xf32> -> vector<2x256xf32>
    %c32_i32 = arith.constant 32 : i32
    %20 = tpu.dynamic_rotate %19 by %c32_i32 dim 1 : vector<2x256xf32>, i32 -> vector<2x256xf32>
    %21 = arith.addf %19, %20 : vector<2x256xf32>
    %c64_i32 = arith.constant 64 : i32
    %22 = tpu.dynamic_rotate %21 by %c64_i32 dim 1 : vector<2x256xf32>, i32 -> vector<2x256xf32>
    %23 = arith.addf %21, %22 : vector<2x256xf32>
    %c128_i32 = arith.constant 128 : i32
    %24 = tpu.dynamic_rotate %23 by %c128_i32 dim 1 : vector<2x256xf32>, i32 -> vector<2x256xf32>
    %25 = arith.addf %23, %24 : vector<2x256xf32>
    %cst_11 = arith.constant 7.812500e-03 : f32
    %26 = vector.broadcast %cst_11 : f32 to vector<2x256xf32>
    %27 = arith.mulf %25, %26 : vector<2x256xf32>
    %28 = vector.extract_strided_slice %27 {offsets = [0, 0], sizes = [1, 256], strides = [1, 1]} : vector<2x256xf32> to vector<1x256xf32>
    %29 = vector.extract_strided_slice %27 {offsets = [1, 0], sizes = [1, 256], strides = [1, 1]} : vector<2x256xf32> to vector<1x256xf32>
    %30 = arith.mulf %28, %28 : vector<1x256xf32>
    %31 = arith.subf %29, %30 : vector<1x256xf32>
    %32 = vector.broadcast %28 : vector<1x256xf32> to vector<16x256xf32>
    %33 = arith.subf %11, %32 : vector<16x256xf32>
    %cst_12 = arith.constant 9.99999974E-6 : f32
    %34 = vector.broadcast %cst_12 : f32 to vector<1x256xf32>
    %35 = arith.addf %31, %34 : vector<1x256xf32>
    %36 = math.rsqrt %35 : vector<1x256xf32>
    %37 = vector.broadcast %36 : vector<1x256xf32> to vector<16x256xf32>
    %38 = arith.mulf %33, %37 : vector<16x256xf32>
    %39 = vector.broadcast %12 : vector<1x256xf32> to vector<16x256xf32>
    %40 = arith.mulf %38, %39 : vector<16x256xf32>
    %41 = vector.broadcast %13 : vector<1x256xf32> to vector<16x256xf32>
    %42 = arith.addf %40, %41 : vector<16x256xf32>
    %cst_13 = arith.constant 0.000000e+00 : f32
    %43 = vector.broadcast %cst_13 : f32 to vector<16x256xf32>
    %44 = arith.maximumf %42, %43 : vector<16x256xf32>
    %45 = vector.shape_cast %44 : vector<16x256xf32> to vector<4x2x2x256xf32>
    %c0_14 = arith.constant 0 : index
    %c0_15 = arith.constant 0 : index
    %c0_16 = arith.constant 0 : index
    %c0_17 = arith.constant 0 : index
    %46 = vector.load %arg19[%c0_14, %c0_15, %c0_16, %c0_17] : memref<4x2x2x256xf32, #tpu.memory_space<vmem>>, vector<4x2x2x256xf32>
    tpu.vector_store %arg19[%c0_14, %c0_15, %c0_16, %c0_17], %45 {strides = array<i32>} : memref<4x2x2x256xf32, #tpu.memory_space<vmem>>, vector<4x2x2x256xf32>,
    %c0_i32_18 = arith.constant 0 : i32
    %47 = tpu.memref_slice %arg24[%c0_i32_18] : memref<3x!tpu.dma_semaphore, #tpu.memory_space<semaphore_mem>> -> memref<1x!tpu.dma_semaphore, #tpu.memory_space<semaphore_mem>>
    %48 = tpu.memref_squeeze %47 : memref<1x!tpu.dma_semaphore, #tpu.memory_space<semaphore_mem>> -> memref<!tpu.dma_semaphore, #tpu.memory_space<semaphore_mem>>
    tpu.wait_dma2 semaphore(%48 : memref<!tpu.dma_semaphore, #tpu.memory_space<semaphore_mem>>) src(%arg6 : memref<4x256x256xf32, #tpu.memory_space<any>>) dst(%arg21 : memref<4x256x256xf32, #tpu.memory_space<vmem>>)
    %c0_19 = arith.constant 0 : index
    %c0_20 = arith.constant 0 : index
    %c0_21 = arith.constant 0 : index
    %c0_22 = arith.constant 0 : index
    %49 = vector.load %arg19[%c0_19, %c0_20, %c0_21, %c0_22] : memref<4x2x2x256xf32, #tpu.memory_space<vmem>>, vector<3x1x2x256xf32>
    %50 = vector.shape_cast %49 : vector<3x1x2x256xf32> to vector<3x2x256xf32>
    %51 = vector.shape_cast %50 : vector<3x2x256xf32> to vector<6x256xf32>
    %c0_23 = arith.constant 0 : index
    %c0_24 = arith.constant 0 : index
    %c0_25 = arith.constant 0 : index
    %52 = vector.load %arg21[%c0_23, %c0_24, %c0_25] : memref<4x256x256xf32, #tpu.memory_space<vmem>>, vector<1x256x256xf32>
    %53 = vector.shape_cast %52 : vector<1x256x256xf32> to vector<256x256xf32>
    %cst_26 = arith.constant dense<0.000000e+00> : vector<6x256xf32>
    %54 = tpu.matmul %51, %53, %cst_26 {dimension_numbers = #tpu.dot_dimension_numbers<[1], [0], [0], [1], [0, 0, 1, 1], [], []>} : vector<6x256xf32>, vector<256x256xf32>, vector<6x256xf32> -> vector<6x256xf32>
    %c0_27 = arith.constant 0 : index
    %c1 = arith.constant 1 : index
    %c0_28 = arith.constant 0 : index
    %c0_29 = arith.constant 0 : index
    %55 = vector.load %arg19[%c0_27, %c1, %c0_28, %c0_29] : memref<4x2x2x256xf32, #tpu.memory_space<vmem>>, vector<3x1x2x256xf32>
    %56 = vector.shape_cast %55 : vector<3x1x2x256xf32> to vector<3x2x256xf32>
    %57 = vector.shape_cast %56 : vector<3x2x256xf32> to vector<6x256xf32>
    %c1_30 = arith.constant 1 : index
    %c0_31 = arith.constant 0 : index
    %c0_32 = arith.constant 0 : index
    %58 = vector.load %arg21[%c1_30, %c0_31, %c0_32] : memref<4x256x256xf32, #tpu.memory_space<vmem>>, vector<1x256x256xf32>
    %59 = vector.shape_cast %58 : vector<1x256x256xf32> to vector<256x256xf32>
    %cst_33 = arith.constant dense<0.000000e+00> : vector<6x256xf32>
    %60 = tpu.matmul %57, %59, %cst_33 {dimension_numbers = #tpu.dot_dimension_numbers<[1], [0], [0], [1], [0, 0, 1, 1], [], []>} : vector<6x256xf32>, vector<256x256xf32>, vector<6x256xf32> -> vector<6x256xf32>
    %61 = arith.addf %54, %60 : vector<6x256xf32>
    %c1_34 = arith.constant 1 : index
    %c0_35 = arith.constant 0 : index
    %c0_36 = arith.constant 0 : index
    %c0_37 = arith.constant 0 : index
    %62 = vector.load %arg19[%c1_34, %c0_35, %c0_36, %c0_37] : memref<4x2x2x256xf32, #tpu.memory_space<vmem>>, vector<3x1x2x256xf32>
    %63 = vector.shape_cast %62 : vector<3x1x2x256xf32> to vector<3x2x256xf32>
    %64 = vector.shape_cast %63 : vector<3x2x256xf32> to vector<6x256xf32>
    %c2 = arith.constant 2 : index
    %c0_38 = arith.constant 0 : index
    %c0_39 = arith.constant 0 : index
    %65 = vector.load %arg21[%c2, %c0_38, %c0_39] : memref<4x256x256xf32, #tpu.memory_space<vmem>>, vector<1x256x256xf32>
    %66 = vector.shape_cast %65 : vector<1x256x256xf32> to vector<256x256xf32>
    %cst_40 = arith.constant dense<0.000000e+00> : vector<6x256xf32>
    %67 = tpu.matmul %64, %66, %cst_40 {dimension_numbers = #tpu.dot_dimension_numbers<[1], [0], [0], [1], [0, 0, 1, 1], [], []>} : vector<6x256xf32>, vector<256x256xf32>, vector<6x256xf32> -> vector<6x256xf32>
    %68 = arith.addf %61, %67 : vector<6x256xf32>
    %c1_41 = arith.constant 1 : index
    %c1_42 = arith.constant 1 : index
    %c0_43 = arith.constant 0 : index
    %c0_44 = arith.constant 0 : index
    %69 = vector.load %arg19[%c1_41, %c1_42, %c0_43, %c0_44] : memref<4x2x2x256xf32, #tpu.memory_space<vmem>>, vector<3x1x2x256xf32>
    %70 = vector.shape_cast %69 : vector<3x1x2x256xf32> to vector<3x2x256xf32>
    %71 = vector.shape_cast %70 : vector<3x2x256xf32> to vector<6x256xf32>
    %c3 = arith.constant 3 : index
    %c0_45 = arith.constant 0 : index
    %c0_46 = arith.constant 0 : index
    %72 = vector.load %arg21[%c3, %c0_45, %c0_46] : memref<4x256x256xf32, #tpu.memory_space<vmem>>, vector<1x256x256xf32>
    %73 = vector.shape_cast %72 : vector<1x256x256xf32> to vector<256x256xf32>
    %cst_47 = arith.constant dense<0.000000e+00> : vector<6x256xf32>
    %74 = tpu.matmul %71, %73, %cst_47 {dimension_numbers = #tpu.dot_dimension_numbers<[1], [0], [0], [1], [0, 0, 1, 1], [], []>} : vector<6x256xf32>, vector<256x256xf32>, vector<6x256xf32> -> vector<6x256xf32>
    %75 = arith.addf %68, %74 : vector<6x256xf32>
    %c0_48 = arith.constant 0 : index
    %c0_49 = arith.constant 0 : index
    %76 = vector.load %arg7[%c0_48, %c0_49] : memref<1x256xf32, #tpu.memory_space<vmem>>, vector<1x256xf32>
    %77 = vector.broadcast %76 : vector<1x256xf32> to vector<6x256xf32>
    %78 = arith.addf %75, %77 : vector<6x256xf32>
    %c0_50 = arith.constant 0 : index
    %c0_51 = arith.constant 0 : index
    %79 = vector.load %arg8[%c0_50, %c0_51] : memref<1x256xf32, #tpu.memory_space<vmem>>, vector<1x256xf32>
    %c0_52 = arith.constant 0 : index
    %c0_53 = arith.constant 0 : index
    %80 = vector.load %arg9[%c0_52, %c0_53] : memref<1x256xf32, #tpu.memory_space<vmem>>, vector<1x256xf32>
    %cst_54 = arith.constant dense<0.000000e+00> : vector<256xf32>
    %81 = vector.multi_reduction <add>, %78, %cst_54 [0] : vector<6x256xf32> to vector<256xf32>
    %82 = vector.shape_cast %81 : vector<256xf32> to vector<1x256xf32>
    %83 = arith.mulf %78, %78 : vector<6x256xf32>
    %cst_55 = arith.constant dense<0.000000e+00> : vector<256xf32>
    %84 = vector.multi_reduction <add>, %83, %cst_55 [0] : vector<6x256xf32> to vector<256xf32>
    %85 = vector.shape_cast %84 : vector<256xf32> to vector<1x256xf32>
    %86 = tpu.concatenate %82, %85 in 0 : vector<1x256xf32>, vector<1x256xf32> -> vector<2x256xf32>
    %c64_i32_56 = arith.constant 64 : i32
    %87 = tpu.dynamic_rotate %86 by %c64_i32_56 dim 1 : vector<2x256xf32>, i32 -> vector<2x256xf32>
    %88 = arith.addf %86, %87 : vector<2x256xf32>
    %c128_i32_57 = arith.constant 128 : i32
    %89 = tpu.dynamic_rotate %88 by %c128_i32_57 dim 1 : vector<2x256xf32>, i32 -> vector<2x256xf32>
    %90 = arith.addf %88, %89 : vector<2x256xf32>
    %cst_58 = arith.constant 0.055555556 : f32
    %91 = vector.broadcast %cst_58 : f32 to vector<2x256xf32>
    %92 = arith.mulf %90, %91 : vector<2x256xf32>
    %93 = vector.extract_strided_slice %92 {offsets = [0, 0], sizes = [1, 256], strides = [1, 1]} : vector<2x256xf32> to vector<1x256xf32>
    %94 = vector.extract_strided_slice %92 {offsets = [1, 0], sizes = [1, 256], strides = [1, 1]} : vector<2x256xf32> to vector<1x256xf32>
    %95 = arith.mulf %93, %93 : vector<1x256xf32>
    %96 = arith.subf %94, %95 : vector<1x256xf32>
    %97 = vector.broadcast %93 : vector<1x256xf32> to vector<6x256xf32>
    %98 = arith.subf %78, %97 : vector<6x256xf32>
    %cst_59 = arith.constant 9.99999974E-6 : f32
    %99 = vector.broadcast %cst_59 : f32 to vector<1x256xf32>
    %100 = arith.addf %96, %99 : vector<1x256xf32>
    %101 = math.rsqrt %100 : vector<1x256xf32>
    %102 = vector.broadcast %101 : vector<1x256xf32> to vector<6x256xf32>
    %103 = arith.mulf %98, %102 : vector<6x256xf32>
    %104 = vector.broadcast %79 : vector<1x256xf32> to vector<6x256xf32>
    %105 = arith.mulf %103, %104 : vector<6x256xf32>
    %106 = vector.broadcast %80 : vector<1x256xf32> to vector<6x256xf32>
    %107 = arith.addf %105, %106 : vector<6x256xf32>
    %cst_60 = arith.constant 0.000000e+00 : f32
    %108 = vector.broadcast %cst_60 : f32 to vector<6x256xf32>
    %109 = arith.maximumf %107, %108 : vector<6x256xf32>
    %110 = vector.shape_cast %109 : vector<6x256xf32> to vector<3x2x256xf32>
    %c0_61 = arith.constant 0 : index
    %c0_62 = arith.constant 0 : index
    %c0_63 = arith.constant 0 : index
    %111 = vector.load %arg20[%c0_61, %c0_62, %c0_63] : memref<3x2x256xf32, #tpu.memory_space<vmem>>, vector<3x2x256xf32>
    tpu.vector_store %arg20[%c0_61, %c0_62, %c0_63], %110 {strides = array<i32>} : memref<3x2x256xf32, #tpu.memory_space<vmem>>, vector<3x2x256xf32>,
    %c1_i32_64 = arith.constant 1 : i32
    %112 = tpu.memref_slice %arg24[%c1_i32_64] : memref<3x!tpu.dma_semaphore, #tpu.memory_space<semaphore_mem>> -> memref<1x!tpu.dma_semaphore, #tpu.memory_space<semaphore_mem>>
    %113 = tpu.memref_squeeze %112 : memref<1x!tpu.dma_semaphore, #tpu.memory_space<semaphore_mem>> -> memref<!tpu.dma_semaphore, #tpu.memory_space<semaphore_mem>>
    tpu.wait_dma2 semaphore(%113 : memref<!tpu.dma_semaphore, #tpu.memory_space<semaphore_mem>>) src(%arg10 : memref<3x256x64xf32, #tpu.memory_space<any>>) dst(%arg22 : memref<3x256x64xf32, #tpu.memory_space<vmem>>)
    %c0_65 = arith.constant 0 : index
    %c0_66 = arith.constant 0 : index
    %c0_67 = arith.constant 0 : index
    %114 = vector.load %arg20[%c0_65, %c0_66, %c0_67] : memref<3x2x256xf32, #tpu.memory_space<vmem>>, vector<1x2x256xf32>
    %115 = vector.shape_cast %114 : vector<1x2x256xf32> to vector<2x256xf32>
    %c0_68 = arith.constant 0 : index
    %c0_69 = arith.constant 0 : index
    %c0_70 = arith.constant 0 : index
    %116 = vector.load %arg22[%c0_68, %c0_69, %c0_70] : memref<3x256x64xf32, #tpu.memory_space<vmem>>, vector<1x256x64xf32>
    %117 = vector.shape_cast %116 : vector<1x256x64xf32> to vector<256x64xf32>
    %cst_71 = arith.constant dense<0.000000e+00> : vector<2x64xf32>
    %118 = tpu.matmul %115, %117, %cst_71 {dimension_numbers = #tpu.dot_dimension_numbers<[1], [0], [0], [1], [0, 0, 1, 1], [], []>} : vector<2x256xf32>, vector<256x64xf32>, vector<2x64xf32> -> vector<2x64xf32>
    %c1_72 = arith.constant 1 : index
    %c0_73 = arith.constant 0 : index
    %c0_74 = arith.constant 0 : index
    %119 = vector.load %arg20[%c1_72, %c0_73, %c0_74] : memref<3x2x256xf32, #tpu.memory_space<vmem>>, vector<1x2x256xf32>
    %120 = vector.shape_cast %119 : vector<1x2x256xf32> to vector<2x256xf32>
    %c1_75 = arith.constant 1 : index
    %c0_76 = arith.constant 0 : index
    %c0_77 = arith.constant 0 : index
    %121 = vector.load %arg22[%c1_75, %c0_76, %c0_77] : memref<3x256x64xf32, #tpu.memory_space<vmem>>, vector<1x256x64xf32>
    %122 = vector.shape_cast %121 : vector<1x256x64xf32> to vector<256x64xf32>
    %cst_78 = arith.constant dense<0.000000e+00> : vector<2x64xf32>
    %123 = tpu.matmul %120, %122, %cst_78 {dimension_numbers = #tpu.dot_dimension_numbers<[1], [0], [0], [1], [0, 0, 1, 1], [], []>} : vector<2x256xf32>, vector<256x64xf32>, vector<2x64xf32> -> vector<2x64xf32>
    %124 = arith.addf %118, %123 : vector<2x64xf32>
    %c2_79 = arith.constant 2 : index
    %c0_80 = arith.constant 0 : index
    %c0_81 = arith.constant 0 : index
    %125 = vector.load %arg20[%c2_79, %c0_80, %c0_81] : memref<3x2x256xf32, #tpu.memory_space<vmem>>, vector<1x2x256xf32>
    %126 = vector.shape_cast %125 : vector<1x2x256xf32> to vector<2x256xf32>
    %c2_82 = arith.constant 2 : index
    %c0_83 = arith.constant 0 : index
    %c0_84 = arith.constant 0 : index
    %127 = vector.load %arg22[%c2_82, %c0_83, %c0_84] : memref<3x256x64xf32, #tpu.memory_space<vmem>>, vector<1x256x64xf32>
    %128 = vector.shape_cast %127 : vector<1x256x64xf32> to vector<256x64xf32>
    %cst_85 = arith.constant dense<0.000000e+00> : vector<2x64xf32>
    %129 = tpu.matmul %126, %128, %cst_85 {dimension_numbers = #tpu.dot_dimension_numbers<[1], [0], [0], [1], [0, 0, 1, 1], [], []>} : vector<2x256xf32>, vector<256x64xf32>, vector<2x64xf32> -> vector<2x64xf32>
    %130 = arith.addf %124, %129 : vector<2x64xf32>
    %c0_86 = arith.constant 0 : index
    %c0_87 = arith.constant 0 : index
    %131 = vector.load %arg11[%c0_86, %c0_87] : memref<1x64xf32, #tpu.memory_space<vmem>>, vector<1x64xf32>
    %132 = vector.broadcast %131 : vector<1x64xf32> to vector<2x64xf32>
    %133 = arith.addf %130, %132 : vector<2x64xf32>
    %c0_88 = arith.constant 0 : index
    %c0_89 = arith.constant 0 : index
    %134 = vector.load %arg12[%c0_88, %c0_89] : memref<1x64xf32, #tpu.memory_space<vmem>>, vector<1x64xf32>
    %c0_90 = arith.constant 0 : index
    %c0_91 = arith.constant 0 : index
    %135 = vector.load %arg13[%c0_90, %c0_91] : memref<1x64xf32, #tpu.memory_space<vmem>>, vector<1x64xf32>
    %cst_92 = arith.constant dense<0.000000e+00> : vector<64xf32>
    %136 = vector.multi_reduction <add>, %133, %cst_92 [0] : vector<2x64xf32> to vector<64xf32>
    %137 = vector.shape_cast %136 : vector<64xf32> to vector<1x64xf32>
    %138 = arith.mulf %133, %133 : vector<2x64xf32>
    %cst_93 = arith.constant dense<0.000000e+00> : vector<64xf32>
    %139 = vector.multi_reduction <add>, %138, %cst_93 [0] : vector<2x64xf32> to vector<64xf32>
    %140 = vector.shape_cast %139 : vector<64xf32> to vector<1x64xf32>
    %141 = tpu.concatenate %137, %140 in 0 : vector<1x64xf32>, vector<1x64xf32> -> vector<2x64xf32>
    %cst_94 = arith.constant 5.000000e-01 : f32
    %142 = vector.broadcast %cst_94 : f32 to vector<2x64xf32>
    %143 = arith.mulf %141, %142 : vector<2x64xf32>
    %144 = vector.extract_strided_slice %143 {offsets = [0, 0], sizes = [1, 64], strides = [1, 1]} : vector<2x64xf32> to vector<1x64xf32>
    %145 = vector.extract_strided_slice %143 {offsets = [1, 0], sizes = [1, 64], strides = [1, 1]} : vector<2x64xf32> to vector<1x64xf32>
    %146 = arith.mulf %144, %144 : vector<1x64xf32>
    %147 = arith.subf %145, %146 : vector<1x64xf32>
    %148 = vector.broadcast %144 : vector<1x64xf32> to vector<2x64xf32>
    %149 = arith.subf %133, %148 : vector<2x64xf32>
    %cst_95 = arith.constant 9.99999974E-6 : f32
    %150 = vector.broadcast %cst_95 : f32 to vector<1x64xf32>
    %151 = arith.addf %147, %150 : vector<1x64xf32>
    %152 = math.rsqrt %151 : vector<1x64xf32>
    %153 = vector.broadcast %152 : vector<1x64xf32> to vector<2x64xf32>
    %154 = arith.mulf %149, %153 : vector<2x64xf32>
    %155 = vector.broadcast %134 : vector<1x64xf32> to vector<2x64xf32>
    %156 = arith.mulf %154, %155 : vector<2x64xf32>
    %157 = vector.broadcast %135 : vector<1x64xf32> to vector<2x64xf32>
    %158 = arith.addf %156, %157 : vector<2x64xf32>
    %cst_96 = arith.constant 0.000000e+00 : f32
    %159 = vector.broadcast %cst_96 : f32 to vector<2x64xf32>
    %160 = arith.maximumf %158, %159 : vector<2x64xf32>
    %c2_i32_97 = arith.constant 2 : i32
    %161 = tpu.memref_slice %arg24[%c2_i32_97] : memref<3x!tpu.dma_semaphore, #tpu.memory_space<semaphore_mem>> -> memref<1x!tpu.dma_semaphore, #tpu.memory_space<semaphore_mem>>
    %162 = tpu.memref_squeeze %161 : memref<1x!tpu.dma_semaphore, #tpu.memory_space<semaphore_mem>> -> memref<!tpu.dma_semaphore, #tpu.memory_space<semaphore_mem>>
    tpu.wait_dma2 semaphore(%162 : memref<!tpu.dma_semaphore, #tpu.memory_space<semaphore_mem>>) src(%arg14 : memref<64x512xf32, #tpu.memory_space<any>>) dst(%arg23 : memref<64x512xf32, #tpu.memory_space<vmem>>)
    %c0_98 = arith.constant 0 : index
    %c0_99 = arith.constant 0 : index
    %163 = vector.load %arg23[%c0_98, %c0_99] : memref<64x512xf32, #tpu.memory_space<vmem>>, vector<64x512xf32>
    %cst_100 = arith.constant dense<0.000000e+00> : vector<2x512xf32>
    %164 = tpu.matmul %160, %163, %cst_100 {dimension_numbers = #tpu.dot_dimension_numbers<[1], [0], [0], [1], [0, 0, 1, 1], [], []>} : vector<2x64xf32>, vector<64x512xf32>, vector<2x512xf32> -> vector<2x512xf32>
    %c0_101 = arith.constant 0 : index
    %c0_102 = arith.constant 0 : index
    %165 = vector.load %arg17[%c0_101, %c0_102] : memref<2x1xf32, #tpu.memory_space<vmem>>, vector<2x1xf32>
    %c0_103 = arith.constant 0 : index
    %c0_104 = arith.constant 0 : index
    %166 = vector.load %arg15[%c0_103, %c0_104] : memref<1x512xf32, #tpu.memory_space<vmem>>, vector<1x512xf32>
    %167 = vector.broadcast %165 : vector<2x1xf32> to vector<2x512xf32>
    %168 = vector.broadcast %166 : vector<1x512xf32> to vector<2x512xf32>
    %169 = arith.mulf %167, %168 : vector<2x512xf32>
    %170 = arith.addf %164, %169 : vector<2x512xf32>
    %c0_105 = arith.constant 0 : index
    %c0_106 = arith.constant 0 : index
    %171 = vector.load %arg16[%c0_105, %c0_106] : memref<1x512xf32, #tpu.memory_space<vmem>>, vector<1x512xf32>
    %172 = vector.broadcast %171 : vector<1x512xf32> to vector<2x512xf32>
    %173 = arith.addf %170, %172 : vector<2x512xf32>
    %cst_107 = arith.constant 0.000000e+00 : f32
    %174 = vector.broadcast %cst_107 : f32 to vector<2x512xf32>
    %175 = arith.maximumf %173, %174 : vector<2x512xf32>
    %c0_108 = arith.constant 0 : index
    %c0_109 = arith.constant 0 : index
    %176 = vector.load %arg18[%c0_108, %c0_109] : memref<2x512xf32, #tpu.memory_space<vmem>>, vector<2x512xf32>
    tpu.vector_store %arg18[%c0_108, %c0_109], %175 {strides = array<i32>} : memref<2x512xf32, #tpu.memory_space<vmem>>, vector<2x512xf32>,
    return
  }
  func.func @transform_0(%arg0: i32) -> (i32, i32) {
    %c0_i32 = arith.constant 0 : i32
    %c0_i32_0 = arith.constant 0 : i32
    %c0_i32_1 = arith.constant 0 : i32
    return %c0_i32, %c0_i32_0 : i32, i32
  }
  func.func @transform_1(%arg0: i32) -> (i32, i32) {
    %c0_i32 = arith.constant 0 : i32
    %c0_i32_0 = arith.constant 0 : i32
    %c0_i32_1 = arith.constant 0 : i32
    return %c0_i32, %c0_i32_0 : i32, i32
  }
  func.func @transform_2(%arg0: i32) -> (i32, i32) {
    %c0_i32 = arith.constant 0 : i32
    %c0_i32_0 = arith.constant 0 : i32
    %c0_i32_1 = arith.constant 0 : i32
    return %c0_i32, %c0_i32_0 : i32, i32
  }
  func.func @transform_3(%arg0: i32) -> (i32, i32) {
    %c0_i32 = arith.constant 0 : i32
    %c0_i32_0 = arith.constant 0 : i32
    %c0_i32_1 = arith.constant 0 : i32
    return %c0_i32, %c0_i32_0 : i32, i32
  }
  func.func @transform_4(%arg0: i32) -> (i32, i32) {
    %c0_i32 = arith.constant 0 : i32
    %c0_i32_0 = arith.constant 0 : i32
    %c0_i32_1 = arith.constant 0 : i32
    return %c0_i32, %c0_i32_0 : i32, i32
  }
  func.func @transform_6(%arg0: i32) -> (i32, i32) {
    %c0_i32 = arith.constant 0 : i32
    %c0_i32_0 = arith.constant 0 : i32
    %c0_i32_1 = arith.constant 0 : i32
    return %c0_i32, %c0_i32_0 : i32, i32
  }
  func.func @transform_7(%arg0: i32) -> (i32, i32) {
    %c0_i32 = arith.constant 0 : i32
    %c0_i32_0 = arith.constant 0 : i32
    %c0_i32_1 = arith.constant 0 : i32
    return %c0_i32, %c0_i32_0 : i32, i32
  }
  func.func @transform_8(%arg0: i32) -> (i32, i32) {
    %c0_i32 = arith.constant 0 : i32
    %c0_i32_0 = arith.constant 0 : i32
    %c0_i32_1 = arith.constant 0 : i32
    return %c0_i32, %c0_i32_0 : i32, i32
  }
  func.func @transform_10(%arg0: i32) -> (i32, i32) {
    %c0_i32 = arith.constant 0 : i32
    %c0_i32_0 = arith.constant 0 : i32
    %c0_i32_1 = arith.constant 0 : i32
    return %c0_i32, %c0_i32_0 : i32, i32
  }
  func.func @transform_11(%arg0: i32) -> (i32, i32) {
    %c0_i32 = arith.constant 0 : i32
    %c0_i32_0 = arith.constant 0 : i32
    %c0_i32_1 = arith.constant 0 : i32
    return %c0_i32, %c0_i32_0 : i32, i32
  }
  func.func @transform_12(%arg0: i32) -> (i32, i32) {
    %c0_i32 = arith.constant 0 : i32
    %c0_i32_0 = arith.constant 0 : i32
    %c0_i32_1 = arith.constant 0 : i32
    return %c0_i32, %c0_i32_0 : i32, i32
  }
  func.func @transform_14(%arg0: i32) -> (i32, i32) {
    %c0_i32 = arith.constant 0 : i32
    %c0_i32_0 = arith.constant 0 : i32
    %c0_i32_1 = arith.constant 0 : i32
    return %c0_i32, %c0_i32_0 : i32, i32
  }
  func.func @transform_15(%arg0: i32) -> (i32, i32) {
    %c0_i32 = arith.constant 0 : i32
    %c0_i32_0 = arith.constant 0 : i32
    %c0_i32_1 = arith.constant 0 : i32
    return %c0_i32, %c0_i32_0 : i32, i32
  }
  func.func @transform_16(%arg0: i32) -> (i32, i32) {
    %c0_i32 = arith.constant 0 : i32
    %c0_i32_0 = arith.constant 0 : i32
    %c0_i32_1 = arith.constant 0 : i32
    return %c0_i32, %c0_i32_0 : i32, i32
  }
  func.func @transform_17(%arg0: i32) -> (i32, i32) {
    %c0_i32 = arith.constant 0 : i32
    %c0_i32_0 = arith.constant 0 : i32
    %c0_i32_1 = arith.constant 0 : i32
    return %c0_i32, %c0_i32_0 : i32, i32
  }
}

</mosaic_0001>

<bundles_post_ra>
// kernel: _lambda_.1
= control target key start
LH: loop header
LB: loop body
LE: loop exit
PB: predicated region body
PF: predicated region fallthrough
CT: control target
= control target key end

     0   :  { %s7702_s0 = inlined_call_operand.vmem [shape: f32[16,1152], index: 0, kind: input, shape index: {}]   ;;  %s7703_s1 = inlined_call_operand.vmem [shape: f32[1152,256], index: 1, kind: input, shape index: {}]   ;;  %s7704_s2 = inlined_call_operand.vmem [shape: f32[1,256], index: 2, kind: input, shape index: {}]   ;;  %s7705_s3 = inlined_call_operand.vmem [shape: f32[1,256], index: 3, kind: input, shape index: {}]   ;;  %s7706_s4 = inlined_call_operand.vmem [shape: f32[1,256], index: 4, kind: input, shape index: {}, may-alias: {4,8}]   ;;  %s7707_s5 = inlined_call_operand.vmem [shape: f32[4,256,256], index: 5, kind: input, shape index: {}]   ;;  %s7708_s6 = inlined_call_operand.vmem [shape: f32[1,256], index: 6, kind: input, shape index: {}]   ;;  %s7709_s7 = inlined_call_operand.vmem [shape: f32[1,256], index: 7, kind: input, shape index: {}]   ;;  %s7710_s8 = inlined_call_operand.vmem [shape: f32[1,256], index: 8, kind: input, shape index: {}, may-alias: {4,8}]   ;;  %s7711_s9 = inlined_call_operand.vmem [shape: f32[3,256,64], index: 9, kind: input, shape index: {}]   ;;  %s7712_s10 = inlined_call_operand.vmem [shape: f32[1,64], index: 10, kind: input, shape index: {}]   ;;  %s7713_s11 = inlined_call_operand.vmem [shape: f32[1,64], index: 11, kind: input, shape index: {}]   ;;  %s7714_s12 = inlined_call_operand.vmem [shape: f32[1,64], index: 12, kind: input, shape index: {}]   ;;  %s7715_s13 = inlined_call_operand.vmem [shape: f32[64,512], index: 13, kind: input, shape index: {}]   ;;  %s7716_s14 = inlined_call_operand.vmem [shape: f32[1,512], index: 14, kind: input, shape index: {}]   ;;  %s7717_s15 = inlined_call_operand.vmem [shape: f32[1,512], index: 15, kind: input, shape index: {}]   ;;  %s7718_s16 = inlined_call_operand.vmem [shape: f32[2,1], index: 16, kind: input, shape index: {}]   ;;  %s7719_s17 = inlined_call_operand.hbm [shape: f32[2,512], index: 17, kind: output, shape index: {}]  }
   0x1   :  { %7724 = sst [smem:[#allocation371_spill]] %s7702_s0 }
   0x2   :  { %7725 = sst [smem:[#allocation372_spill]] %s7703_s1 }
   0x3   :  { %22 = vsyncpa [#allocation9], 0  ;;  %v4308_v0 = vld [vmem:[%s7707_s5] sm:$0xff]  ;;  %v4313_v1 = vld [vmem:[%s7707_s5 + $0x8] sm:$0xff] }
   0x4   :  { %7726 = vst [vmem:[#allocation17_spill] sm:$0xff] %v4308_v0  ;;  %7727 = vst [vmem:[#allocation18_spill] sm:$0xff] %v4313_v1  ;;  %v4318_v2 = vld [vmem:[%s7707_s5 + $0x10] sm:$0xff]  ;;  %v4323_v3 = vld [vmem:[%s7707_s5 + $0x18] sm:$0xff] }
   0x5   :  { %7728 = vst [vmem:[#allocation19_spill] sm:$0xff] %v4318_v2  ;;  %7729 = vst [vmem:[#allocation20_spill] sm:$0xff] %v4323_v3  ;;  %v4328_v4 = vld [vmem:[%s7707_s5 + $0x20] sm:$0xff]  ;;  %v4333_v5 = vld [vmem:[%s7707_s5 + $0x28] sm:$0xff] }
   0x6   :  { %7730 = vst [vmem:[#allocation21_spill] sm:$0xff] %v4328_v4  ;;  %7731 = vst [vmem:[#allocation22_spill] sm:$0xff] %v4333_v5  ;;  %v4338_v6 = vld [vmem:[%s7707_s5 + $0x30] sm:$0xff]  ;;  %v4343_v7 = vld [vmem:[%s7707_s5 + $0x38] sm:$0xff] }
   0x7   :  { %7732 = vst [vmem:[#allocation23_spill] sm:$0xff] %v4338_v6  ;;  %7733 = vst [vmem:[#allocation24_spill] sm:$0xff] %v4343_v7  ;;  %v4348_v8 = vld [vmem:[%s7707_s5 + $0x40] sm:$0xff]  ;;  %v4353_v9 = vld [vmem:[%s7707_s5 + $0x48] sm:$0xff] }
   0x8   :  { %7734 = vst [vmem:[#allocation25_spill] sm:$0xff] %v4348_v8  ;;  %7735 = vst [vmem:[#allocation26_spill] sm:$0xff] %v4353_v9  ;;  %v4358_v10 = vld [vmem:[%s7707_s5 + $0x50] sm:$0xff]  ;;  %v4363_v11 = vld [vmem:[%s7707_s5 + $0x58] sm:$0xff] }
   0x9   :  { %7736 = vst [vmem:[#allocation27_spill] sm:$0xff] %v4358_v10  ;;  %7737 = vst [vmem:[#allocation28_spill] sm:$0xff] %v4363_v11  ;;  %v4368_v12 = vld [vmem:[%s7707_s5 + $0x60] sm:$0xff]  ;;  %v4373_v13 = vld [vmem:[%s7707_s5 + $0x68] sm:$0xff] }
   0xa   :  { %7738 = vst [vmem:[#allocation29_spill] sm:$0xff] %v4368_v12  ;;  %7739 = vst [vmem:[#allocation30_spill] sm:$0xff] %v4373_v13  ;;  %v4378_v14 = vld [vmem:[%s7707_s5 + $0x70] sm:$0xff]  ;;  %v4383_v15 = vld [vmem:[%s7707_s5 + $0x78] sm:$0xff] }
   0xb   :  { %7740 = vst [vmem:[#allocation31_spill] sm:$0xff] %v4378_v14  ;;  %7741 = vst [vmem:[#allocation32_spill] sm:$0xff] %v4383_v15  ;;  %v4388_v16 = vld [vmem:[%s7707_s5 + $0x80] sm:$0xff]  ;;  %v4393_v17 = vld [vmem:[%s7707_s5 + $0x88] sm:$0xff] }
   0xc   :  { %7742 = vst [vmem:[#allocation33_spill] sm:$0xff] %v4388_v16  ;;  %7743 = vst [vmem:[#allocation34_spill] sm:$0xff] %v4393_v17  ;;  %v4398_v18 = vld [vmem:[%s7707_s5 + $0x90] sm:$0xff]  ;;  %v4403_v19 = vld [vmem:[%s7707_s5 + $0x98] sm:$0xff] }
   0xd   :  { %7744 = vst [vmem:[#allocation35_spill] sm:$0xff] %v4398_v18  ;;  %7745 = vst [vmem:[#allocation36_spill] sm:$0xff] %v4403_v19  ;;  %v4408_v20 = vld [vmem:[%s7707_s5 + $0xa0] sm:$0xff]  ;;  %v4413_v21 = vld [vmem:[%s7707_s5 + $0xa8] sm:$0xff] }
   0xe   :  { %7746 = vst [vmem:[#allocation37_spill] sm:$0xff] %v4408_v20  ;;  %7747 = vst [vmem:[#allocation38_spill] sm:$0xff] %v4413_v21  ;;  %v4418_v22 = vld [vmem:[%s7707_s5 + $0xb0] sm:$0xff]  ;;  %v4423_v23 = vld [vmem:[%s7707_s5 + $0xb8] sm:$0xff] }
   0xf   :  { %7748 = vst [vmem:[#allocation39_spill] sm:$0xff] %v4418_v22  ;;  %7749 = vst [vmem:[#allocation40_spill] sm:$0xff] %v4423_v23  ;;  %v4428_v24 = vld [vmem:[%s7707_s5 + $0xc0] sm:$0xff]  ;;  %v4433_v25 = vld [vmem:[%s7707_s5 + $0xc8] sm:$0xff] }
  0x10   :  { %7750 = vst [vmem:[#allocation41_spill] sm:$0xff] %v4428_v24  ;;  %7751 = vst [vmem:[#allocation42_spill] sm:$0xff] %v4433_v25  ;;  %v4438_v26 = vld [vmem:[%s7707_s5 + $0xd0] sm:$0xff]  ;;  %v4443_v27 = vld [vmem:[%s7707_s5 + $0xd8] sm:$0xff] }
  0x11   :  { %7752 = vst [vmem:[#allocation43_spill] sm:$0xff] %v4438_v26  ;;  %7753 = vst [vmem:[#allocation44_spill] sm:$0xff] %v4443_v27  ;;  %v4448_v28 = vld [vmem:[%s7707_s5 + $0xe0] sm:$0xff]  ;;  %v4453_v29 = vld [vmem:[%s7707_s5 + $0xe8] sm:$0xff] }
  0x12   :  { %7754 = vst [vmem:[#allocation45_spill] sm:$0xff] %v4448_v28  ;;  %7755 = vst [vmem:[#allocation46_spill] sm:$0xff] %v4453_v29  ;;  %v4458_v30 = vld [vmem:[%s7707_s5 + $0xf0] sm:$0xff]  ;;  %v4463_v31 = vld [vmem:[%s7707_s5 + $0xf8] sm:$0xff] }
  0x13   :  { %7756 = vst [vmem:[#allocation47_spill] sm:$0xff] %v4458_v30  ;;  %7757 = vst [vmem:[#allocation48_spill] sm:$0xff] %v4463_v31  ;;  %v4468_v32 = vld [vmem:[%s7707_s5 + $0x100] sm:$0xff]  ;;  %v4473_v33 = vld [vmem:[%s7707_s5 + $0x108] sm:$0xff] }
  0x14   :  { %7758 = vst [vmem:[#allocation49_spill] sm:$0xff] %v4468_v32  ;;  %7759 = vst [vmem:[#allocation50_spill] sm:$0xff] %v4473_v33  ;;  %v4478_v34 = vld [vmem:[%s7707_s5 + $0x110] sm:$0xff]  ;;  %v4483_v35 = vld [vmem:[%s7707_s5 + $0x118] sm:$0xff] }
  0x15   :  { %7760 = vst [vmem:[#allocation51_spill] sm:$0xff] %v4478_v34  ;;  %7761 = vst [vmem:[#allocation52_spill] sm:$0xff] %v4483_v35  ;;  %v4488_v36 = vld [vmem:[%s7707_s5 + $0x120] sm:$0xff]  ;;  %v4493_v37 = vld [vmem:[%s7707_s5 + $0x128] sm:$0xff] }
  0x16   :  { %7762 = vst [vmem:[#allocation53_spill] sm:$0xff] %v4488_v36  ;;  %7763 = vst [vmem:[#allocation54_spill] sm:$0xff] %v4493_v37  ;;  %v4498_v38 = vld [vmem:[%s7707_s5 + $0x130] sm:$0xff]  ;;  %v4503_v39 = vld [vmem:[%s7707_s5 + $0x138] sm:$0xff] }
  0x17   :  { %7764 = vst [vmem:[#allocation55_spill] sm:$0xff] %v4498_v38  ;;  %7765 = vst [vmem:[#allocation56_spill] sm:$0xff] %v4503_v39  ;;  %v4508_v40 = vld [vmem:[%s7707_s5 + $0x140] sm:$0xff]  ;;  %v4513_v41 = vld [vmem:[%s7707_s5 + $0x148] sm:$0xff] }
  0x18   :  { %7766 = vst [vmem:[#allocation57_spill] sm:$0xff] %v4508_v40  ;;  %7767 = vst [vmem:[#allocation58_spill] sm:$0xff] %v4513_v41  ;;  %v4518_v42 = vld [vmem:[%s7707_s5 + $0x150] sm:$0xff]  ;;  %v4523_v43 = vld [vmem:[%s7707_s5 + $0x158] sm:$0xff] }
  0x19   :  { %7768 = vst [vmem:[#allocation59_spill] sm:$0xff] %v4518_v42  ;;  %7769 = vst [vmem:[#allocation60_spill] sm:$0xff] %v4523_v43  ;;  %v4528_v44 = vld [vmem:[%s7707_s5 + $0x160] sm:$0xff]  ;;  %v4533_v45 = vld [vmem:[%s7707_s5 + $0x168] sm:$0xff] }
  0x1a   :  { %7770 = vst [vmem:[#allocation61_spill] sm:$0xff] %v4528_v44  ;;  %7771 = vst [vmem:[#allocation62_spill] sm:$0xff] %v4533_v45  ;;  %v4538_v46 = vld [vmem:[%s7707_s5 + $0x170] sm:$0xff]  ;;  %v4543_v47 = vld [vmem:[%s7707_s5 + $0x178] sm:$0xff] }
  0x1b   :  { %7772 = vst [vmem:[#allocation63_spill] sm:$0xff] %v4538_v46  ;;  %7773 = vst [vmem:[#allocation64_spill] sm:$0xff] %v4543_v47  ;;  %v4548_v48 = vld [vmem:[%s7707_s5 + $0x180] sm:$0xff]  ;;  %v4553_v49 = vld [vmem:[%s7707_s5 + $0x188] sm:$0xff] }
  0x1c   :  { %7774 = vst [vmem:[#allocation65_spill] sm:$0xff] %v4548_v48  ;;  %7775 = vst [vmem:[#allocation66_spill] sm:$0xff] %v4553_v49  ;;  %v4558_v50 = vld [vmem:[%s7707_s5 + $0x190] sm:$0xff]  ;;  %v4563_v51 = vld [vmem:[%s7707_s5 + $0x198] sm:$0xff] }
  0x1d   :  { %7776 = vst [vmem:[#allocation67_spill] sm:$0xff] %v4558_v50  ;;  %7777 = vst [vmem:[#allocation68_spill] sm:$0xff] %v4563_v51  ;;  %v4568_v52 = vld [vmem:[%s7707_s5 + $0x1a0] sm:$0xff]  ;;  %v4573_v53 = vld [vmem:[%s7707_s5 + $0x1a8] sm:$0xff] }
  0x1e   :  { %7778 = vst [vmem:[#allocation69_spill] sm:$0xff] %v4568_v52  ;;  %7779 = vst [vmem:[#allocation70_spill] sm:$0xff] %v4573_v53  ;;  %v4578_v54 = vld [vmem:[%s7707_s5 + $0x1b0] sm:$0xff]  ;;  %v4583_v55 = vld [vmem:[%s7707_s5 + $0x1b8] sm:$0xff] }
  0x1f   :  { %7780 = vst [vmem:[#allocation71_spill] sm:$0xff] %v4578_v54  ;;  %7781 = vst [vmem:[#allocation72_spill] sm:$0xff] %v4583_v55  ;;  %v4588_v56 = vld [vmem:[%s7707_s5 + $0x1c0] sm:$0xff]  ;;  %v4593_v57 = vld [vmem:[%s7707_s5 + $0x1c8] sm:$0xff] }
  0x20   :  { %7782 = vst [vmem:[#allocation73_spill] sm:$0xff] %v4588_v56  ;;  %7783 = vst [vmem:[#allocation74_spill] sm:$0xff] %v4593_v57  ;;  %v4598_v58 = vld [vmem:[%s7707_s5 + $0x1d0] sm:$0xff]  ;;  %v4603_v59 = vld [vmem:[%s7707_s5 + $0x1d8] sm:$0xff] }
  0x21   :  { %7784 = vst [vmem:[#allocation75_spill] sm:$0xff] %v4598_v58  ;;  %7785 = vst [vmem:[#allocation76_spill] sm:$0xff] %v4603_v59  ;;  %v4608_v60 = vld [vmem:[%s7707_s5 + $0x1e0] sm:$0xff]  ;;  %v4613_v61 = vld [vmem:[%s7707_s5 + $0x1e8] sm:$0xff] }
  0x22   :  { %7786 = vst [vmem:[#allocation77_spill] sm:$0xff] %v4608_v60  ;;  %7787 = vst [vmem:[#allocation78_spill] sm:$0xff] %v4613_v61  ;;  %v4618_v62 = vld [vmem:[%s7707_s5 + $0x1f0] sm:$0xff]  ;;  %v4623_v63 = vld [vmem:[%s7707_s5 + $0x1f8] sm:$0xff] }
  0x23   :  { %7788 = vst [vmem:[#allocation79_spill] sm:$0xff] %v4618_v62  ;;  %7789 = vst [vmem:[#allocation80_spill] sm:$0xff] %v4623_v63  ;;  %v4628_v58 = vld [vmem:[%s7707_s5 + $0x200] sm:$0xff]  ;;  %v4633_v60 = vld [vmem:[%s7707_s5 + $0x208] sm:$0xff] }
  0x24   :  { %v4638_v61 = vld [vmem:[%s7707_s5 + $0x210] sm:$0xff]  ;;  %v4643_v62 = vld [vmem:[%s7707_s5 + $0x218] sm:$0xff]  ;;  %v4648_v63 = vld [vmem:[%s7707_s5 + $0x220] sm:$0xff] }
  0x25   :  { %v4653_v56 = vld [vmem:[%s7707_s5 + $0x228] sm:$0xff]  ;;  %v4658_v59 = vld [vmem:[%s7707_s5 + $0x230] sm:$0xff]  ;;  %v4663_v57 = vld [vmem:[%s7707_s5 + $0x238] sm:$0xff] }
  0x26   :  { %v4668_v54 = vld [vmem:[%s7707_s5 + $0x240] sm:$0xff]  ;;  %v4673_v52 = vld [vmem:[%s7707_s5 + $0x248] sm:$0xff]  ;;  %v4678_v55 = vld [vmem:[%s7707_s5 + $0x250] sm:$0xff] }
  0x27   :  { %v4683_v53 = vld [vmem:[%s7707_s5 + $0x258] sm:$0xff]  ;;  %v4688_v50 = vld [vmem:[%s7707_s5 + $0x260] sm:$0xff]  ;;  %v4693_v48 = vld [vmem:[%s7707_s5 + $0x268] sm:$0xff] }
  0x28   :  { %v4698_v51 = vld [vmem:[%s7707_s5 + $0x270] sm:$0xff]  ;;  %v4703_v49 = vld [vmem:[%s7707_s5 + $0x278] sm:$0xff]  ;;  %v4708_v46 = vld [vmem:[%s7707_s5 + $0x280] sm:$0xff] }
  0x29   :  { %v4713_v44 = vld [vmem:[%s7707_s5 + $0x288] sm:$0xff]  ;;  %v4718_v47 = vld [vmem:[%s7707_s5 + $0x290] sm:$0xff]  ;;  %v4723_v45 = vld [vmem:[%s7707_s5 + $0x298] sm:$0xff] }
  0x2a   :  { %v4728_v42 = vld [vmem:[%s7707_s5 + $0x2a0] sm:$0xff]  ;;  %v4733_v40 = vld [vmem:[%s7707_s5 + $0x2a8] sm:$0xff]  ;;  %v4738_v43 = vld [vmem:[%s7707_s5 + $0x2b0] sm:$0xff] }
  0x2b   :  { %v4743_v41 = vld [vmem:[%s7707_s5 + $0x2b8] sm:$0xff]  ;;  %v4748_v38 = vld [vmem:[%s7707_s5 + $0x2c0] sm:$0xff]  ;;  %v4753_v36 = vld [vmem:[%s7707_s5 + $0x2c8] sm:$0xff] }
  0x2c   :  { %v4758_v39 = vld [vmem:[%s7707_s5 + $0x2d0] sm:$0xff]  ;;  %v4763_v37 = vld [vmem:[%s7707_s5 + $0x2d8] sm:$0xff]  ;;  %v4768_v34 = vld [vmem:[%s7707_s5 + $0x2e0] sm:$0xff] }
  0x2d   :  { %7790 = vst [vmem:[#allocation81_spill] sm:$0xff] %v4768_v34  ;;  %v4773_v32 = vld [vmem:[%s7707_s5 + $0x2e8] sm:$0xff]  ;;  %v4778_v35 = vld [vmem:[%s7707_s5 + $0x2f0] sm:$0xff]  ;;  %v4783_v33 = vld [vmem:[%s7707_s5 + $0x2f8] sm:$0xff] }
  0x2e   :  { %7791 = vst [vmem:[#allocation82_spill] sm:$0xff] %v4778_v35  ;;  %v4788_v30 = vld [vmem:[%s7707_s5 + $0x300] sm:$0xff]  ;;  %v4793_v28 = vld [vmem:[%s7707_s5 + $0x308] sm:$0xff]  ;;  %v4798_v31 = vld [vmem:[%s7707_s5 + $0x310] sm:$0xff] }
  0x2f   :  { %7792 = vst [vmem:[#allocation83_spill] sm:$0xff] %v4788_v30  ;;  %7793 = vst [vmem:[#allocation84_spill] sm:$0xff] %v4793_v28  ;;  %v4803_v29 = vld [vmem:[%s7707_s5 + $0x318] sm:$0xff]  ;;  %v4808_v26 = vld [vmem:[%s7707_s5 + $0x320] sm:$0xff] }
  0x30   :  { %7794 = vst [vmem:[#allocation85_spill] sm:$0xff] %v4798_v31  ;;  %7795 = vst [vmem:[#allocation86_spill] sm:$0xff] %v4803_v29  ;;  %v4813_v24 = vld [vmem:[%s7707_s5 + $0x328] sm:$0xff]  ;;  %v4818_v27 = vld [vmem:[%s7707_s5 + $0x330] sm:$0xff] }
  0x31   :  { %7796 = vst [vmem:[#allocation87_spill] sm:$0xff] %v4808_v26  ;;  %7797 = vst [vmem:[#allocation88_spill] sm:$0xff] %v4813_v24  ;;  %v4823_v25 = vld [vmem:[%s7707_s5 + $0x338] sm:$0xff]  ;;  %v4828_v22 = vld [vmem:[%s7707_s5 + $0x340] sm:$0xff] }
  0x32   :  { %7798 = vst [vmem:[#allocation89_spill] sm:$0xff] %v4818_v27  ;;  %7799 = vst [vmem:[#allocation90_spill] sm:$0xff] %v4823_v25  ;;  %v4833_v20 = vld [vmem:[%s7707_s5 + $0x348] sm:$0xff]  ;;  %v4838_v23 = vld [vmem:[%s7707_s5 + $0x350] sm:$0xff] }
  0x33   :  { %7800 = vst [vmem:[#allocation91_spill] sm:$0xff] %v4828_v22  ;;  %7801 = vst [vmem:[#allocation92_spill] sm:$0xff] %v4833_v20  ;;  %v4843_v21 = vld [vmem:[%s7707_s5 + $0x358] sm:$0xff]  ;;  %v4848_v18 = vld [vmem:[%s7707_s5 + $0x360] sm:$0xff] }
  0x34   :  { %7802 = vst [vmem:[#allocation93_spill] sm:$0xff] %v4838_v23  ;;  %7803 = vst [vmem:[#allocation94_spill] sm:$0xff] %v4843_v21  ;;  %v4853_v16 = vld [vmem:[%s7707_s5 + $0x368] sm:$0xff]  ;;  %v4858_v19 = vld [vmem:[%s7707_s5 + $0x370] sm:$0xff] }
  0x35   :  { %7804 = vst [vmem:[#allocation95_spill] sm:$0xff] %v4848_v18  ;;  %7805 = vst [vmem:[#allocation96_spill] sm:$0xff] %v4853_v16  ;;  %v4863_v17 = vld [vmem:[%s7707_s5 + $0x378] sm:$0xff]  ;;  %v4868_v14 = vld [vmem:[%s7707_s5 + $0x380] sm:$0xff] }
  0x36   :  { %7806 = vst [vmem:[#allocation97_spill] sm:$0xff] %v4858_v19  ;;  %7807 = vst [vmem:[#allocation98_spill] sm:$0xff] %v4863_v17  ;;  %v4873_v12 = vld [vmem:[%s7707_s5 + $0x388] sm:$0xff]  ;;  %v4878_v15 = vld [vmem:[%s7707_s5 + $0x390] sm:$0xff] }
  0x37   :  { %7808 = vst [vmem:[#allocation99_spill] sm:$0xff] %v4868_v14  ;;  %7809 = vst [vmem:[#allocation100_spill] sm:$0xff] %v4873_v12  ;;  %v4883_v13 = vld [vmem:[%s7707_s5 + $0x398] sm:$0xff]  ;;  %v4888_v10 = vld [vmem:[%s7707_s5 + $0x3a0] sm:$0xff] }
  0x38   :  { %7810 = vst [vmem:[#allocation101_spill] sm:$0xff] %v4878_v15  ;;  %7811 = vst [vmem:[#allocation102_spill] sm:$0xff] %v4883_v13  ;;  %v4893_v8 = vld [vmem:[%s7707_s5 + $0x3a8] sm:$0xff]  ;;  %v4898_v11 = vld [vmem:[%s7707_s5 + $0x3b0] sm:$0xff] }
  0x39   :  { %7812 = vst [vmem:[#allocation103_spill] sm:$0xff] %v4888_v10  ;;  %7813 = vst [vmem:[#allocation104_spill] sm:$0xff] %v4893_v8  ;;  %v4903_v9 = vld [vmem:[%s7707_s5 + $0x3b8] sm:$0xff]  ;;  %v4908_v6 = vld [vmem:[%s7707_s5 + $0x3c0] sm:$0xff] }
  0x3a   :  { %7814 = vst [vmem:[#allocation105_spill] sm:$0xff] %v4898_v11  ;;  %7815 = vst [vmem:[#allocation106_spill] sm:$0xff] %v4903_v9  ;;  %v4913_v4 = vld [vmem:[%s7707_s5 + $0x3c8] sm:$0xff]  ;;  %v4918_v7 = vld [vmem:[%s7707_s5 + $0x3d0] sm:$0xff] }
  0x3b   :  { %7816 = vst [vmem:[#allocation107_spill] sm:$0xff] %v4908_v6  ;;  %7817 = vst [vmem:[#allocation108_spill] sm:$0xff] %v4913_v4  ;;  %v4923_v5 = vld [vmem:[%s7707_s5 + $0x3d8] sm:$0xff]  ;;  %v4928_v2 = vld [vmem:[%s7707_s5 + $0x3e0] sm:$0xff] }
  0x3c   :  { %7818 = vst [vmem:[#allocation109_spill] sm:$0xff] %v4918_v7  ;;  %7819 = vst [vmem:[#allocation110_spill] sm:$0xff] %v4923_v5  ;;  %v4933_v0 = vld [vmem:[%s7707_s5 + $0x3e8] sm:$0xff]  ;;  %v4938_v3 = vld [vmem:[%s7707_s5 + $0x3f0] sm:$0xff] }
  0x3d   :  { %7820 = vst [vmem:[#allocation111_spill] sm:$0xff] %v4928_v2  ;;  %7821 = vst [vmem:[#allocation112_spill] sm:$0xff] %v4933_v0  ;;  %v4943_v1 = vld [vmem:[%s7707_s5 + $0x3f8] sm:$0xff]  ;;  %v4948_v7 = vld [vmem:[%s7707_s5 + $0x400] sm:$0xff] }
  0x3e   :  { %7822 = vst [vmem:[#allocation113_spill] sm:$0xff] %v4938_v3  ;;  %7823 = vst [vmem:[#allocation114_spill] sm:$0xff] %v4943_v1  ;;  %v4953_v2 = vld [vmem:[%s7707_s5 + $0x408] sm:$0xff]  ;;  %v4958_v0 = vld [vmem:[%s7707_s5 + $0x410] sm:$0xff] }
  0x3f   :  { %7824 = vst [vmem:[#allocation115_spill] sm:$0xff] %v4948_v7  ;;  %7825 = vst [vmem:[#allocation116_spill] sm:$0xff] %v4953_v2  ;;  %v4963_v3 = vld [vmem:[%s7707_s5 + $0x418] sm:$0xff]  ;;  %v4968_v1 = vld [vmem:[%s7707_s5 + $0x420] sm:$0xff] }
  0x40   :  { %7826 = vst [vmem:[#allocation117_spill] sm:$0xff] %v4958_v0  ;;  %7827 = vst [vmem:[#allocation118_spill] sm:$0xff] %v4963_v3  ;;  %v4973_v7 = vld [vmem:[%s7707_s5 + $0x428] sm:$0xff]  ;;  %v4978_v2 = vld [vmem:[%s7707_s5 + $0x430] sm:$0xff] }
  0x41   :  { %7828 = vst [vmem:[#allocation119_spill] sm:$0xff] %v4968_v1  ;;  %7829 = vst [vmem:[#allocation120_spill] sm:$0xff] %v4973_v7  ;;  %v4983_v0 = vld [vmem:[%s7707_s5 + $0x438] sm:$0xff]  ;;  %v4988_v3 = vld [vmem:[%s7707_s5 + $0x440] sm:$0xff] }
  0x42   :  { %7830 = vst [vmem:[#allocation121_spill] sm:$0xff] %v4978_v2  ;;  %7831 = vst [vmem:[#allocation122_spill] sm:$0xff] %v4983_v0  ;;  %v4993_v1 = vld [vmem:[%s7707_s5 + $0x448] sm:$0xff]  ;;  %v4998_v7 = vld [vmem:[%s7707_s5 + $0x450] sm:$0xff] }
  0x43   :  { %7832 = vst [vmem:[#allocation123_spill] sm:$0xff] %v4988_v3  ;;  %7833 = vst [vmem:[#allocation124_spill] sm:$0xff] %v4993_v1  ;;  %v5003_v2 = vld [vmem:[%s7707_s5 + $0x458] sm:$0xff]  ;;  %v5008_v0 = vld [vmem:[%s7707_s5 + $0x460] sm:$0xff] }
  0x44   :  { %7834 = vst [vmem:[#allocation125_spill] sm:$0xff] %v4998_v7  ;;  %7835 = vst [vmem:[#allocation126_spill] sm:$0xff] %v5003_v2  ;;  %v5013_v3 = vld [vmem:[%s7707_s5 + $0x468] sm:$0xff]  ;;  %v5018_v1 = vld [vmem:[%s7707_s5 + $0x470] sm:$0xff] }
  0x45   :  { %7836 = vst [vmem:[#allocation127_spill] sm:$0xff] %v5008_v0  ;;  %7837 = vst [vmem:[#allocation128_spill] sm:$0xff] %v5013_v3  ;;  %v5023_v7 = vld [vmem:[%s7707_s5 + $0x478] sm:$0xff]  ;;  %v5028_v2 = vld [vmem:[%s7707_s5 + $0x480] sm:$0xff] }
  0x46   :  { %7838 = vst [vmem:[#allocation129_spill] sm:$0xff] %v5018_v1  ;;  %7839 = vst [vmem:[#allocation130_spill] sm:$0xff] %v5023_v7  ;;  %v5033_v0 = vld [vmem:[%s7707_s5 + $0x488] sm:$0xff]  ;;  %v5038_v3 = vld [vmem:[%s7707_s5 + $0x490] sm:$0xff] }
  0x47   :  { %7840 = vst [vmem:[#allocation131_spill] sm:$0xff] %v5028_v2  ;;  %7841 = vst [vmem:[#allocation132_spill] sm:$0xff] %v5033_v0  ;;  %v5043_v1 = vld [vmem:[%s7707_s5 + $0x498] sm:$0xff]  ;;  %v5048_v7 = vld [vmem:[%s7707_s5 + $0x4a0] sm:$0xff] }
  0x48   :  { %7842 = vst [vmem:[#allocation133_spill] sm:$0xff] %v5038_v3  ;;  %7843 = vst [vmem:[#allocation134_spill] sm:$0xff] %v5043_v1  ;;  %v5053_v2 = vld [vmem:[%s7707_s5 + $0x4a8] sm:$0xff]  ;;  %v5058_v0 = vld [vmem:[%s7707_s5 + $0x4b0] sm:$0xff] }
  0x49   :  { %7844 = vst [vmem:[#allocation135_spill] sm:$0xff] %v5048_v7  ;;  %7845 = vst [vmem:[#allocation136_spill] sm:$0xff] %v5053_v2  ;;  %v5063_v3 = vld [vmem:[%s7707_s5 + $0x4b8] sm:$0xff]  ;;  %v5068_v1 = vld [vmem:[%s7707_s5 + $0x4c0] sm:$0xff] }
  0x4a   :  { %7846 = vst [vmem:[#allocation137_spill] sm:$0xff] %v5058_v0  ;;  %7847 = vst [vmem:[#allocation138_spill] sm:$0xff] %v5063_v3  ;;  %v5073_v7 = vld [vmem:[%s7707_s5 + $0x4c8] sm:$0xff]  ;;  %v5078_v2 = vld [vmem:[%s7707_s5 + $0x4d0] sm:$0xff] }
  0x4b   :  { %7848 = vst [vmem:[#allocation139_spill] sm:$0xff] %v5068_v1  ;;  %7849 = vst [vmem:[#allocation140_spill] sm:$0xff] %v5073_v7  ;;  %v5083_v0 = vld [vmem:[%s7707_s5 + $0x4d8] sm:$0xff]  ;;  %v5088_v3 = vld [vmem:[%s7707_s5 + $0x4e0] sm:$0xff] }
  0x4c   :  { %7850 = vst [vmem:[#allocation141_spill] sm:$0xff] %v5078_v2  ;;  %7851 = vst [vmem:[#allocation142_spill] sm:$0xff] %v5083_v0  ;;  %v5093_v1 = vld [vmem:[%s7707_s5 + $0x4e8] sm:$0xff]  ;;  %v5098_v7 = vld [vmem:[%s7707_s5 + $0x4f0] sm:$0xff] }
  0x4d   :  { %7852 = vst [vmem:[#allocation143_spill] sm:$0xff] %v5088_v3  ;;  %7853 = vst [vmem:[#allocation144_spill] sm:$0xff] %v5093_v1  ;;  %v5103_v2 = vld [vmem:[%s7707_s5 + $0x4f8] sm:$0xff]  ;;  %v5108_v0 = vld [vmem:[%s7707_s5 + $0x500] sm:$0xff] }
  0x4e   :  { %7854 = vst [vmem:[#allocation145_spill] sm:$0xff] %v5098_v7  ;;  %7855 = vst [vmem:[#allocation146_spill] sm:$0xff] %v5103_v2  ;;  %v5113_v3 = vld [vmem:[%s7707_s5 + $0x508] sm:$0xff]  ;;  %v5118_v1 = vld [vmem:[%s7707_s5 + $0x510] sm:$0xff] }
  0x4f   :  { %7856 = vst [vmem:[#allocation147_spill] sm:$0xff] %v5108_v0  ;;  %7857 = vst [vmem:[#allocation148_spill] sm:$0xff] %v5113_v3  ;;  %v5123_v7 = vld [vmem:[%s7707_s5 + $0x518] sm:$0xff]  ;;  %v5128_v2 = vld [vmem:[%s7707_s5 + $0x520] sm:$0xff] }
  0x50   :  { %7858 = vst [vmem:[#allocation149_spill] sm:$0xff] %v5118_v1  ;;  %7859 = vst [vmem:[#allocation150_spill] sm:$0xff] %v5123_v7  ;;  %v5133_v0 = vld [vmem:[%s7707_s5 + $0x528] sm:$0xff]  ;;  %v5138_v3 = vld [vmem:[%s7707_s5 + $0x530] sm:$0xff] }
  0x51   :  { %7860 = vst [vmem:[#allocation151_spill] sm:$0xff] %v5128_v2  ;;  %7861 = vst [vmem:[#allocation152_spill] sm:$0xff] %v5133_v0  ;;  %v5143_v1 = vld [vmem:[%s7707_s5 + $0x538] sm:$0xff]  ;;  %v5148_v7 = vld [vmem:[%s7707_s5 + $0x540] sm:$0xff] }
  0x52   :  { %7862 = vst [vmem:[#allocation153_spill] sm:$0xff] %v5138_v3  ;;  %7863 = vst [vmem:[#allocation154_spill] sm:$0xff] %v5143_v1  ;;  %v5153_v2 = vld [vmem:[%s7707_s5 + $0x548] sm:$0xff]  ;;  %v5158_v0 = vld [vmem:[%s7707_s5 + $0x550] sm:$0xff] }
  0x53   :  { %7864 = vst [vmem:[#allocation155_spill] sm:$0xff] %v5148_v7  ;;  %7865 = vst [vmem:[#allocation156_spill] sm:$0xff] %v5153_v2  ;;  %v5163_v3 = vld [vmem:[%s7707_s5 + $0x558] sm:$0xff]  ;;  %v5168_v1 = vld [vmem:[%s7707_s5 + $0x560] sm:$0xff] }
  0x54   :  { %7866 = vst [vmem:[#allocation157_spill] sm:$0xff] %v5158_v0  ;;  %7867 = vst [vmem:[#allocation158_spill] sm:$0xff] %v5163_v3  ;;  %v5173_v7 = vld [vmem:[%s7707_s5 + $0x568] sm:$0xff]  ;;  %v5178_v2 = vld [vmem:[%s7707_s5 + $0x570] sm:$0xff] }
  0x55   :  { %7868 = vst [vmem:[#allocation159_spill] sm:$0xff] %v5168_v1  ;;  %7869 = vst [vmem:[#allocation160_spill] sm:$0xff] %v5173_v7  ;;  %v5183_v0 = vld [vmem:[%s7707_s5 + $0x578] sm:$0xff]  ;;  %v5188_v3 = vld [vmem:[%s7707_s5 + $0x580] sm:$0xff] }
  0x56   :  { %7870 = vst [vmem:[#allocation161_spill] sm:$0xff] %v5178_v2  ;;  %7871 = vst [vmem:[#allocation162_spill] sm:$0xff] %v5183_v0  ;;  %v5193_v1 = vld [vmem:[%s7707_s5 + $0x588] sm:$0xff]  ;;  %v5198_v7 = vld [vmem:[%s7707_s5 + $0x590] sm:$0xff] }
  0x57   :  { %7872 = vst [vmem:[#allocation163_spill] sm:$0xff] %v5188_v3  ;;  %7873 = vst [vmem:[#allocation164_spill] sm:$0xff] %v5193_v1  ;;  %v5203_v2 = vld [vmem:[%s7707_s5 + $0x598] sm:$0xff]  ;;  %v5208_v0 = vld [vmem:[%s7707_s5 + $0x5a0] sm:$0xff] }
  0x58   :  { %7874 = vst [vmem:[#allocation165_spill] sm:$0xff] %v5198_v7  ;;  %7875 = vst [vmem:[#allocation166_spill] sm:$0xff] %v5203_v2  ;;  %v5213_v3 = vld [vmem:[%s7707_s5 + $0x5a8] sm:$0xff]  ;;  %v5218_v1 = vld [vmem:[%s7707_s5 + $0x5b0] sm:$0xff] }
  0x59   :  { %7876 = vst [vmem:[#allocation167_spill] sm:$0xff] %v5208_v0  ;;  %7877 = vst [vmem:[#allocation168_spill] sm:$0xff] %v5213_v3  ;;  %v5223_v7 = vld [vmem:[%s7707_s5 + $0x5b8] sm:$0xff]  ;;  %v5228_v2 = vld [vmem:[%s7707_s5 + $0x5c0] sm:$0xff] }
  0x5a   :  { %7878 = vst [vmem:[#allocation169_spill] sm:$0xff] %v5218_v1  ;;  %7879 = vst [vmem:[#allocation170_spill] sm:$0xff] %v5223_v7  ;;  %v5233_v0 = vld [vmem:[%s7707_s5 + $0x5c8] sm:$0xff]  ;;  %v5238_v3 = vld [vmem:[%s7707_s5 + $0x5d0] sm:$0xff] }
  0x5b   :  { %7880 = vst [vmem:[#allocation171_spill] sm:$0xff] %v5228_v2  ;;  %7881 = vst [vmem:[#allocation172_spill] sm:$0xff] %v5233_v0  ;;  %v5243_v1 = vld [vmem:[%s7707_s5 + $0x5d8] sm:$0xff]  ;;  %v5248_v7 = vld [vmem:[%s7707_s5 + $0x5e0] sm:$0xff] }
  0x5c   :  { %7882 = vst [vmem:[#allocation173_spill] sm:$0xff] %v5238_v3  ;;  %7883 = vst [vmem:[#allocation174_spill] sm:$0xff] %v5243_v1  ;;  %v5253_v2 = vld [vmem:[%s7707_s5 + $0x5e8] sm:$0xff]  ;;  %v5258_v0 = vld [vmem:[%s7707_s5 + $0x5f0] sm:$0xff] }
  0x5d   :  { %7884 = vst [vmem:[#allocation175_spill] sm:$0xff] %v5248_v7  ;;  %7885 = vst [vmem:[#allocation176_spill] sm:$0xff] %v5253_v2  ;;  %v5263_v3 = vld [vmem:[%s7707_s5 + $0x5f8] sm:$0xff]  ;;  %v5268_v1 = vld [vmem:[%s7707_s5 + $0x600] sm:$0xff] }
  0x5e   :  { %7886 = vst [vmem:[#allocation177_spill] sm:$0xff] %v5258_v0  ;;  %7887 = vst [vmem:[#allocation178_spill] sm:$0xff] %v5263_v3  ;;  %v5273_v7 = vld [vmem:[%s7707_s5 + $0x608] sm:$0xff]  ;;  %v5278_v2 = vld [vmem:[%s7707_s5 + $0x610] sm:$0xff] }
  0x5f   :  { %7888 = vst [vmem:[#allocation179_spill] sm:$0xff] %v5268_v1  ;;  %7889 = vst [vmem:[#allocation180_spill] sm:$0xff] %v5273_v7  ;;  %v5283_v0 = vld [vmem:[%s7707_s5 + $0x618] sm:$0xff]  ;;  %v5288_v3 = vld [vmem:[%s7707_s5 + $0x620] sm:$0xff] }
  0x60   :  { %7890 = vst [vmem:[#allocation181_spill] sm:$0xff] %v5278_v2  ;;  %7891 = vst [vmem:[#allocation182_spill] sm:$0xff] %v5283_v0  ;;  %v5293_v1 = vld [vmem:[%s7707_s5 + $0x628] sm:$0xff]  ;;  %v5298_v7 = vld [vmem:[%s7707_s5 + $0x630] sm:$0xff] }
  0x61   :  { %7892 = vst [vmem:[#allocation183_spill] sm:$0xff] %v5288_v3  ;;  %7893 = vst [vmem:[#allocation184_spill] sm:$0xff] %v5293_v1  ;;  %v5303_v2 = vld [vmem:[%s7707_s5 + $0x638] sm:$0xff]  ;;  %v5308_v0 = vld [vmem:[%s7707_s5 + $0x640] sm:$0xff] }
  0x62   :  { %7894 = vst [vmem:[#allocation185_spill] sm:$0xff] %v5298_v7  ;;  %7895 = vst [vmem:[#allocation186_spill] sm:$0xff] %v5303_v2  ;;  %v5313_v3 = vld [vmem:[%s7707_s5 + $0x648] sm:$0xff]  ;;  %v5318_v1 = vld [vmem:[%s7707_s5 + $0x650] sm:$0xff] }
  0x63   :  { %7896 = vst [vmem:[#allocation187_spill] sm:$0xff] %v5308_v0  ;;  %7897 = vst [vmem:[#allocation188_spill] sm:$0xff] %v5313_v3  ;;  %v5323_v7 = vld [vmem:[%s7707_s5 + $0x658] sm:$0xff]  ;;  %v5328_v2 = vld [vmem:[%s7707_s5 + $0x660] sm:$0xff] }
  0x64   :  { %7898 = vst [vmem:[#allocation189_spill] sm:$0xff] %v5318_v1  ;;  %7899 = vst [vmem:[#allocation190_spill] sm:$0xff] %v5323_v7  ;;  %v5333_v0 = vld [vmem:[%s7707_s5 + $0x668] sm:$0xff]  ;;  %v5338_v3 = vld [vmem:[%s7707_s5 + $0x670] sm:$0xff] }
  0x65   :  { %7900 = vst [vmem:[#allocation191_spill] sm:$0xff] %v5328_v2  ;;  %7901 = vst [vmem:[#allocation192_spill] sm:$0xff] %v5333_v0  ;;  %v5343_v1 = vld [vmem:[%s7707_s5 + $0x678] sm:$0xff]  ;;  %v5348_v7 = vld [vmem:[%s7707_s5 + $0x680] sm:$0xff] }
  0x66   :  { %7902 = vst [vmem:[#allocation193_spill] sm:$0xff] %v5338_v3  ;;  %7903 = vst [vmem:[#allocation194_spill] sm:$0xff] %v5343_v1  ;;  %v5353_v2 = vld [vmem:[%s7707_s5 + $0x688] sm:$0xff]  ;;  %v5358_v0 = vld [vmem:[%s7707_s5 + $0x690] sm:$0xff] }
  0x67   :  { %7904 = vst [vmem:[#allocation195_spill] sm:$0xff] %v5348_v7  ;;  %7905 = vst [vmem:[#allocation196_spill] sm:$0xff] %v5353_v2  ;;  %v5363_v3 = vld [vmem:[%s7707_s5 + $0x698] sm:$0xff]  ;;  %v5368_v1 = vld [vmem:[%s7707_s5 + $0x6a0] sm:$0xff] }
  0x68   :  { %7906 = vst [vmem:[#allocation197_spill] sm:$0xff] %v5358_v0  ;;  %7907 = vst [vmem:[#allocation198_spill] sm:$0xff] %v5363_v3  ;;  %v5373_v7 = vld [vmem:[%s7707_s5 + $0x6a8] sm:$0xff]  ;;  %v5378_v2 = vld [vmem:[%s7707_s5 + $0x6b0] sm:$0xff] }
  0x69   :  { %7908 = vst [vmem:[#allocation199_spill] sm:$0xff] %v5368_v1  ;;  %7909 = vst [vmem:[#allocation200_spill] sm:$0xff] %v5373_v7  ;;  %v5383_v0 = vld [vmem:[%s7707_s5 + $0x6b8] sm:$0xff]  ;;  %v5388_v3 = vld [vmem:[%s7707_s5 + $0x6c0] sm:$0xff] }
  0x6a   :  { %7910 = vst [vmem:[#allocation201_spill] sm:$0xff] %v5378_v2  ;;  %7911 = vst [vmem:[#allocation202_spill] sm:$0xff] %v5383_v0  ;;  %v5393_v1 = vld [vmem:[%s7707_s5 + $0x6c8] sm:$0xff]  ;;  %v5398_v7 = vld [vmem:[%s7707_s5 + $0x6d0] sm:$0xff] }
  0x6b   :  { %7912 = vst [vmem:[#allocation203_spill] sm:$0xff] %v5388_v3  ;;  %7913 = vst [vmem:[#allocation204_spill] sm:$0xff] %v5393_v1  ;;  %v5403_v2 = vld [vmem:[%s7707_s5 + $0x6d8] sm:$0xff]  ;;  %v5408_v0 = vld [vmem:[%s7707_s5 + $0x6e0] sm:$0xff] }
  0x6c   :  { %7914 = vst [vmem:[#allocation205_spill] sm:$0xff] %v5398_v7  ;;  %7915 = vst [vmem:[#allocation206_spill] sm:$0xff] %v5403_v2  ;;  %v5413_v3 = vld [vmem:[%s7707_s5 + $0x6e8] sm:$0xff]  ;;  %v5418_v1 = vld [vmem:[%s7707_s5 + $0x6f0] sm:$0xff] }
  0x6d   :  { %7916 = vst [vmem:[#allocation207_spill] sm:$0xff] %v5408_v0  ;;  %7917 = vst [vmem:[#allocation208_spill] sm:$0xff] %v5413_v3  ;;  %v5423_v7 = vld [vmem:[%s7707_s5 + $0x6f8] sm:$0xff]  ;;  %v5428_v2 = vld [vmem:[%s7707_s5 + $0x700] sm:$0xff] }
  0x6e   :  { %7918 = vst [vmem:[#allocation209_spill] sm:$0xff] %v5418_v1  ;;  %7919 = vst [vmem:[#allocation210_spill] sm:$0xff] %v5423_v7  ;;  %v5433_v0 = vld [vmem:[%s7707_s5 + $0x708] sm:$0xff]  ;;  %v5438_v3 = vld [vmem:[%s7707_s5 + $0x710] sm:$0xff] }
  0x6f   :  { %7920 = vst [vmem:[#allocation211_spill] sm:$0xff] %v5428_v2  ;;  %7921 = vst [vmem:[#allocation212_spill] sm:$0xff] %v5433_v0  ;;  %v5443_v1 = vld [vmem:[%s7707_s5 + $0x718] sm:$0xff]  ;;  %v5448_v7 = vld [vmem:[%s7707_s5 + $0x720] sm:$0xff] }
  0x70   :  { %7922 = vst [vmem:[#allocation213_spill] sm:$0xff] %v5438_v3  ;;  %7923 = vst [vmem:[#allocation214_spill] sm:$0xff] %v5443_v1  ;;  %v5453_v2 = vld [vmem:[%s7707_s5 + $0x728] sm:$0xff]  ;;  %v5458_v0 = vld [vmem:[%s7707_s5 + $0x730] sm:$0xff] }
  0x71   :  { %7924 = vst [vmem:[#allocation215_spill] sm:$0xff] %v5448_v7  ;;  %7925 = vst [vmem:[#allocation216_spill] sm:$0xff] %v5453_v2  ;;  %v5463_v3 = vld [vmem:[%s7707_s5 + $0x738] sm:$0xff]  ;;  %v5468_v1 = vld [vmem:[%s7707_s5 + $0x740] sm:$0xff] }
  0x72   :  { %7926 = vst [vmem:[#allocation217_spill] sm:$0xff] %v5458_v0  ;;  %7927 = vst [vmem:[#allocation218_spill] sm:$0xff] %v5463_v3  ;;  %v5473_v7 = vld [vmem:[%s7707_s5 + $0x748] sm:$0xff]  ;;  %v5478_v2 = vld [vmem:[%s7707_s5 + $0x750] sm:$0xff] }
  0x73   :  { %7928 = vst [vmem:[#allocation219_spill] sm:$0xff] %v5468_v1  ;;  %7929 = vst [vmem:[#allocation220_spill] sm:$0xff] %v5473_v7  ;;  %v5483_v0 = vld [vmem:[%s7707_s5 + $0x758] sm:$0xff]  ;;  %v5488_v3 = vld [vmem:[%s7707_s5 + $0x760] sm:$0xff] }
  0x74   :  { %7930 = vst [vmem:[#allocation221_spill] sm:$0xff] %v5478_v2  ;;  %7931 = vst [vmem:[#allocation222_spill] sm:$0xff] %v5483_v0  ;;  %v5493_v1 = vld [vmem:[%s7707_s5 + $0x768] sm:$0xff]  ;;  %v5498_v7 = vld [vmem:[%s7707_s5 + $0x770] sm:$0xff] }
  0x75   :  { %7932 = vst [vmem:[#allocation223_spill] sm:$0xff] %v5488_v3  ;;  %7933 = vst [vmem:[#allocation224_spill] sm:$0xff] %v5493_v1  ;;  %v5503_v2 = vld [vmem:[%s7707_s5 + $0x778] sm:$0xff]  ;;  %v5508_v0 = vld [vmem:[%s7707_s5 + $0x780] sm:$0xff] }
  0x76   :  { %7934 = vst [vmem:[#allocation225_spill] sm:$0xff] %v5498_v7  ;;  %7935 = vst [vmem:[#allocation226_spill] sm:$0xff] %v5503_v2  ;;  %v5513_v3 = vld [vmem:[%s7707_s5 + $0x788] sm:$0xff]  ;;  %v5518_v1 = vld [vmem:[%s7707_s5 + $0x790] sm:$0xff] }
  0x77   :  { %7936 = vst [vmem:[#allocation227_spill] sm:$0xff] %v5508_v0  ;;  %7937 = vst [vmem:[#allocation228_spill] sm:$0xff] %v5513_v3  ;;  %v5523_v7 = vld [vmem:[%s7707_s5 + $0x798] sm:$0xff]  ;;  %v5528_v2 = vld [vmem:[%s7707_s5 + $0x7a0] sm:$0xff] }
  0x78   :  { %7938 = vst [vmem:[#allocation229_spill] sm:$0xff] %v5518_v1  ;;  %7939 = vst [vmem:[#allocation230_spill] sm:$0xff] %v5523_v7  ;;  %v5533_v0 = vld [vmem:[%s7707_s5 + $0x7a8] sm:$0xff]  ;;  %v5538_v3 = vld [vmem:[%s7707_s5 + $0x7b0] sm:$0xff] }
  0x79   :  { %7940 = vst [vmem:[#allocation231_spill] sm:$0xff] %v5528_v2  ;;  %7941 = vst [vmem:[#allocation232_spill] sm:$0xff] %v5533_v0  ;;  %v5543_v1 = vld [vmem:[%s7707_s5 + $0x7b8] sm:$0xff]  ;;  %v5548_v7 = vld [vmem:[%s7707_s5 + $0x7c0] sm:$0xff] }
  0x7a   :  { %7942 = vst [vmem:[#allocation233_spill] sm:$0xff] %v5538_v3  ;;  %7943 = vst [vmem:[#allocation234_spill] sm:$0xff] %v5543_v1  ;;  %v5553_v2 = vld [vmem:[%s7707_s5 + $0x7c8] sm:$0xff]  ;;  %v5558_v0 = vld [vmem:[%s7707_s5 + $0x7d0] sm:$0xff] }
  0x7b   :  { %7944 = vst [vmem:[#allocation235_spill] sm:$0xff] %v5548_v7  ;;  %7945 = vst [vmem:[#allocation236_spill] sm:$0xff] %v5553_v2  ;;  %v5563_v3 = vld [vmem:[%s7707_s5 + $0x7d8] sm:$0xff]  ;;  %v5568_v1 = vld [vmem:[%s7707_s5 + $0x7e0] sm:$0xff] }
  0x7c   :  { %7946 = vst [vmem:[#allocation237_spill] sm:$0xff] %v5558_v0  ;;  %7947 = vst [vmem:[#allocation238_spill] sm:$0xff] %v5563_v3  ;;  %v5573_v7 = vld [vmem:[%s7707_s5 + $0x7e8] sm:$0xff]  ;;  %v5578_v2 = vld [vmem:[%s7707_s5 + $0x7f0] sm:$0xff] }
  0x7d   :  { %7948 = vst [vmem:[#allocation239_spill] sm:$0xff] %v5568_v1  ;;  %7949 = vst [vmem:[#allocation240_spill] sm:$0xff] %v5573_v7  ;;  %v5583_v0 = vld [vmem:[%s7707_s5 + $0x7f8] sm:$0xff] }
  0x7e   :  { %7950 = vst [vmem:[#allocation241_spill] sm:$0xff] %v5578_v2  ;;  %7951 = vst [vmem:[#allocation242_spill] sm:$0xff] %v5583_v0 }
  0x7f   :  { %602 = vsyncadd [#allocation7], 32768  ;;  %v5588_v1 = vld [vmem:[%s7711_s9] sm:$0xff]  ;;  %v5593_v7 = vld [vmem:[%s7711_s9 + $0x8] sm:$0xff] }
  0x80   :  { %7952 = vst [vmem:[#allocation243_spill] sm:$0xff] %v5588_v1  ;;  %7953 = vst [vmem:[#allocation244_spill] sm:$0xff] %v5593_v7  ;;  %v5598_v2 = vld [vmem:[%s7711_s9 + $0x10] sm:$0xff]  ;;  %v5603_v0 = vld [vmem:[%s7711_s9 + $0x18] sm:$0xff] }
  0x81   :  { %7954 = vst [vmem:[#allocation245_spill] sm:$0xff] %v5598_v2  ;;  %7955 = vst [vmem:[#allocation246_spill] sm:$0xff] %v5603_v0  ;;  %v5608_v3 = vld [vmem:[%s7711_s9 + $0x20] sm:$0xff]  ;;  %v5613_v1 = vld [vmem:[%s7711_s9 + $0x28] sm:$0xff] }
  0x82   :  { %7956 = vst [vmem:[#allocation247_spill] sm:$0xff] %v5608_v3  ;;  %7957 = vst [vmem:[#allocation248_spill] sm:$0xff] %v5613_v1  ;;  %v5618_v7 = vld [vmem:[%s7711_s9 + $0x30] sm:$0xff]  ;;  %v5623_v2 = vld [vmem:[%s7711_s9 + $0x38] sm:$0xff] }
  0x83   :  { %7958 = vst [vmem:[#allocation249_spill] sm:$0xff] %v5618_v7  ;;  %7959 = vst [vmem:[#allocation250_spill] sm:$0xff] %v5623_v2  ;;  %v5628_v0 = vld [vmem:[%s7711_s9 + $0x40] sm:$0xff]  ;;  %v5633_v3 = vld [vmem:[%s7711_s9 + $0x48] sm:$0xff] }
  0x84   :  { %7960 = vst [vmem:[#allocation251_spill] sm:$0xff] %v5628_v0  ;;  %7961 = vst [vmem:[#allocation252_spill] sm:$0xff] %v5633_v3  ;;  %v5638_v1 = vld [vmem:[%s7711_s9 + $0x50] sm:$0xff]  ;;  %v5643_v7 = vld [vmem:[%s7711_s9 + $0x58] sm:$0xff] }
  0x85   :  { %7962 = vst [vmem:[#allocation253_spill] sm:$0xff] %v5638_v1  ;;  %7963 = vst [vmem:[#allocation254_spill] sm:$0xff] %v5643_v7  ;;  %v5648_v2 = vld [vmem:[%s7711_s9 + $0x60] sm:$0xff]  ;;  %v5653_v0 = vld [vmem:[%s7711_s9 + $0x68] sm:$0xff] }
  0x86   :  { %7964 = vst [vmem:[#allocation255_spill] sm:$0xff] %v5648_v2  ;;  %7965 = vst [vmem:[#allocation256_spill] sm:$0xff] %v5653_v0  ;;  %v5658_v3 = vld [vmem:[%s7711_s9 + $0x70] sm:$0xff]  ;;  %v5663_v1 = vld [vmem:[%s7711_s9 + $0x78] sm:$0xff] }
  0x87   :  { %7966 = vst [vmem:[#allocation257_spill] sm:$0xff] %v5658_v3  ;;  %7967 = vst [vmem:[#allocation258_spill] sm:$0xff] %v5663_v1  ;;  %v5668_v7 = vld [vmem:[%s7711_s9 + $0x80] sm:$0xff]  ;;  %v5673_v2 = vld [vmem:[%s7711_s9 + $0x88] sm:$0xff] }
  0x88   :  { %7968 = vst [vmem:[#allocation259_spill] sm:$0xff] %v5668_v7  ;;  %7969 = vst [vmem:[#allocation260_spill] sm:$0xff] %v5673_v2  ;;  %v5678_v0 = vld [vmem:[%s7711_s9 + $0x90] sm:$0xff]  ;;  %v5683_v3 = vld [vmem:[%s7711_s9 + $0x98] sm:$0xff] }
  0x89   :  { %7970 = vst [vmem:[#allocation261_spill] sm:$0xff] %v5678_v0  ;;  %7971 = vst [vmem:[#allocation262_spill] sm:$0xff] %v5683_v3  ;;  %v5688_v1 = vld [vmem:[%s7711_s9 + $0xa0] sm:$0xff]  ;;  %v5693_v7 = vld [vmem:[%s7711_s9 + $0xa8] sm:$0xff] }
  0x8a   :  { %7972 = vst [vmem:[#allocation263_spill] sm:$0xff] %v5688_v1  ;;  %7973 = vst [vmem:[#allocation264_spill] sm:$0xff] %v5693_v7  ;;  %v5698_v2 = vld [vmem:[%s7711_s9 + $0xb0] sm:$0xff]  ;;  %v5703_v0 = vld [vmem:[%s7711_s9 + $0xb8] sm:$0xff] }
  0x8b   :  { %7974 = vst [vmem:[#allocation265_spill] sm:$0xff] %v5698_v2  ;;  %7975 = vst [vmem:[#allocation266_spill] sm:$0xff] %v5703_v0  ;;  %v5708_v3 = vld [vmem:[%s7711_s9 + $0xc0] sm:$0xff]  ;;  %v5713_v1 = vld [vmem:[%s7711_s9 + $0xc8] sm:$0xff] }
  0x8c   :  { %7976 = vst [vmem:[#allocation267_spill] sm:$0xff] %v5708_v3  ;;  %7977 = vst [vmem:[#allocation268_spill] sm:$0xff] %v5713_v1  ;;  %v5718_v7 = vld [vmem:[%s7711_s9 + $0xd0] sm:$0xff]  ;;  %v5723_v2 = vld [vmem:[%s7711_s9 + $0xd8] sm:$0xff] }
  0x8d   :  { %7978 = vst [vmem:[#allocation269_spill] sm:$0xff] %v5718_v7  ;;  %7979 = vst [vmem:[#allocation270_spill] sm:$0xff] %v5723_v2  ;;  %v5728_v0 = vld [vmem:[%s7711_s9 + $0xe0] sm:$0xff]  ;;  %v5733_v3 = vld [vmem:[%s7711_s9 + $0xe8] sm:$0xff] }
  0x8e   :  { %7980 = vst [vmem:[#allocation271_spill] sm:$0xff] %v5728_v0  ;;  %7981 = vst [vmem:[#allocation272_spill] sm:$0xff] %v5733_v3  ;;  %v5738_v1 = vld [vmem:[%s7711_s9 + $0xf0] sm:$0xff]  ;;  %v5743_v7 = vld [vmem:[%s7711_s9 + $0xf8] sm:$0xff] }
  0x8f   :  { %7982 = vst [vmem:[#allocation273_spill] sm:$0xff] %v5738_v1  ;;  %7983 = vst [vmem:[#allocation274_spill] sm:$0xff] %v5743_v7  ;;  %v5748_v2 = vld [vmem:[%s7711_s9 + $0x100] sm:$0xff]  ;;  %v5753_v0 = vld [vmem:[%s7711_s9 + $0x108] sm:$0xff] }
  0x90   :  { %7984 = vst [vmem:[#allocation275_spill] sm:$0xff] %v5748_v2  ;;  %7985 = vst [vmem:[#allocation276_spill] sm:$0xff] %v5753_v0  ;;  %v5758_v3 = vld [vmem:[%s7711_s9 + $0x110] sm:$0xff]  ;;  %v5763_v1 = vld [vmem:[%s7711_s9 + $0x118] sm:$0xff] }
  0x91   :  { %7986 = vst [vmem:[#allocation277_spill] sm:$0xff] %v5758_v3  ;;  %7987 = vst [vmem:[#allocation278_spill] sm:$0xff] %v5763_v1  ;;  %v5768_v7 = vld [vmem:[%s7711_s9 + $0x120] sm:$0xff]  ;;  %v5773_v2 = vld [vmem:[%s7711_s9 + $0x128] sm:$0xff] }
  0x92   :  { %7988 = vst [vmem:[#allocation279_spill] sm:$0xff] %v5768_v7  ;;  %7989 = vst [vmem:[#allocation280_spill] sm:$0xff] %v5773_v2  ;;  %v5778_v0 = vld [vmem:[%s7711_s9 + $0x130] sm:$0xff]  ;;  %v5783_v3 = vld [vmem:[%s7711_s9 + $0x138] sm:$0xff] }
  0x93   :  { %7990 = vst [vmem:[#allocation281_spill] sm:$0xff] %v5778_v0  ;;  %7991 = vst [vmem:[#allocation282_spill] sm:$0xff] %v5783_v3  ;;  %v5788_v1 = vld [vmem:[%s7711_s9 + $0x140] sm:$0xff]  ;;  %v5793_v7 = vld [vmem:[%s7711_s9 + $0x148] sm:$0xff] }
  0x94   :  { %7992 = vst [vmem:[#allocation283_spill] sm:$0xff] %v5788_v1  ;;  %7993 = vst [vmem:[#allocation284_spill] sm:$0xff] %v5793_v7  ;;  %v5798_v2 = vld [vmem:[%s7711_s9 + $0x150] sm:$0xff]  ;;  %v5803_v0 = vld [vmem:[%s7711_s9 + $0x158] sm:$0xff] }
  0x95   :  { %7994 = vst [vmem:[#allocation285_spill] sm:$0xff] %v5798_v2  ;;  %7995 = vst [vmem:[#allocation286_spill] sm:$0xff] %v5803_v0  ;;  %v5808_v3 = vld [vmem:[%s7711_s9 + $0x160] sm:$0xff]  ;;  %v5813_v1 = vld [vmem:[%s7711_s9 + $0x168] sm:$0xff] }
  0x96   :  { %7996 = vst [vmem:[#allocation287_spill] sm:$0xff] %v5808_v3  ;;  %7997 = vst [vmem:[#allocation288_spill] sm:$0xff] %v5813_v1  ;;  %v5818_v7 = vld [vmem:[%s7711_s9 + $0x170] sm:$0xff]  ;;  %v5823_v2 = vld [vmem:[%s7711_s9 + $0x178] sm:$0xff] }
  0x97   :  { %7998 = vst [vmem:[#allocation289_spill] sm:$0xff] %v5818_v7  ;;  %7999 = vst [vmem:[#allocation290_spill] sm:$0xff] %v5823_v2  ;;  %v5828_v0 = vld [vmem:[%s7711_s9 + $0x180] sm:$0xff]  ;;  %v5833_v3 = vld [vmem:[%s7711_s9 + $0x188] sm:$0xff] }
  0x98   :  { %8000 = vst [vmem:[#allocation291_spill] sm:$0xff] %v5828_v0  ;;  %8001 = vst [vmem:[#allocation292_spill] sm:$0xff] %v5833_v3  ;;  %v5838_v1 = vld [vmem:[%s7711_s9 + $0x190] sm:$0xff]  ;;  %v5843_v7 = vld [vmem:[%s7711_s9 + $0x198] sm:$0xff] }
  0x99   :  { %8002 = vst [vmem:[#allocation293_spill] sm:$0xff] %v5838_v1  ;;  %8003 = vst [vmem:[#allocation294_spill] sm:$0xff] %v5843_v7  ;;  %v5848_v2 = vld [vmem:[%s7711_s9 + $0x1a0] sm:$0xff]  ;;  %v5853_v0 = vld [vmem:[%s7711_s9 + $0x1a8] sm:$0xff] }
  0x9a   :  { %8004 = vst [vmem:[#allocation295_spill] sm:$0xff] %v5848_v2  ;;  %8005 = vst [vmem:[#allocation296_spill] sm:$0xff] %v5853_v0  ;;  %v5858_v3 = vld [vmem:[%s7711_s9 + $0x1b0] sm:$0xff]  ;;  %v5863_v1 = vld [vmem:[%s7711_s9 + $0x1b8] sm:$0xff] }
  0x9b   :  { %8006 = vst [vmem:[#allocation297_spill] sm:$0xff] %v5858_v3  ;;  %8007 = vst [vmem:[#allocation298_spill] sm:$0xff] %v5863_v1  ;;  %v5868_v7 = vld [vmem:[%s7711_s9 + $0x1c0] sm:$0xff]  ;;  %v5873_v2 = vld [vmem:[%s7711_s9 + $0x1c8] sm:$0xff] }
  0x9c   :  { %8008 = vst [vmem:[#allocation299_spill] sm:$0xff] %v5868_v7  ;;  %8009 = vst [vmem:[#allocation300_spill] sm:$0xff] %v5873_v2  ;;  %v5878_v0 = vld [vmem:[%s7711_s9 + $0x1d0] sm:$0xff]  ;;  %v5883_v3 = vld [vmem:[%s7711_s9 + $0x1d8] sm:$0xff] }
  0x9d   :  { %8010 = vst [vmem:[#allocation301_spill] sm:$0xff] %v5878_v0  ;;  %8011 = vst [vmem:[#allocation302_spill] sm:$0xff] %v5883_v3  ;;  %v5888_v1 = vld [vmem:[%s7711_s9 + $0x1e0] sm:$0xff]  ;;  %v5893_v7 = vld [vmem:[%s7711_s9 + $0x1e8] sm:$0xff] }
  0x9e   :  { %8012 = vst [vmem:[#allocation303_spill] sm:$0xff] %v5888_v1  ;;  %8013 = vst [vmem:[#allocation304_spill] sm:$0xff] %v5893_v7  ;;  %v5898_v2 = vld [vmem:[%s7711_s9 + $0x1f0] sm:$0xff]  ;;  %v5903_v0 = vld [vmem:[%s7711_s9 + $0x1f8] sm:$0xff] }
  0x9f   :  { %8014 = vst [vmem:[#allocation305_spill] sm:$0xff] %v5898_v2  ;;  %8015 = vst [vmem:[#allocation306_spill] sm:$0xff] %v5903_v0  ;;  %v5908_v3 = vld [vmem:[%s7711_s9 + $0x200] sm:$0xff]  ;;  %v5913_v1 = vld [vmem:[%s7711_s9 + $0x208] sm:$0xff] }
  0xa0   :  { %8016 = vst [vmem:[#allocation307_spill] sm:$0xff] %v5908_v3  ;;  %8017 = vst [vmem:[#allocation308_spill] sm:$0xff] %v5913_v1  ;;  %v5918_v7 = vld [vmem:[%s7711_s9 + $0x210] sm:$0xff]  ;;  %v5923_v2 = vld [vmem:[%s7711_s9 + $0x218] sm:$0xff] }
  0xa1   :  { %8018 = vst [vmem:[#allocation309_spill] sm:$0xff] %v5918_v7  ;;  %8019 = vst [vmem:[#allocation310_spill] sm:$0xff] %v5923_v2  ;;  %v5928_v0 = vld [vmem:[%s7711_s9 + $0x220] sm:$0xff]  ;;  %v5933_v3 = vld [vmem:[%s7711_s9 + $0x228] sm:$0xff] }
  0xa2   :  { %8020 = vst [vmem:[#allocation311_spill] sm:$0xff] %v5928_v0  ;;  %8021 = vst [vmem:[#allocation312_spill] sm:$0xff] %v5933_v3  ;;  %v5938_v1 = vld [vmem:[%s7711_s9 + $0x230] sm:$0xff]  ;;  %v5943_v7 = vld [vmem:[%s7711_s9 + $0x238] sm:$0xff] }
  0xa3   :  { %8022 = vst [vmem:[#allocation313_spill] sm:$0xff] %v5938_v1  ;;  %8023 = vst [vmem:[#allocation314_spill] sm:$0xff] %v5943_v7  ;;  %v5948_v2 = vld [vmem:[%s7711_s9 + $0x240] sm:$0xff]  ;;  %v5953_v0 = vld [vmem:[%s7711_s9 + $0x248] sm:$0xff] }
  0xa4   :  { %8024 = vst [vmem:[#allocation315_spill] sm:$0xff] %v5948_v2  ;;  %8025 = vst [vmem:[#allocation316_spill] sm:$0xff] %v5953_v0  ;;  %v5958_v3 = vld [vmem:[%s7711_s9 + $0x250] sm:$0xff]  ;;  %v5963_v1 = vld [vmem:[%s7711_s9 + $0x258] sm:$0xff] }
  0xa5   :  { %8026 = vst [vmem:[#allocation317_spill] sm:$0xff] %v5958_v3  ;;  %8027 = vst [vmem:[#allocation318_spill] sm:$0xff] %v5963_v1  ;;  %v5968_v7 = vld [vmem:[%s7711_s9 + $0x260] sm:$0xff]  ;;  %v5973_v2 = vld [vmem:[%s7711_s9 + $0x268] sm:$0xff] }
  0xa6   :  { %8028 = vst [vmem:[#allocation319_spill] sm:$0xff] %v5968_v7  ;;  %8029 = vst [vmem:[#allocation320_spill] sm:$0xff] %v5973_v2  ;;  %v5978_v0 = vld [vmem:[%s7711_s9 + $0x270] sm:$0xff]  ;;  %v5983_v3 = vld [vmem:[%s7711_s9 + $0x278] sm:$0xff] }
  0xa7   :  { %8030 = vst [vmem:[#allocation321_spill] sm:$0xff] %v5978_v0  ;;  %8031 = vst [vmem:[#allocation322_spill] sm:$0xff] %v5983_v3  ;;  %v5988_v1 = vld [vmem:[%s7711_s9 + $0x280] sm:$0xff]  ;;  %v5993_v7 = vld [vmem:[%s7711_s9 + $0x288] sm:$0xff] }
  0xa8   :  { %8032 = vst [vmem:[#allocation323_spill] sm:$0xff] %v5988_v1  ;;  %8033 = vst [vmem:[#allocation324_spill] sm:$0xff] %v5993_v7  ;;  %v5998_v2 = vld [vmem:[%s7711_s9 + $0x290] sm:$0xff]  ;;  %v6003_v0 = vld [vmem:[%s7711_s9 + $0x298] sm:$0xff] }
  0xa9   :  { %8034 = vst [vmem:[#allocation325_spill] sm:$0xff] %v5998_v2  ;;  %8035 = vst [vmem:[#allocation326_spill] sm:$0xff] %v6003_v0  ;;  %v6008_v3 = vld [vmem:[%s7711_s9 + $0x2a0] sm:$0xff]  ;;  %v6013_v1 = vld [vmem:[%s7711_s9 + $0x2a8] sm:$0xff] }
  0xaa   :  { %8036 = vst [vmem:[#allocation327_spill] sm:$0xff] %v6008_v3  ;;  %8037 = vst [vmem:[#allocation328_spill] sm:$0xff] %v6013_v1  ;;  %v6018_v7 = vld [vmem:[%s7711_s9 + $0x2b0] sm:$0xff]  ;;  %v6023_v2 = vld [vmem:[%s7711_s9 + $0x2b8] sm:$0xff] }
  0xab   :  { %8038 = vst [vmem:[#allocation329_spill] sm:$0xff] %v6018_v7  ;;  %8039 = vst [vmem:[#allocation330_spill] sm:$0xff] %v6023_v2  ;;  %v6028_v0 = vld [vmem:[%s7711_s9 + $0x2c0] sm:$0xff]  ;;  %v6033_v3 = vld [vmem:[%s7711_s9 + $0x2c8] sm:$0xff] }
  0xac   :  { %8040 = vst [vmem:[#allocation331_spill] sm:$0xff] %v6028_v0  ;;  %8041 = vst [vmem:[#allocation332_spill] sm:$0xff] %v6033_v3  ;;  %v6038_v1 = vld [vmem:[%s7711_s9 + $0x2d0] sm:$0xff]  ;;  %v6043_v7 = vld [vmem:[%s7711_s9 + $0x2d8] sm:$0xff] }
  0xad   :  { %8042 = vst [vmem:[#allocation333_spill] sm:$0xff] %v6038_v1  ;;  %8043 = vst [vmem:[#allocation334_spill] sm:$0xff] %v6043_v7  ;;  %v6048_v2 = vld [vmem:[%s7711_s9 + $0x2e0] sm:$0xff]  ;;  %v6053_v0 = vld [vmem:[%s7711_s9 + $0x2e8] sm:$0xff] }
  0xae   :  { %8044 = vst [vmem:[#allocation335_spill] sm:$0xff] %v6048_v2  ;;  %8045 = vst [vmem:[#allocation336_spill] sm:$0xff] %v6053_v0  ;;  %v6058_v3 = vld [vmem:[%s7711_s9 + $0x2f0] sm:$0xff]  ;;  %v6063_v1 = vld [vmem:[%s7711_s9 + $0x2f8] sm:$0xff] }
  0xaf   :  { %8046 = vst [vmem:[#allocation337_spill] sm:$0xff] %v6058_v3  ;;  %8047 = vst [vmem:[#allocation338_spill] sm:$0xff] %v6063_v1 }
  0xb0   :  { %835 = vsyncadd [#allocation7 + $0x1], 12288  ;;  %v6068_v2 = vld [vmem:[%s7715_s13] sm:$0xff]  ;;  %v6073_v0 = vld [vmem:[%s7715_s13 + $0x8] sm:$0xff] }
  0xb1   :  { %8048 = vst [vmem:[#allocation339_spill] sm:$0xff] %v6068_v2  ;;  %8049 = vst [vmem:[#allocation340_spill] sm:$0xff] %v6073_v0  ;;  %v6078_v3 = vld [vmem:[%s7715_s13 + $0x10] sm:$0xff]  ;;  %v6083_v1 = vld [vmem:[%s7715_s13 + $0x18] sm:$0xff] }
  0xb2   :  { %8050 = vst [vmem:[#allocation341_spill] sm:$0xff] %v6078_v3  ;;  %8051 = vst [vmem:[#allocation342_spill] sm:$0xff] %v6083_v1  ;;  %v6088_v7 = vld [vmem:[%s7715_s13 + $0x20] sm:$0xff]  ;;  %v6093_v2 = vld [vmem:[%s7715_s13 + $0x28] sm:$0xff] }
  0xb3   :  { %8052 = vst [vmem:[#allocation343_spill] sm:$0xff] %v6088_v7  ;;  %8053 = vst [vmem:[#allocation344_spill] sm:$0xff] %v6093_v2  ;;  %v6098_v0 = vld [vmem:[%s7715_s13 + $0x30] sm:$0xff]  ;;  %v6103_v3 = vld [vmem:[%s7715_s13 + $0x38] sm:$0xff] }
  0xb4   :  { %8054 = vst [vmem:[#allocation345_spill] sm:$0xff] %v6098_v0  ;;  %8055 = vst [vmem:[#allocation346_spill] sm:$0xff] %v6103_v3  ;;  %v6108_v1 = vld [vmem:[%s7715_s13 + $0x40] sm:$0xff]  ;;  %v6113_v7 = vld [vmem:[%s7715_s13 + $0x48] sm:$0xff] }
  0xb5   :  { %8056 = vst [vmem:[#allocation347_spill] sm:$0xff] %v6108_v1  ;;  %8057 = vst [vmem:[#allocation348_spill] sm:$0xff] %v6113_v7  ;;  %v6118_v2 = vld [vmem:[%s7715_s13 + $0x50] sm:$0xff]  ;;  %v6123_v0 = vld [vmem:[%s7715_s13 + $0x58] sm:$0xff] }
  0xb6   :  { %8058 = vst [vmem:[#allocation349_spill] sm:$0xff] %v6118_v2  ;;  %8059 = vst [vmem:[#allocation350_spill] sm:$0xff] %v6123_v0  ;;  %v6128_v3 = vld [vmem:[%s7715_s13 + $0x60] sm:$0xff]  ;;  %v6133_v1 = vld [vmem:[%s7715_s13 + $0x68] sm:$0xff] }
  0xb7   :  { %8060 = vst [vmem:[#allocation351_spill] sm:$0xff] %v6128_v3  ;;  %8061 = vst [vmem:[#allocation352_spill] sm:$0xff] %v6133_v1  ;;  %v6138_v7 = vld [vmem:[%s7715_s13 + $0x70] sm:$0xff]  ;;  %v6143_v2 = vld [vmem:[%s7715_s13 + $0x78] sm:$0xff] }
  0xb8   :  { %8062 = vst [vmem:[#allocation353_spill] sm:$0xff] %v6138_v7  ;;  %8063 = vst [vmem:[#allocation354_spill] sm:$0xff] %v6143_v2  ;;  %v6148_v0 = vld [vmem:[%s7715_s13 + $0x80] sm:$0xff]  ;;  %v6153_v3 = vld [vmem:[%s7715_s13 + $0x88] sm:$0xff] }
  0xb9   :  { %8064 = vst [vmem:[#allocation355_spill] sm:$0xff] %v6148_v0  ;;  %8065 = vst [vmem:[#allocation356_spill] sm:$0xff] %v6153_v3  ;;  %v6158_v1 = vld [vmem:[%s7715_s13 + $0x90] sm:$0xff]  ;;  %v6163_v7 = vld [vmem:[%s7715_s13 + $0x98] sm:$0xff] }
  0xba   :  { %8066 = vst [vmem:[#allocation357_spill] sm:$0xff] %v6158_v1  ;;  %8067 = vst [vmem:[#allocation358_spill] sm:$0xff] %v6163_v7  ;;  %v6168_v2 = vld [vmem:[%s7715_s13 + $0xa0] sm:$0xff]  ;;  %v6173_v0 = vld [vmem:[%s7715_s13 + $0xa8] sm:$0xff] }
  0xbb   :  { %8068 = vst [vmem:[#allocation359_spill] sm:$0xff] %v6168_v2  ;;  %8069 = vst [vmem:[#allocation360_spill] sm:$0xff] %v6173_v0  ;;  %v6178_v3 = vld [vmem:[%s7715_s13 + $0xb0] sm:$0xff]  ;;  %v6183_v1 = vld [vmem:[%s7715_s13 + $0xb8] sm:$0xff] }
  0xbc   :  { %8070 = vst [vmem:[#allocation361_spill] sm:$0xff] %v6178_v3  ;;  %8071 = vst [vmem:[#allocation362_spill] sm:$0xff] %v6183_v1  ;;  %v6188_v7 = vld [vmem:[%s7715_s13 + $0xc0] sm:$0xff]  ;;  %v6193_v2 = vld [vmem:[%s7715_s13 + $0xc8] sm:$0xff] }
  0xbd   :  { %8072 = vst [vmem:[#allocation363_spill] sm:$0xff] %v6188_v7  ;;  %8073 = vst [vmem:[#allocation364_spill] sm:$0xff] %v6193_v2  ;;  %v6198_v0 = vld [vmem:[%s7715_s13 + $0xd0] sm:$0xff]  ;;  %v6203_v3 = vld [vmem:[%s7715_s13 + $0xd8] sm:$0xff] }
  0xbe   :  { %8074 = vst [vmem:[#allocation365_spill] sm:$0xff] %v6198_v0  ;;  %8075 = vst [vmem:[#allocation366_spill] sm:$0xff] %v6203_v3  ;;  %v6208_v1 = vld [vmem:[%s7715_s13 + $0xe0] sm:$0xff]  ;;  %v6213_v7 = vld [vmem:[%s7715_s13 + $0xe8] sm:$0xff] }
  0xbf   :  { %8076 = vst [vmem:[#allocation367_spill] sm:$0xff] %v6208_v1  ;;  %8077 = vst [vmem:[#allocation368_spill] sm:$0xff] %v6213_v7  ;;  %v6218_v2 = vld [vmem:[%s7715_s13 + $0xf0] sm:$0xff]  ;;  %v6223_v0 = vld [vmem:[%s7715_s13 + $0xf8] sm:$0xff] }
  0xc0   :  { %8078 = vst [vmem:[#allocation369_spill] sm:$0xff] %v6218_v2  ;;  %8079 = vst [vmem:[#allocation370_spill] sm:$0xff] %v6223_v0 }
  0xc1   :  { %940 = vsyncadd [#allocation7 + $0x2], 4096  ;;  %s8080_s24 = sld [smem:[#allocation372_spill]]  ;;  %s8081_s0 = sld [smem:[#allocation371_spill]]  ;;  %vm1678_vm0 = vcmask 1040384  }
  0xc7   :  { %v960_v1 = vld [vmem:[%s8080_s24 + $0x8] sm:$0xff]  ;;  %v962_v3 = vld [vmem:[%s8080_s24 + $0x18] sm:$0xff]  ;;  %v959_v6 = vld [vmem:[%s8080_s24] sm:$0xff] }
  0xc8   :  { %v3464_v7 = vpack.c.bf16 %v962_v3, %v960_v1  ;;  %v961_v2 = vld [vmem:[%s8080_s24 + $0x10] sm:$0xff]  ;;  %v964_v0 = vld [vmem:[%s8080_s24 + $0x28] sm:$0xff]  ;;  %v966_v4 = vld [vmem:[%s8080_s24 + $0x38] sm:$0xff] }
  0xc9   :  { %v3466_v5 = vpack.c.bf16 %v961_v2, %v959_v6  ;;  %v963_v1 = vld [vmem:[%s8080_s24 + $0x20] sm:$0xff]  ;;  %v965_v3 = vld [vmem:[%s8080_s24 + $0x30] sm:$0xff]  ;;  %v3468_v11 = vpack.c.bf16 %v966_v4, %v964_v0  ;;  %v968_v10 = vld [vmem:[%s8080_s24 + $0x48] sm:$0xff] }
  0xca   :  { %3465 = vmatprep.subr.bf16.mxu0 %v3464_v7  ;;  %v970_v2 = vld [vmem:[%s8080_s24 + $0x58] sm:$0xff]  ;;  %v3470_v6 = vpack.c.bf16 %v965_v3, %v963_v1  ;;  %v967_v8 = vld [vmem:[%s8080_s24 + $0x40] sm:$0xff]  ;;  %v969_v0 = vld [vmem:[%s8080_s24 + $0x50] sm:$0xff] }
  0xcb   :  { %3467 = vmatpush1.bf16.msra.mxu0 %v3466_v5  ;;  %v3472_v9 = vpack.c.bf16 %v970_v2, %v968_v10  ;;  %v972_v4 = vld [vmem:[%s8080_s24 + $0x68] sm:$0xff]  ;;  %v974_v7 = vld [vmem:[%s8080_s24 + $0x78] sm:$0xff]  ;;  %v3474_v5 = vpack.c.bf16 %v969_v0, %v967_v8  ;;  %v973_v1 = vld [vmem:[%s8080_s24 + $0x70] sm:$0xff] }
  0xcc   :  { %3469 = vmatprep.subr.bf16.mxu0 %v3468_v11  ;;  %v3476_v10 = vpack.c.bf16 %v974_v7, %v972_v4  ;;  %v971_v11 = vld [vmem:[%s8080_s24 + $0x60] sm:$0xff]  ;;  %v976_v3 = vld [vmem:[%s8080_s24 + $0x88] sm:$0xff]  ;;  %v978_v2 = vld [vmem:[%s8080_s24 + $0x98] sm:$0xff] }
  0xcd   :  { %v3478_v8 = vpack.c.bf16 %v973_v1, %v971_v11  ;;  %v977_v0 = vld [vmem:[%s8080_s24 + $0x90] sm:$0xff]  ;;  %v980_v4 = vld [vmem:[%s8080_s24 + $0xa8] sm:$0xff]  ;;  %v982_v7 = vld [vmem:[%s8080_s24 + $0xb8] sm:$0xff] }
  0xce   :  { %v979_v11 = vld [vmem:[%s8080_s24 + $0xa0] sm:$0xff]  ;;  %v981_v1 = vld [vmem:[%s8080_s24 + $0xb0] sm:$0xff] }
  0xcf   :  { %3471 = vmatpush1.bf16.msra.mxu0 %v3470_v6  ;;  %v975_v6 = vld [vmem:[%s8080_s24 + $0x80] sm:$0xff]  ;;  %v1033_v15 = vld [vmem:[%s8080_s24 + $0x250] sm:$0xff] }
  0xd0   :  { %3473 = vmatprep.subr.bf16.mxu0 %v3472_v9  ;;  %v3480_v9 = vpack.c.bf16 %v978_v2, %v976_v3  ;;  %v984_v3 = vld [vmem:[%s8080_s24 + $0xc8] sm:$0xff]  ;;  %v986_v2 = vld [vmem:[%s8080_s24 + $0xd8] sm:$0xff] }
  0xd3   :  { %3475 = vmatpush1.bf16.msra.mxu0 %v3474_v5  ;;  %v3482_v5 = vpack.c.bf16 %v977_v0, %v975_v6  ;;  %v983_v6 = vld [vmem:[%s8080_s24 + $0xc0] sm:$0xff]  ;;  %v985_v0 = vld [vmem:[%s8080_s24 + $0xd0] sm:$0xff] }
  0xd4   :  { %3477 = vmatprep.subr.bf16.mxu0 %v3476_v10  ;;  %v3484_v10 = vpack.c.bf16 %v982_v7, %v980_v4  ;;  %v942_v4 = vld [vmem:[%s8081_s0 + $0x8] sm:$0xff] }
  0xd5   :  { %v988_v7 = vld [vmem:[%s8080_s24 + $0xe8] sm:$0xff]  ;;  %1323 = vmatprep.mubr.f32.mxu0 %v942_v4  ;;  %v994_v4 = vld [vmem:[%s8080_s24 + $0x118] sm:$0xff] }
  0xd7   :  { %3479 = vmatpush1.bf16.msra.mxu0 %v3478_v8  ;;  %v3486_v8 = vpack.c.bf16 %v981_v1, %v979_v11  ;;  %v987_v1 = vld [vmem:[%s8080_s24 + $0xe0] sm:$0xff] }
  0xd8   :  { %3481 = vmatprep.subr.bf16.mxu0 %v3480_v9  ;;  %v3488_v9 = vpack.c.bf16 %v986_v2, %v984_v3  ;;  %v989_v3 = vld [vmem:[%s8080_s24 + $0xf0] sm:$0xff]  ;;  %v992_v2 = vld [vmem:[%s8080_s24 + $0x108] sm:$0xff] }
  0xdb   :  { %3483 = vmatpush1.bf16.msra.mxu0 %v3482_v5  ;;  %v990_v5 = vld [vmem:[%s8080_s24 + $0xf8] sm:$0xff] }
  0xdc   :  { %3485 = vmatprep.subr.bf16.mxu0 %v3484_v10  ;;  %v3490_v10 = vpack.c.bf16 %v985_v0, %v983_v6  ;;  %v3492_v11 = vpack.c.bf16 %v990_v5, %v988_v7  ;;  %v991_v6 = vld [vmem:[%s8080_s24 + $0x100] sm:$0xff]  ;;  %v993_v0 = vld [vmem:[%s8080_s24 + $0x110] sm:$0xff]  ;;  %v996_v7 = vld [vmem:[%s8080_s24 + $0x128] sm:$0xff] }
  0xdd   :  { %v998_v5 = vld [vmem:[%s8080_s24 + $0x138] sm:$0xff] }
  0xdf   :  { %3487 = vmatpush1.bf16.msra.mxu0 %v3486_v8  ;;  %v3494_v8 = vpack.c.bf16 %v989_v3, %v987_v1  ;;  %v995_v1 = vld [vmem:[%s8080_s24 + $0x120] sm:$0xff]  ;;  %v997_v3 = vld [vmem:[%s8080_s24 + $0x130] sm:$0xff] }
  0xe0   :  { %3489 = vmatprep.subr.bf16.mxu0 %v3488_v9  ;;  %v3496_v9 = vpack.c.bf16 %v994_v4, %v992_v2  ;;  %v1000_v2 = vld [vmem:[%s8080_s24 + $0x148] sm:$0xff]  ;;  %v1002_v4 = vld [vmem:[%s8080_s24 + $0x158] sm:$0xff] }
  0xe3   :  { %3491 = vmatpush1.bf16.msra.mxu0 %v3490_v10  ;;  %v3498_v10 = vpack.c.bf16 %v993_v0, %v991_v6  ;;  %v999_v6 = vld [vmem:[%s8080_s24 + $0x140] sm:$0xff]  ;;  %v1001_v0 = vld [vmem:[%s8080_s24 + $0x150] sm:$0xff] }
  0xe4   :  { %3493 = vmatprep.subr.bf16.mxu0 %v3492_v11  ;;  %v3500_v11 = vpack.c.bf16 %v998_v5, %v996_v7  ;;  %v1004_v7 = vld [vmem:[%s8080_s24 + $0x168] sm:$0xff]  ;;  %v1006_v5 = vld [vmem:[%s8080_s24 + $0x178] sm:$0xff] }
  0xe7   :  { %3495 = vmatpush1.bf16.msra.mxu0 %v3494_v8  ;;  %v3502_v8 = vpack.c.bf16 %v997_v3, %v995_v1  ;;  %v1003_v1 = vld [vmem:[%s8080_s24 + $0x160] sm:$0xff]  ;;  %v1005_v3 = vld [vmem:[%s8080_s24 + $0x170] sm:$0xff] }
  0xe8   :  { %3497 = vmatprep.subr.bf16.mxu0 %v3496_v9  ;;  %v3504_v9 = vpack.c.bf16 %v1002_v4, %v1000_v2  ;;  %v1008_v2 = vld [vmem:[%s8080_s24 + $0x188] sm:$0xff]  ;;  %v1010_v4 = vld [vmem:[%s8080_s24 + $0x198] sm:$0xff] }
  0xeb   :  { %3499 = vmatpush1.bf16.msra.mxu0 %v3498_v10  ;;  %v3506_v10 = vpack.c.bf16 %v1001_v0, %v999_v6  ;;  %v1007_v6 = vld [vmem:[%s8080_s24 + $0x180] sm:$0xff]  ;;  %v1009_v0 = vld [vmem:[%s8080_s24 + $0x190] sm:$0xff] }
  0xec   :  { %3501 = vmatprep.subr.bf16.mxu0 %v3500_v11  ;;  %v3508_v11 = vpack.c.bf16 %v1006_v5, %v1004_v7  ;;  %v1012_v7 = vld [vmem:[%s8080_s24 + $0x1a8] sm:$0xff]  ;;  %v1014_v5 = vld [vmem:[%s8080_s24 + $0x1b8] sm:$0xff] }
  0xef   :  { %3503 = vmatpush1.bf16.msra.mxu0 %v3502_v8  ;;  %v3510_v8 = vpack.c.bf16 %v1005_v3, %v1003_v1  ;;  %v1011_v1 = vld [vmem:[%s8080_s24 + $0x1a0] sm:$0xff]  ;;  %v1013_v3 = vld [vmem:[%s8080_s24 + $0x1b0] sm:$0xff] }
  0xf0   :  { %3505 = vmatprep.subr.bf16.mxu0 %v3504_v9  ;;  %v3512_v9 = vpack.c.bf16 %v1010_v4, %v1008_v2  ;;  %v1016_v2 = vld [vmem:[%s8080_s24 + $0x1c8] sm:$0xff]  ;;  %v1018_v4 = vld [vmem:[%s8080_s24 + $0x1d8] sm:$0xff] }
  0xf3   :  { %3507 = vmatpush1.bf16.msra.mxu0 %v3506_v10  ;;  %v3514_v10 = vpack.c.bf16 %v1009_v0, %v1007_v6  ;;  %v1015_v6 = vld [vmem:[%s8080_s24 + $0x1c0] sm:$0xff]  ;;  %v1017_v0 = vld [vmem:[%s8080_s24 + $0x1d0] sm:$0xff] }
  0xf4   :  { %3509 = vmatprep.subr.bf16.mxu0 %v3508_v11  ;;  %v3516_v11 = vpack.c.bf16 %v1014_v5, %v1012_v7  ;;  %v1020_v7 = vld [vmem:[%s8080_s24 + $0x1e8] sm:$0xff]  ;;  %v1022_v5 = vld [vmem:[%s8080_s24 + $0x1f8] sm:$0xff] }
  0xf7   :  { %3511 = vmatpush1.bf16.msra.mxu0 %v3510_v8  ;;  %v3518_v8 = vpack.c.bf16 %v1013_v3, %v1011_v1  ;;  %v1019_v1 = vld [vmem:[%s8080_s24 + $0x1e0] sm:$0xff]  ;;  %v1021_v3 = vld [vmem:[%s8080_s24 + $0x1f0] sm:$0xff] }
  0xf8   :  { %3513 = vmatprep.subr.bf16.mxu0 %v3512_v9  ;;  %v3520_v9 = vpack.c.bf16 %v1018_v4, %v1016_v2  ;;  %v1024_v2 = vld [vmem:[%s8080_s24 + $0x208] sm:$0xff]  ;;  %v1026_v4 = vld [vmem:[%s8080_s24 + $0x218] sm:$0xff] }
  0xfb   :  { %3515 = vmatpush1.bf16.msra.mxu0 %v3514_v10  ;;  %v3522_v10 = vpack.c.bf16 %v1017_v0, %v1015_v6  ;;  %v1023_v6 = vld [vmem:[%s8080_s24 + $0x200] sm:$0xff]  ;;  %v1025_v0 = vld [vmem:[%s8080_s24 + $0x210] sm:$0xff] }
  0xfc   :  { %3517 = vmatprep.subr.bf16.mxu0 %v3516_v11  ;;  %v3524_v11 = vpack.c.bf16 %v1022_v5, %v1020_v7  ;;  %v1028_v7 = vld [vmem:[%s8080_s24 + $0x228] sm:$0xff]  ;;  %v1030_v5 = vld [vmem:[%s8080_s24 + $0x238] sm:$0xff] }
  0xff   :  { %3519 = vmatpush1.bf16.msra.mxu0 %v3518_v8  ;;  %v3526_v8 = vpack.c.bf16 %v1021_v3, %v1019_v1  ;;  %v3532_v1 = vpack.c.bf16 %v1030_v5, %v1028_v7  ;;  %v1027_v3 = vld [vmem:[%s8080_s24 + $0x220] sm:$0xff] }
 0x100   :  { %3521 = vmatprep.subr.bf16.mxu0 %v3520_v9  ;;  %v3528_v9 = vpack.c.bf16 %v1026_v4, %v1024_v2  ;;  %v1029_v2 = vld [vmem:[%s8080_s24 + $0x230] sm:$0xff]  ;;  %v1031_v5 = vld [vmem:[%s8080_s24 + $0x240] sm:$0xff] }
 0x101   :  { %v951_v4 = vld [vmem:[%s8081_s0 + $0x50] sm:$0xff] }
 0x103   :  { %3523 = vmatpush1.bf16.msra.mxu0 %v3522_v10  ;;  %v941_v10 = vld [vmem:[%s8081_s0] sm:$0xff] }
 0x104   :  { %3525 = vmatprep.subr.bf16.mxu0 %v3524_v11  ;;  %v3530_v11 = vpack.c.bf16 %v1025_v0, %v1023_v6  ;;  %v3534_v6 = vpack.c.bf16 %v1029_v2, %v1027_v3  ;;  %v950_v0 = vld [vmem:[%s8081_s0 + $0x48] sm:$0xff]  ;;  %v3538_v3 = vpack.c.bf16 %v1033_v15, %v1031_v5  ;;  %v1041_v5 = vld [vmem:[%s8080_s24 + $0x290] sm:$0xff] }
 0x107   :  { %3527 = vmatpush1.bf16.msra.mxu0 %v3526_v8  ;;  %v1032_v8 = vld [vmem:[%s8080_s24 + $0x248] sm:$0xff] }
 0x108   :  { %3529 = vmatprep.subr.bf16.mxu0 %v3528_v9  ;;  %v1034_v9 = vld [vmem:[%s8080_s24 + $0x258] sm:$0xff] }
 0x109   :  { %v3536_v7 = vpack.c.bf16 %v1034_v9, %v1032_v8  ;;  %v1037_v8 = vld [vmem:[%s8080_s24 + $0x270] sm:$0xff]  ;;  %v1040_v9 = vld [vmem:[%s8080_s24 + $0x288] sm:$0xff] }
 0x10a   :  { %1324 = vmatmul.mubr.f32.vlgmr.msra.gmra.mrb[0].mxu0 %v941_v10  ;;  %v944_v10 = vld [vmem:[%s8081_s0 + $0x18] sm:$0xff] }
 0x10b   :  { %3531 = vmatpush1.bf16.msra.mxu0 %v3530_v11  ;;  %1329 = vmatprep.mubr.f32.mxu0 %v951_v4  ;;  %v1036_v11 = vld [vmem:[%s8080_s24 + $0x268] sm:$0xff]  ;;  %v1035_v4 = vld [vmem:[%s8080_s24 + $0x260] sm:$0xff] }
 0x10c   :  { %3533 = vmatprep.subr.bf16.mxu0 %v3532_v1  ;;  %v1038_v1 = vld [vmem:[%s8080_s24 + $0x278] sm:$0xff]  ;;  %v3542_v15 = vpack.c.bf16 %v1037_v8, %v1035_v4  ;;  %v1045_v4 = vld [vmem:[%s8080_s24 + $0x2b0] sm:$0xff]  ;;  %v1048_v8 = vld [vmem:[%s8080_s24 + $0x2c8] sm:$0xff] }
 0x10d   :  { %v3540_v2 = vpack.c.bf16 %v1038_v1, %v1036_v11  ;;  %v1046_v11 = vld [vmem:[%s8080_s24 + $0x2b8] sm:$0xff] }
 0x10e   :  { %1330 = vmatmul.mubr.f32.gmra.mrb[2].mxu0 %v950_v0 }
 0x10f   :  { %3535 = vmatpush1.bf16.msra.mxu0 %v3534_v6  ;;  %1400 = vmatprep.mubr.f32.mxu0 %v944_v10  ;;  %v1042_v6 = vld [vmem:[%s8080_s24 + $0x298] sm:$0xff]  ;;  %v1044_v10 = vld [vmem:[%s8080_s24 + $0x2a8] sm:$0xff] }
 0x110   :  { %3537 = vmatprep.subr.bf16.mxu0 %v3536_v7  ;;  %v3544_v0 = vpack.c.bf16 %v1042_v6, %v1040_v9  ;;  %v1039_v7 = vld [vmem:[%s8080_s24 + $0x280] sm:$0xff]  ;;  %v1050_v9 = vld [vmem:[%s8080_s24 + $0x2d8] sm:$0xff] }
 0x111   :  { %v3546_v1 = vpack.c.bf16 %v1041_v5, %v1039_v7  ;;  %v1049_v7 = vld [vmem:[%s8080_s24 + $0x2d0] sm:$0xff]  ;;  %v1052_v5 = vld [vmem:[%s8080_s24 + $0x2e8] sm:$0xff] }
 0x113   :  { %3539 = vmatpush1.bf16.msra.mxu0 %v3538_v3  ;;  %v3548_v3 = vpack.c.bf16 %v1046_v11, %v1044_v10  ;;  %v1054_v10 = vld [vmem:[%s8080_s24 + $0x2f8] sm:$0xff] }
 0x114   :  { %3541 = vmatprep.subr.bf16.mxu0 %v3540_v2  ;;  %v1043_v2 = vld [vmem:[%s8080_s24 + $0x2a0] sm:$0xff] }
 0x115   :  { %v3550_v6 = vpack.c.bf16 %v1045_v4, %v1043_v2  ;;  %v1053_v2 = vld [vmem:[%s8080_s24 + $0x2f0] sm:$0xff]  ;;  %v1056_v4 = vld [vmem:[%s8080_s24 + $0x308] sm:$0xff] }
 0x117   :  { %3543 = vmatpush1.bf16.msra.mxu0 %v3542_v15  ;;  %v3552_v15 = vpack.c.bf16 %v1050_v9, %v1048_v8  ;;  %v1058_v8 = vld [vmem:[%s8080_s24 + $0x318] sm:$0xff] }
 0x118   :  { %3545 = vmatprep.subr.bf16.mxu0 %v3544_v0  ;;  %v1047_v0 = vld [vmem:[%s8080_s24 + $0x2c0] sm:$0xff] }
 0x119   :  { %v3554_v11 = vpack.c.bf16 %v1049_v7, %v1047_v0  ;;  %v1057_v0 = vld [vmem:[%s8080_s24 + $0x310] sm:$0xff]  ;;  %v1060_v7 = vld [vmem:[%s8080_s24 + $0x328] sm:$0xff] }
 0x11b   :  { %3547 = vmatpush1.bf16.msra.mxu0 %v3546_v1  ;;  %v3556_v1 = vpack.c.bf16 %v1054_v10, %v1052_v5  ;;  %v1062_v5 = vld [vmem:[%s8080_s24 + $0x338] sm:$0xff] }
 0x11c   :  { %3549 = vmatprep.subr.bf16.mxu0 %v3548_v3  ;;  %v1051_v3 = vld [vmem:[%s8080_s24 + $0x2e0] sm:$0xff] }
 0x11d   :  { %v3558_v9 = vpack.c.bf16 %v1053_v2, %v1051_v3  ;;  %v1061_v3 = vld [vmem:[%s8080_s24 + $0x330] sm:$0xff]  ;;  %v1064_v2 = vld [vmem:[%s8080_s24 + $0x348] sm:$0xff] }
 0x11f   :  { %3551 = vmatpush1.bf16.msra.mxu0 %v3550_v6  ;;  %v3560_v6 = vpack.c.bf16 %v1058_v8, %v1056_v4  ;;  %v1066_v4 = vld [vmem:[%s8080_s24 + $0x358] sm:$0xff] }
 0x120   :  { %3553 = vmatprep.subr.bf16.mxu0 %v3552_v15  ;;  %v1055_v15 = vld [vmem:[%s8080_s24 + $0x300] sm:$0xff] }
 0x121   :  { %v3562_v10 = vpack.c.bf16 %v1057_v0, %v1055_v15  ;;  %v1065_v15 = vld [vmem:[%s8080_s24 + $0x350] sm:$0xff]  ;;  %v1068_v0 = vld [vmem:[%s8080_s24 + $0x368] sm:$0xff] }
 0x123   :  { %3555 = vmatpush1.bf16.msra.mxu0 %v3554_v11  ;;  %v3564_v11 = vpack.c.bf16 %v1062_v5, %v1060_v7  ;;  %v1070_v7 = vld [vmem:[%s8080_s24 + $0x378] sm:$0xff] }
 0x124   :  { %3557 = vmatprep.subr.bf16.mxu0 %v3556_v1  ;;  %v1059_v1 = vld [vmem:[%s8080_s24 + $0x320] sm:$0xff] }
 0x125   :  { %v3566_v8 = vpack.c.bf16 %v1061_v3, %v1059_v1  ;;  %v1069_v1 = vld [vmem:[%s8080_s24 + $0x370] sm:$0xff]  ;;  %v1072_v3 = vld [vmem:[%s8080_s24 + $0x388] sm:$0xff] }
 0x127   :  { %3559 = vmatpush1.bf16.msra.mxu0 %v3558_v9  ;;  %v3568_v9 = vpack.c.bf16 %v1066_v4, %v1064_v2  ;;  %v1074_v2 = vld [vmem:[%s8080_s24 + $0x398] sm:$0xff] }
 0x128   :  { %3561 = vmatprep.subr.bf16.mxu0 %v3560_v6  ;;  %v1063_v6 = vld [vmem:[%s8080_s24 + $0x340] sm:$0xff] }
 0x129   :  { %v3570_v5 = vpack.c.bf16 %v1065_v15, %v1063_v6  ;;  %v1073_v6 = vld [vmem:[%s8080_s24 + $0x390] sm:$0xff]  ;;  %v1076_v15 = vld [vmem:[%s8080_s24 + $0x3a8] sm:$0xff] }
 0x12b   :  { %3563 = vmatpush1.bf16.msra.mxu0 %v3562_v10  ;;  %v3572_v10 = vpack.c.bf16 %v1070_v7, %v1068_v0  ;;  %v1078_v0 = vld [vmem:[%s8080_s24 + $0x3b8] sm:$0xff] }
 0x12c   :  { %3565 = vmatprep.subr.bf16.mxu0 %v3564_v11  ;;  %v1067_v11 = vld [vmem:[%s8080_s24 + $0x360] sm:$0xff] }
 0x12d   :  { %v3574_v4 = vpack.c.bf16 %v1069_v1, %v1067_v11  ;;  %v1077_v11 = vld [vmem:[%s8080_s24 + $0x3b0] sm:$0xff]  ;;  %v1080_v1 = vld [vmem:[%s8080_s24 + $0x3c8] sm:$0xff] }
 0x12f   :  { %3567 = vmatpush1.bf16.msra.mxu0 %v3566_v8  ;;  %v3576_v8 = vpack.c.bf16 %v1074_v2, %v1072_v3  ;;  %v1082_v3 = vld [vmem:[%s8080_s24 + $0x3d8] sm:$0xff] }
 0x130   :  { %3569 = vmatprep.subr.bf16.mxu0 %v3568_v9  ;;  %v1071_v9 = vld [vmem:[%s8080_s24 + $0x380] sm:$0xff] }
 0x131   :  { %v3578_v7 = vpack.c.bf16 %v1073_v6, %v1071_v9  ;;  %v1081_v9 = vld [vmem:[%s8080_s24 + $0x3d0] sm:$0xff]  ;;  %v1084_v6 = vld [vmem:[%s8080_s24 + $0x3e8] sm:$0xff] }
 0x133   :  { %3571 = vmatpush1.bf16.msra.mxu0 %v3570_v5  ;;  %v3580_v5 = vpack.c.bf16 %v1078_v0, %v1076_v15  ;;  %v1086_v15 = vld [vmem:[%s8080_s24 + $0x3f8] sm:$0xff] }
 0x134   :  { %3573 = vmatprep.subr.bf16.mxu0 %v3572_v10  ;;  %v1075_v10 = vld [vmem:[%s8080_s24 + $0x3a0] sm:$0xff] }
 0x135   :  { %v3582_v2 = vpack.c.bf16 %v1077_v11, %v1075_v10  ;;  %v1085_v10 = vld [vmem:[%s8080_s24 + $0x3f0] sm:$0xff]  ;;  %v1088_v11 = vld [vmem:[%s8080_s24 + $0x408] sm:$0xff] }
 0x137   :  { %3575 = vmatpush1.bf16.msra.mxu0 %v3574_v4  ;;  %v3584_v4 = vpack.c.bf16 %v1082_v3, %v1080_v1  ;;  %v1090_v1 = vld [vmem:[%s8080_s24 + $0x418] sm:$0xff] }
 0x138   :  { %3577 = vmatprep.subr.bf16.mxu0 %v3576_v8  ;;  %v1079_v8 = vld [vmem:[%s8080_s24 + $0x3c0] sm:$0xff] }
 0x139   :  { %v3586_v0 = vpack.c.bf16 %v1081_v9, %v1079_v8  ;;  %v1089_v8 = vld [vmem:[%s8080_s24 + $0x410] sm:$0xff]  ;;  %v1092_v9 = vld [vmem:[%s8080_s24 + $0x428] sm:$0xff] }
 0x13b   :  { %3579 = vmatpush1.bf16.msra.mxu0 %v3578_v7  ;;  %v3588_v7 = vpack.c.bf16 %v1086_v15, %v1084_v6  ;;  %v1094_v6 = vld [vmem:[%s8080_s24 + $0x438] sm:$0xff]  ;;  %v943_v15 = vld [vmem:[%s8081_s0 + $0x10] sm:$0xff] }
 0x13c   :  { %3581 = vmatprep.subr.bf16.mxu0 %v3580_v5  ;;  %v1083_v5 = vld [vmem:[%s8080_s24 + $0x3e0] sm:$0xff] }
 0x13d   :  { %v3590_v3 = vpack.c.bf16 %v1085_v10, %v1083_v5  ;;  %v1091_v5 = vld [vmem:[%s8080_s24 + $0x420] sm:$0xff]  ;;  %v1093_v10 = vld [vmem:[%s8080_s24 + $0x430] sm:$0xff] }
 0x13f   :  { %3583 = vmatpush1.bf16.msra.mxu0 %v3582_v2  ;;  %v3592_v2 = vpack.c.bf16 %v1090_v1, %v1088_v11  ;;  %v953_v11 = vld [vmem:[%s8081_s0 + $0x60] sm:$0xff]  ;;  %v1096_v1 = vld [vmem:[%s8080_s24 + $0x448] sm:$0xff] }
 0x140   :  { %3585 = vmatprep.subr.bf16.mxu0 %v3584_v4  ;;  %v1087_v4 = vld [vmem:[%s8080_s24 + $0x400] sm:$0xff] }
 0x143   :  { %3587 = vmatpush1.bf16.msra.mxu0 %v3586_v0  ;;  %v3594_v0 = vpack.c.bf16 %v1089_v8, %v1087_v4  ;;  %v952_v4 = vld [vmem:[%s8081_s0 + $0x58] sm:$0xff] }
 0x144   :  { %3589 = vmatprep.subr.bf16.mxu0 %v3588_v7  ;;  %v3596_v7 = vpack.c.bf16 %v1094_v6, %v1092_v9  ;;  %v1095_v9 = vld [vmem:[%s8080_s24 + $0x440] sm:$0xff]  ;;  %v1097_v6 = vld [vmem:[%s8080_s24 + $0x450] sm:$0xff] }
 0x147   :  { %3591 = vmatpush1.bf16.msra.mxu0 %v3590_v3  ;;  %v1098_v3 = vld [vmem:[%s8080_s24 + $0x458] sm:$0xff] }
 0x148   :  { %3593 = vmatprep.subr.bf16.mxu0 %v3592_v2  ;;  %v3598_v2 = vpack.c.bf16 %v1093_v10, %v1091_v5  ;;  %v3600_v8 = vpack.c.bf16 %v1098_v3, %v1096_v1  ;;  %v3602_v5 = vpack.c.bf16 %v1097_v6, %v1095_v9  ;;  %v1101_v1 = vld [vmem:[%s8080_s24 + $0x470] sm:$0xff]  ;;  %v1104_v3 = vld [vmem:[%s8080_s24 + $0x488] sm:$0xff]  ;;  %v1103_v9 = vld [vmem:[%s8080_s24 + $0x480] sm:$0xff] }
 0x149   :  { %v1105_v6 = vld [vmem:[%s8080_s24 + $0x490] sm:$0xff] }
 0x14a   :  { %1401 = vmatmul.mubr.f32.vlgmr.msra.gmra.mrb[0].mxu0 %v943_v15  ;;  %v946_v15 = vld [vmem:[%s8081_s0 + $0x28] sm:$0xff] }
 0x14b   :  { %3595 = vmatpush1.bf16.msra.mxu0 %v3594_v0  ;;  %1406 = vmatprep.mubr.f32.mxu0 %v953_v11  ;;  %v1100_v0 = vld [vmem:[%s8080_s24 + $0x468] sm:$0xff]  ;;  %v1099_v11 = vld [vmem:[%s8080_s24 + $0x460] sm:$0xff] }
 0x14c   :  { %3597 = vmatprep.subr.bf16.mxu0 %v3596_v7  ;;  %v1102_v7 = vld [vmem:[%s8080_s24 + $0x478] sm:$0xff] }
 0x14d   :  { %v3604_v10 = vpack.c.bf16 %v1102_v7, %v1100_v0  ;;  %v1110_v0 = vld [vmem:[%s8080_s24 + $0x4b8] sm:$0xff]  ;;  %v3610_v7 = vpack.c.bf16 %v1105_v6, %v1103_v9  ;;  %v1113_v9 = vld [vmem:[%s8080_s24 + $0x4d0] sm:$0xff]  ;;  %v1116_v6 = vld [vmem:[%s8080_s24 + $0x4e8] sm:$0xff] }
 0x14e   :  { %1407 = vmatmul.mubr.f32.gmra.mrb[2].mxu0 %v952_v4  ;;  %v3606_v4 = vpack.c.bf16 %v1101_v1, %v1099_v11  ;;  %v1109_v11 = vld [vmem:[%s8080_s24 + $0x4b0] sm:$0xff]  ;;  %v1112_v1 = vld [vmem:[%s8080_s24 + $0x4c8] sm:$0xff] }
 0x14f   :  { %3599 = vmatpush1.bf16.msra.mxu0 %v3598_v2  ;;  %1477 = vmatprep.mubr.f32.mxu0 %v946_v15  ;;  %v1106_v2 = vld [vmem:[%s8080_s24 + $0x498] sm:$0xff]  ;;  %v1108_v15 = vld [vmem:[%s8080_s24 + $0x4a8] sm:$0xff] }
 0x150   :  { %3601 = vmatprep.subr.bf16.mxu0 %v3600_v8  ;;  %v3608_v8 = vpack.c.bf16 %v1106_v2, %v1104_v3  ;;  %v1114_v3 = vld [vmem:[%s8080_s24 + $0x4d8] sm:$0xff] }
 0x153   :  { %3603 = vmatpush1.bf16.msra.mxu0 %v3602_v5  ;;  %v3612_v5 = vpack.c.bf16 %v1110_v0, %v1108_v15  ;;  %v1118_v15 = vld [vmem:[%s8080_s24 + $0x4f8] sm:$0xff] }
 0x154   :  { %3605 = vmatprep.subr.bf16.mxu0 %v3604_v10  ;;  %v1107_v10 = vld [vmem:[%s8080_s24 + $0x4a0] sm:$0xff] }
 0x155   :  { %v3614_v2 = vpack.c.bf16 %v1109_v11, %v1107_v10  ;;  %v1117_v10 = vld [vmem:[%s8080_s24 + $0x4f0] sm:$0xff]  ;;  %v1120_v11 = vld [vmem:[%s8080_s24 + $0x508] sm:$0xff] }
 0x157   :  { %3607 = vmatpush1.bf16.msra.mxu0 %v3606_v4  ;;  %v3616_v4 = vpack.c.bf16 %v1114_v3, %v1112_v1  ;;  %v1122_v1 = vld [vmem:[%s8080_s24 + $0x518] sm:$0xff] }
 0x158   :  { %3609 = vmatprep.subr.bf16.mxu0 %v3608_v8  ;;  %v1111_v8 = vld [vmem:[%s8080_s24 + $0x4c0] sm:$0xff] }
 0x159   :  { %v3618_v0 = vpack.c.bf16 %v1113_v9, %v1111_v8  ;;  %v1121_v8 = vld [vmem:[%s8080_s24 + $0x510] sm:$0xff]  ;;  %v1124_v9 = vld [vmem:[%s8080_s24 + $0x528] sm:$0xff] }
 0x15b   :  { %3611 = vmatpush1.bf16.msra.mxu0 %v3610_v7  ;;  %v3620_v7 = vpack.c.bf16 %v1118_v15, %v1116_v6  ;;  %v1126_v6 = vld [vmem:[%s8080_s24 + $0x538] sm:$0xff] }
 0x15c   :  { %3613 = vmatprep.subr.bf16.mxu0 %v3612_v5  ;;  %v1115_v5 = vld [vmem:[%s8080_s24 + $0x4e0] sm:$0xff] }
 0x15d   :  { %v3622_v3 = vpack.c.bf16 %v1117_v10, %v1115_v5  ;;  %v1125_v5 = vld [vmem:[%s8080_s24 + $0x530] sm:$0xff]  ;;  %v1128_v10 = vld [vmem:[%s8080_s24 + $0x548] sm:$0xff] }
 0x15f   :  { %3615 = vmatpush1.bf16.msra.mxu0 %v3614_v2  ;;  %v3624_v2 = vpack.c.bf16 %v1122_v1, %v1120_v11  ;;  %v1130_v11 = vld [vmem:[%s8080_s24 + $0x558] sm:$0xff] }
 0x160   :  { %3617 = vmatprep.subr.bf16.mxu0 %v3616_v4  ;;  %v1119_v4 = vld [vmem:[%s8080_s24 + $0x500] sm:$0xff] }
 0x161   :  { %v3626_v15 = vpack.c.bf16 %v1121_v8, %v1119_v4  ;;  %v1129_v4 = vld [vmem:[%s8080_s24 + $0x550] sm:$0xff]  ;;  %v1132_v8 = vld [vmem:[%s8080_s24 + $0x568] sm:$0xff] }
 0x163   :  { %3619 = vmatpush1.bf16.msra.mxu0 %v3618_v0  ;;  %v3628_v0 = vpack.c.bf16 %v1126_v6, %v1124_v9  ;;  %v1134_v9 = vld [vmem:[%s8080_s24 + $0x578] sm:$0xff] }
 0x164   :  { %3621 = vmatprep.subr.bf16.mxu0 %v3620_v7  ;;  %v1123_v7 = vld [vmem:[%s8080_s24 + $0x520] sm:$0xff] }
 0x165   :  { %v3630_v1 = vpack.c.bf16 %v1125_v5, %v1123_v7  ;;  %v1133_v7 = vld [vmem:[%s8080_s24 + $0x570] sm:$0xff]  ;;  %v1136_v5 = vld [vmem:[%s8080_s24 + $0x588] sm:$0xff] }
 0x167   :  { %3623 = vmatpush1.bf16.msra.mxu0 %v3622_v3  ;;  %v3632_v3 = vpack.c.bf16 %v1130_v11, %v1128_v10  ;;  %v1138_v10 = vld [vmem:[%s8080_s24 + $0x598] sm:$0xff] }
 0x168   :  { %3625 = vmatprep.subr.bf16.mxu0 %v3624_v2  ;;  %v1127_v2 = vld [vmem:[%s8080_s24 + $0x540] sm:$0xff] }
 0x169   :  { %v3634_v6 = vpack.c.bf16 %v1129_v4, %v1127_v2  ;;  %v1137_v2 = vld [vmem:[%s8080_s24 + $0x590] sm:$0xff]  ;;  %v1140_v4 = vld [vmem:[%s8080_s24 + $0x5a8] sm:$0xff] }
 0x16b   :  { %3627 = vmatpush1.bf16.msra.mxu0 %v3626_v15  ;;  %v3636_v15 = vpack.c.bf16 %v1134_v9, %v1132_v8  ;;  %v1142_v8 = vld [vmem:[%s8080_s24 + $0x5b8] sm:$0xff] }
 0x16c   :  { %3629 = vmatprep.subr.bf16.mxu0 %v3628_v0  ;;  %v1131_v0 = vld [vmem:[%s8080_s24 + $0x560] sm:$0xff] }
 0x16d   :  { %v3638_v11 = vpack.c.bf16 %v1133_v7, %v1131_v0  ;;  %v1141_v0 = vld [vmem:[%s8080_s24 + $0x5b0] sm:$0xff]  ;;  %v1144_v7 = vld [vmem:[%s8080_s24 + $0x5c8] sm:$0xff] }
 0x16f   :  { %3631 = vmatpush1.bf16.msra.mxu0 %v3630_v1  ;;  %v3640_v1 = vpack.c.bf16 %v1138_v10, %v1136_v5  ;;  %v1146_v5 = vld [vmem:[%s8080_s24 + $0x5d8] sm:$0xff] }
 0x170   :  { %3633 = vmatprep.subr.bf16.mxu0 %v3632_v3  ;;  %v1135_v3 = vld [vmem:[%s8080_s24 + $0x580] sm:$0xff] }
 0x171   :  { %v3642_v9 = vpack.c.bf16 %v1137_v2, %v1135_v3  ;;  %v1145_v3 = vld [vmem:[%s8080_s24 + $0x5d0] sm:$0xff]  ;;  %v1148_v2 = vld [vmem:[%s8080_s24 + $0x5e8] sm:$0xff] }
 0x173   :  { %3635 = vmatpush1.bf16.msra.mxu0 %v3634_v6  ;;  %v3644_v6 = vpack.c.bf16 %v1142_v8, %v1140_v4  ;;  %v1150_v4 = vld [vmem:[%s8080_s24 + $0x5f8] sm:$0xff] }
 0x174   :  { %3637 = vmatprep.subr.bf16.mxu0 %v3636_v15  ;;  %v1139_v15 = vld [vmem:[%s8080_s24 + $0x5a0] sm:$0xff] }
 0x175   :  { %v3646_v10 = vpack.c.bf16 %v1141_v0, %v1139_v15  ;;  %v1149_v15 = vld [vmem:[%s8080_s24 + $0x5f0] sm:$0xff]  ;;  %v1152_v0 = vld [vmem:[%s8080_s24 + $0x608] sm:$0xff] }
 0x177   :  { %3639 = vmatpush1.bf16.msra.mxu0 %v3638_v11  ;;  %v3648_v11 = vpack.c.bf16 %v1146_v5, %v1144_v7  ;;  %v1154_v7 = vld [vmem:[%s8080_s24 + $0x618] sm:$0xff] }
 0x178   :  { %3641 = vmatprep.subr.bf16.mxu0 %v3640_v1  ;;  %v1143_v1 = vld [vmem:[%s8080_s24 + $0x5c0] sm:$0xff] }
 0x179   :  { %v3650_v8 = vpack.c.bf16 %v1145_v3, %v1143_v1  ;;  %v1153_v1 = vld [vmem:[%s8080_s24 + $0x610] sm:$0xff]  ;;  %v1156_v3 = vld [vmem:[%s8080_s24 + $0x628] sm:$0xff] }
 0x17b   :  { %3643 = vmatpush1.bf16.msra.mxu0 %v3642_v9  ;;  %v3652_v9 = vpack.c.bf16 %v1150_v4, %v1148_v2  ;;  %v1158_v2 = vld [vmem:[%s8080_s24 + $0x638] sm:$0xff]  ;;  %v945_v4 = vld [vmem:[%s8081_s0 + $0x20] sm:$0xff] }
 0x17c   :  { %3645 = vmatprep.subr.bf16.mxu0 %v3644_v6  ;;  %v1147_v6 = vld [vmem:[%s8080_s24 + $0x5e0] sm:$0xff] }
 0x17d   :  { %v3654_v5 = vpack.c.bf16 %v1149_v15, %v1147_v6  ;;  %v1155_v6 = vld [vmem:[%s8080_s24 + $0x620] sm:$0xff]  ;;  %v1157_v15 = vld [vmem:[%s8080_s24 + $0x630] sm:$0xff] }
 0x17f   :  { %3647 = vmatpush1.bf16.msra.mxu0 %v3646_v10  ;;  %v3656_v10 = vpack.c.bf16 %v1154_v7, %v1152_v0  ;;  %v955_v0 = vld [vmem:[%s8081_s0 + $0x70] sm:$0xff]  ;;  %v1160_v7 = vld [vmem:[%s8080_s24 + $0x648] sm:$0xff] }
 0x180   :  { %3649 = vmatprep.subr.bf16.mxu0 %v3648_v11  ;;  %v1151_v11 = vld [vmem:[%s8080_s24 + $0x600] sm:$0xff] }
 0x183   :  { %3651 = vmatpush1.bf16.msra.mxu0 %v3650_v8  ;;  %v3658_v8 = vpack.c.bf16 %v1153_v1, %v1151_v11  ;;  %v954_v11 = vld [vmem:[%s8081_s0 + $0x68] sm:$0xff] }
 0x184   :  { %3653 = vmatprep.subr.bf16.mxu0 %v3652_v9  ;;  %v3660_v9 = vpack.c.bf16 %v1158_v2, %v1156_v3  ;;  %v1159_v3 = vld [vmem:[%s8080_s24 + $0x640] sm:$0xff]  ;;  %v1161_v2 = vld [vmem:[%s8080_s24 + $0x650] sm:$0xff] }
 0x187   :  { %3655 = vmatpush1.bf16.msra.mxu0 %v3654_v5  ;;  %v1162_v5 = vld [vmem:[%s8080_s24 + $0x658] sm:$0xff] }
 0x188   :  { %3657 = vmatprep.subr.bf16.mxu0 %v3656_v10  ;;  %v3662_v10 = vpack.c.bf16 %v1157_v15, %v1155_v6  ;;  %v3664_v1 = vpack.c.bf16 %v1162_v5, %v1160_v7  ;;  %v3666_v6 = vpack.c.bf16 %v1161_v2, %v1159_v3  ;;  %v1165_v7 = vld [vmem:[%s8080_s24 + $0x670] sm:$0xff]  ;;  %v1168_v5 = vld [vmem:[%s8080_s24 + $0x688] sm:$0xff]  ;;  %v1167_v3 = vld [vmem:[%s8080_s24 + $0x680] sm:$0xff] }
 0x189   :  { %v1169_v2 = vld [vmem:[%s8080_s24 + $0x690] sm:$0xff] }
 0x18a   :  { %1478 = vmatmul.mubr.f32.vlgmr.msra.gmra.mrb[0].mxu0 %v945_v4  ;;  %v948_v4 = vld [vmem:[%s8081_s0 + $0x38] sm:$0xff] }
 0x18b   :  { %3659 = vmatpush1.bf16.msra.mxu0 %v3658_v8  ;;  %1483 = vmatprep.mubr.f32.mxu0 %v955_v0  ;;  %v1164_v8 = vld [vmem:[%s8080_s24 + $0x668] sm:$0xff]  ;;  %v1163_v0 = vld [vmem:[%s8080_s24 + $0x660] sm:$0xff] }
 0x18c   :  { %3661 = vmatprep.subr.bf16.mxu0 %v3660_v9  ;;  %v1166_v9 = vld [vmem:[%s8080_s24 + $0x678] sm:$0xff] }
 0x18d   :  { %v3668_v15 = vpack.c.bf16 %v1166_v9, %v1164_v8  ;;  %v1174_v8 = vld [vmem:[%s8080_s24 + $0x6b8] sm:$0xff]  ;;  %v3674_v9 = vpack.c.bf16 %v1169_v2, %v1167_v3  ;;  %v1177_v3 = vld [vmem:[%s8080_s24 + $0x6d0] sm:$0xff]  ;;  %v1180_v2 = vld [vmem:[%s8080_s24 + $0x6e8] sm:$0xff] }
 0x18e   :  { %1484 = vmatmul.mubr.f32.gmra.mrb[2].mxu0 %v954_v11  ;;  %v3670_v11 = vpack.c.bf16 %v1165_v7, %v1163_v0  ;;  %v1173_v0 = vld [vmem:[%s8080_s24 + $0x6b0] sm:$0xff]  ;;  %v1176_v7 = vld [vmem:[%s8080_s24 + $0x6c8] sm:$0xff] }
 0x18f   :  { %3663 = vmatpush1.bf16.msra.mxu0 %v3662_v10  ;;  %1554 = vmatprep.mubr.f32.mxu0 %v948_v4  ;;  %v1170_v10 = vld [vmem:[%s8080_s24 + $0x698] sm:$0xff]  ;;  %v1172_v4 = vld [vmem:[%s8080_s24 + $0x6a8] sm:$0xff] }
 0x190   :  { %3665 = vmatprep.subr.bf16.mxu0 %v3664_v1  ;;  %v3672_v1 = vpack.c.bf16 %v1170_v10, %v1168_v5  ;;  %v1178_v5 = vld [vmem:[%s8080_s24 + $0x6d8] sm:$0xff] }
 0x193   :  { %3667 = vmatpush1.bf16.msra.mxu0 %v3666_v6  ;;  %v3676_v6 = vpack.c.bf16 %v1174_v8, %v1172_v4  ;;  %v1182_v4 = vld [vmem:[%s8080_s24 + $0x6f8] sm:$0xff] }
 0x194   :  { %3669 = vmatprep.subr.bf16.mxu0 %v3668_v15  ;;  %v1171_v15 = vld [vmem:[%s8080_s24 + $0x6a0] sm:$0xff] }
 0x195   :  { %v3678_v10 = vpack.c.bf16 %v1173_v0, %v1171_v15  ;;  %v1181_v15 = vld [vmem:[%s8080_s24 + $0x6f0] sm:$0xff]  ;;  %v1184_v0 = vld [vmem:[%s8080_s24 + $0x708] sm:$0xff] }
 0x197   :  { %3671 = vmatpush1.bf16.msra.mxu0 %v3670_v11  ;;  %v3680_v11 = vpack.c.bf16 %v1178_v5, %v1176_v7  ;;  %v1186_v7 = vld [vmem:[%s8080_s24 + $0x718] sm:$0xff] }
 0x198   :  { %3673 = vmatprep.subr.bf16.mxu0 %v3672_v1  ;;  %v1175_v1 = vld [vmem:[%s8080_s24 + $0x6c0] sm:$0xff] }
 0x199   :  { %v3682_v8 = vpack.c.bf16 %v1177_v3, %v1175_v1  ;;  %v1185_v1 = vld [vmem:[%s8080_s24 + $0x710] sm:$0xff]  ;;  %v1188_v3 = vld [vmem:[%s8080_s24 + $0x728] sm:$0xff] }
 0x19b   :  { %3675 = vmatpush1.bf16.msra.mxu0 %v3674_v9  ;;  %v3684_v9 = vpack.c.bf16 %v1182_v4, %v1180_v2  ;;  %v1190_v2 = vld [vmem:[%s8080_s24 + $0x738] sm:$0xff] }
 0x19c   :  { %3677 = vmatprep.subr.bf16.mxu0 %v3676_v6  ;;  %v1179_v6 = vld [vmem:[%s8080_s24 + $0x6e0] sm:$0xff] }
 0x19d   :  { %v3686_v5 = vpack.c.bf16 %v1181_v15, %v1179_v6  ;;  %v1189_v6 = vld [vmem:[%s8080_s24 + $0x730] sm:$0xff]  ;;  %v1192_v15 = vld [vmem:[%s8080_s24 + $0x748] sm:$0xff] }
 0x19f   :  { %3679 = vmatpush1.bf16.msra.mxu0 %v3678_v10  ;;  %v3688_v10 = vpack.c.bf16 %v1186_v7, %v1184_v0  ;;  %v1194_v0 = vld [vmem:[%s8080_s24 + $0x758] sm:$0xff] }
 0x1a0   :  { %3681 = vmatprep.subr.bf16.mxu0 %v3680_v11  ;;  %v1183_v11 = vld [vmem:[%s8080_s24 + $0x700] sm:$0xff] }
 0x1a1   :  { %v3690_v4 = vpack.c.bf16 %v1185_v1, %v1183_v11  ;;  %v1193_v11 = vld [vmem:[%s8080_s24 + $0x750] sm:$0xff]  ;;  %v1196_v1 = vld [vmem:[%s8080_s24 + $0x768] sm:$0xff] }
 0x1a3   :  { %3683 = vmatpush1.bf16.msra.mxu0 %v3682_v8  ;;  %v3692_v8 = vpack.c.bf16 %v1190_v2, %v1188_v3  ;;  %v1198_v3 = vld [vmem:[%s8080_s24 + $0x778] sm:$0xff] }
 0x1a4   :  { %3685 = vmatprep.subr.bf16.mxu0 %v3684_v9  ;;  %v1187_v9 = vld [vmem:[%s8080_s24 + $0x720] sm:$0xff] }
 0x1a5   :  { %v3694_v7 = vpack.c.bf16 %v1189_v6, %v1187_v9  ;;  %v1197_v9 = vld [vmem:[%s8080_s24 + $0x770] sm:$0xff]  ;;  %v1200_v6 = vld [vmem:[%s8080_s24 + $0x788] sm:$0xff] }
 0x1a7   :  { %3687 = vmatpush1.bf16.msra.mxu0 %v3686_v5  ;;  %v3696_v5 = vpack.c.bf16 %v1194_v0, %v1192_v15  ;;  %v1202_v15 = vld [vmem:[%s8080_s24 + $0x798] sm:$0xff] }
 0x1a8   :  { %3689 = vmatprep.subr.bf16.mxu0 %v3688_v10  ;;  %v1191_v10 = vld [vmem:[%s8080_s24 + $0x740] sm:$0xff] }
 0x1a9   :  { %v3698_v2 = vpack.c.bf16 %v1193_v11, %v1191_v10  ;;  %v1201_v10 = vld [vmem:[%s8080_s24 + $0x790] sm:$0xff]  ;;  %v1204_v11 = vld [vmem:[%s8080_s24 + $0x7a8] sm:$0xff] }
 0x1ab   :  { %3691 = vmatpush1.bf16.msra.mxu0 %v3690_v4  ;;  %v3700_v4 = vpack.c.bf16 %v1198_v3, %v1196_v1  ;;  %v1206_v1 = vld [vmem:[%s8080_s24 + $0x7b8] sm:$0xff] }
 0x1ac   :  { %3693 = vmatprep.subr.bf16.mxu0 %v3692_v8  ;;  %v1195_v8 = vld [vmem:[%s8080_s24 + $0x760] sm:$0xff] }
 0x1ad   :  { %v3702_v0 = vpack.c.bf16 %v1197_v9, %v1195_v8  ;;  %v1205_v8 = vld [vmem:[%s8080_s24 + $0x7b0] sm:$0xff]  ;;  %v1208_v9 = vld [vmem:[%s8080_s24 + $0x7c8] sm:$0xff] }
 0x1af   :  { %3695 = vmatpush1.bf16.msra.mxu0 %v3694_v7  ;;  %v3704_v7 = vpack.c.bf16 %v1202_v15, %v1200_v6  ;;  %v1210_v6 = vld [vmem:[%s8080_s24 + $0x7d8] sm:$0xff] }
 0x1b0   :  { %3697 = vmatprep.subr.bf16.mxu0 %v3696_v5  ;;  %v1199_v5 = vld [vmem:[%s8080_s24 + $0x780] sm:$0xff] }
 0x1b1   :  { %v3706_v3 = vpack.c.bf16 %v1201_v10, %v1199_v5  ;;  %v1209_v5 = vld [vmem:[%s8080_s24 + $0x7d0] sm:$0xff]  ;;  %v1212_v10 = vld [vmem:[%s8080_s24 + $0x7e8] sm:$0xff] }
 0x1b3   :  { %3699 = vmatpush1.bf16.msra.mxu0 %v3698_v2  ;;  %v3708_v2 = vpack.c.bf16 %v1206_v1, %v1204_v11  ;;  %v1214_v11 = vld [vmem:[%s8080_s24 + $0x7f8] sm:$0xff] }
 0x1b4   :  { %3701 = vmatprep.subr.bf16.mxu0 %v3700_v4  ;;  %v1203_v4 = vld [vmem:[%s8080_s24 + $0x7a0] sm:$0xff] }
 0x1b5   :  { %v3710_v15 = vpack.c.bf16 %v1205_v8, %v1203_v4  ;;  %v1213_v4 = vld [vmem:[%s8080_s24 + $0x7f0] sm:$0xff]  ;;  %v1216_v8 = vld [vmem:[%s8080_s24 + $0x808] sm:$0xff] }
 0x1b7   :  { %3703 = vmatpush1.bf16.msra.mxu0 %v3702_v0  ;;  %v3712_v0 = vpack.c.bf16 %v1210_v6, %v1208_v9  ;;  %v1218_v9 = vld [vmem:[%s8080_s24 + $0x818] sm:$0xff] }
 0x1b8   :  { %3705 = vmatprep.subr.bf16.mxu0 %v3704_v7  ;;  %v1207_v7 = vld [vmem:[%s8080_s24 + $0x7c0] sm:$0xff] }
 0x1b9   :  { %v3714_v1 = vpack.c.bf16 %v1209_v5, %v1207_v7  ;;  %v1217_v7 = vld [vmem:[%s8080_s24 + $0x810] sm:$0xff]  ;;  %v1220_v5 = vld [vmem:[%s8080_s24 + $0x828] sm:$0xff] }
 0x1bb   :  { %3707 = vmatpush1.bf16.msra.mxu0 %v3706_v3  ;;  %v3716_v3 = vpack.c.bf16 %v1214_v11, %v1212_v10  ;;  %v1222_v10 = vld [vmem:[%s8080_s24 + $0x838] sm:$0xff]  ;;  %v947_v11 = vld [vmem:[%s8081_s0 + $0x30] sm:$0xff] }
 0x1bc   :  { %3709 = vmatprep.subr.bf16.mxu0 %v3708_v2  ;;  %v1211_v2 = vld [vmem:[%s8080_s24 + $0x7e0] sm:$0xff] }
 0x1bd   :  { %v3718_v6 = vpack.c.bf16 %v1213_v4, %v1211_v2  ;;  %v1219_v2 = vld [vmem:[%s8080_s24 + $0x820] sm:$0xff]  ;;  %v1221_v4 = vld [vmem:[%s8080_s24 + $0x830] sm:$0xff] }
 0x1bf   :  { %3711 = vmatpush1.bf16.msra.mxu0 %v3710_v15  ;;  %v3720_v15 = vpack.c.bf16 %v1218_v9, %v1216_v8  ;;  %v957_v8 = vld [vmem:[%s8081_s0 + $0x80] sm:$0xff]  ;;  %v1224_v9 = vld [vmem:[%s8080_s24 + $0x848] sm:$0xff] }
 0x1c0   :  { %3713 = vmatprep.subr.bf16.mxu0 %v3712_v0  ;;  %v1215_v0 = vld [vmem:[%s8080_s24 + $0x800] sm:$0xff] }
 0x1c3   :  { %3715 = vmatpush1.bf16.msra.mxu0 %v3714_v1  ;;  %v3722_v1 = vpack.c.bf16 %v1217_v7, %v1215_v0  ;;  %v956_v0 = vld [vmem:[%s8081_s0 + $0x78] sm:$0xff] }
 0x1c4   :  { %3717 = vmatprep.subr.bf16.mxu0 %v3716_v3  ;;  %v3724_v3 = vpack.c.bf16 %v1222_v10, %v1220_v5  ;;  %v1223_v5 = vld [vmem:[%s8080_s24 + $0x840] sm:$0xff]  ;;  %v1225_v10 = vld [vmem:[%s8080_s24 + $0x850] sm:$0xff] }
 0x1c7   :  { %3719 = vmatpush1.bf16.msra.mxu0 %v3718_v6  ;;  %v1226_v6 = vld [vmem:[%s8080_s24 + $0x858] sm:$0xff] }
 0x1c8   :  { %3721 = vmatprep.subr.bf16.mxu0 %v3720_v15  ;;  %v3726_v15 = vpack.c.bf16 %v1221_v4, %v1219_v2  ;;  %v3728_v7 = vpack.c.bf16 %v1226_v6, %v1224_v9  ;;  %v7722_v2 = vmov 0.0   ;;  %v1229_v9 = vld [vmem:[%s8080_s24 + $0x870] sm:$0xff]  ;;  %v1232_v6 = vld [vmem:[%s8080_s24 + $0x888] sm:$0xff] }
 0x1ca   :  { %1555 = vmatmul.mubr.f32.vlgmr.msra.gmra.mrb[0].mxu0 %v947_v11  ;;  %v1228_v11 = vld [vmem:[%s8080_s24 + $0x868] sm:$0xff] }
 0x1cb   :  { %3723 = vmatpush1.bf16.msra.mxu0 %v3722_v1  ;;  %1560 = vmatprep.mubr.f32.mxu0 %v957_v8  ;;  %v1230_v1 = vld [vmem:[%s8080_s24 + $0x878] sm:$0xff]  ;;  %v1227_v8 = vld [vmem:[%s8080_s24 + $0x860] sm:$0xff] }
 0x1cc   :  { %3725 = vmatprep.subr.bf16.mxu0 %v3724_v3  ;;  %v3730_v3 = vpack.c.bf16 %v1225_v10, %v1223_v5  ;;  %v3732_v4 = vpack.c.bf16 %v1230_v1, %v1228_v11  ;;  %v1231_v5 = vld [vmem:[%s8080_s24 + $0x880] sm:$0xff]  ;;  %v1233_v10 = vld [vmem:[%s8080_s24 + $0x890] sm:$0xff]  ;;  %v1236_v11 = vld [vmem:[%s8080_s24 + $0x8a8] sm:$0xff] }
 0x1cd   :  { %v1238_v1 = vld [vmem:[%s8080_s24 + $0x8b8] sm:$0xff] }
 0x1ce   :  { %1561 = vmatmul.mubr.f32.gmra.mrb[2].mxu0 %v956_v0  ;;  %v3734_v0 = vpack.c.bf16 %v1229_v9, %v1227_v8  ;;  %v1235_v8 = vld [vmem:[%s8080_s24 + $0x8a0] sm:$0xff]  ;;  %v1237_v9 = vld [vmem:[%s8080_s24 + $0x8b0] sm:$0xff] }
 0x1cf   :  { %3727 = vmatpush1.bf16.msra.mxu0 %v3726_v15  ;;  %1631 = vmatprep.mubr.f32.mxu0 %v7722_v2  ;;  %v1234_v15 = vld [vmem:[%s8080_s24 + $0x898] sm:$0xff] }
 0x1d0   :  { %3729 = vmatprep.subr.bf16.mxu0 %v3728_v7  ;;  %v3736_v7 = vpack.c.bf16 %v1234_v15, %v1232_v6  ;;  %v1240_v6 = vld [vmem:[%s8080_s24 + $0x8c8] sm:$0xff]  ;;  %v1242_v15 = vld [vmem:[%s8080_s24 + $0x8d8] sm:$0xff] }
 0x1d3   :  { %3731 = vmatpush1.bf16.msra.mxu0 %v3730_v3  ;;  %v3738_v3 = vpack.c.bf16 %v1233_v10, %v1231_v5  ;;  %v1239_v5 = vld [vmem:[%s8080_s24 + $0x8c0] sm:$0xff]  ;;  %v1241_v10 = vld [vmem:[%s8080_s24 + $0x8d0] sm:$0xff] }
 0x1d4   :  { %3733 = vmatprep.subr.bf16.mxu0 %v3732_v4  ;;  %v3740_v4 = vpack.c.bf16 %v1238_v1, %v1236_v11  ;;  %v1244_v11 = vld [vmem:[%s8080_s24 + $0x8e8] sm:$0xff]  ;;  %v1246_v1 = vld [vmem:[%s8080_s24 + $0x8f8] sm:$0xff] }
 0x1d7   :  { %3735 = vmatpush1.bf16.msra.mxu0 %v3734_v0  ;;  %v3742_v0 = vpack.c.bf16 %v1237_v9, %v1235_v8  ;;  %v1243_v8 = vld [vmem:[%s8080_s24 + $0x8e0] sm:$0xff]  ;;  %v1245_v9 = vld [vmem:[%s8080_s24 + $0x8f0] sm:$0xff] }
 0x1d8   :  { %3737 = vmatprep.subr.bf16.mxu0 %v3736_v7  ;;  %v3744_v7 = vpack.c.bf16 %v1242_v15, %v1240_v6  ;;  %v3750_v6 = vpack.c.bf16 %v1245_v9, %v1243_v8  ;;  %v949_v15 = vld [vmem:[%s8081_s0 + $0x40] sm:$0xff] }
 0x1db   :  { %3739 = vmatpush1.bf16.msra.mxu0 %v3738_v3  ;;  %v3746_v3 = vpack.c.bf16 %v1241_v10, %v1239_v5 }
 0x1dc   :  { %3741 = vmatprep.subr.bf16.mxu0 %v3740_v4  ;;  %v3748_v4 = vpack.c.bf16 %v1246_v1, %v1244_v11  ;;  %v1247_v11 = vld [vmem:[%s7704_s2] sm:$0x3]  ;;  %s4210_s2 = smov 32  }
 0x1df   :  { %3743 = vmatpush1.bf16.msra.mxu0 %v3742_v0  ;;  %v958_v0 = vld [vmem:[%s8081_s0 + $0x88] sm:$0xff]  ;;  %s4211_s0 = smov 64  }
 0x1e0   :  { %3745 = vmatprep.subr.bf16.mxu0 %v3744_v7  ;;  %v1249_v7 = vlaneseq }
 0x1e2   :  { %v7145_v5 = vshrl.u32 %v1249_v7, 7 }
 0x1e3   :  { %3747 = vmatpush1.bf16.msra.mxu0 %v3746_v3 }
 0x1e4   :  { %3749 = vmatprep.subr.bf16.mxu0 %v3748_v4  ;;  %v7148_v10 = vsub.s32 0, %v7145_v5  ;;  %v7154_v1 = vsub.s32 1, %v7145_v5 }
 0x1e6   :  { %v1252_v3 = vrot.slane %v1247_v11, %v7148_v10  ;;  %v1256_v8 = vrot.slane %v1247_v11, %v7154_v1 }
 0x1e7   :  { %3751 = vmatpush1.bf16.msra.mxu0 %v3750_v6 }
 0x1ea   :  { %1632 = vmatmul.mubr.f32.vlgmr.msra.gmra.mrb[0].mxu0 %v949_v15 }
 0x1eb   :  { %1637 = vmatprep.mubr.f32.mxu0 %v7722_v2 }
 0x1ee   :  { %1638 = vmatmul.mubr.f32.gmra.mrb[2].mxu0 %v958_v0 }
 0x2bd   :  { %v1633_v4 = vpop.f32.mrb[0].mxu0 }
 0x2be   :  { %v1635_v9 = vpop.f32.mrb[1].mxu0  ;;  %v7158_v6 = vadd.f32 %v1633_v4, %v1252_v3 }
 0x2bf   :  { %v7160_v15 = vadd.f32 %v1635_v9, %v1256_v8 }
 0x2c0   :  { %v1660_v12 = vmul.f32 %v7158_v6, %v7158_v6 }
 0x2c1   :  { %v1639_v0 = vpop.f32.mrb[2].mxu0  ;;  %v1661_v4 = vmul.f32 %v7160_v15, %v7160_v15 }
 0x2c2   :  { %v7162_v2 = vadd.f32 %v1639_v0, %v1252_v3  ;;  %v1641_v14 = vpop.f32.mrb[3].mxu0 }
 0x2c3   :  { %v7164_v13 = vadd.f32 %v1641_v14, %v1256_v8 }
 0x2c4   :  { %v1646_v19 = vadd.f32 %v7162_v2, %v7158_v6  ;;  %v1662_v11 = vmul.f32 %v7162_v2, %v7162_v2 }
 0x2c5   :  { %v1653_v9 = vadd.f32 %v7164_v13, %v7160_v15  ;;  %v1663_v3 = vmul.f32 %v7164_v13, %v7164_v13 }
 0x2c6   :  { %v1647_v14 = vrot.slane %v1646_v19, 4  ;;  %v1664_v8 = vadd.f32 %v1662_v11, %v1660_v12 }
 0x2c7   :  { %v1654_v0 = vrot.slane %v1653_v9, 4  ;;  %v1671_v18 = vadd.f32 %v1663_v3, %v1661_v4 }
 0x2c8   :  { %v1648_v17 = vadd.f32 %v1647_v14, %v1646_v19  ;;  %v1665_v16 = vrot.slane %v1664_v8, 4 }
 0x2c9   :  { %v1655_v23 = vadd.f32 %v1654_v0, %v1653_v9  ;;  %v1672_v22 = vrot.slane %v1671_v18, 4 }
 0x2ca   :  { %v1649_v21 = vrot.slane %v1648_v17, 2  ;;  %v1666_v20 = vadd.f32 %v1665_v16, %v1664_v8 }
 0x2cb   :  { %v1656_v27 = vrot.slane %v1655_v23, 2  ;;  %v1673_v26 = vadd.f32 %v1672_v22, %v1671_v18  ;;  %v7180_v18 = vand.u32 127, %v1249_v7 }
 0x2cc   :  { %v1650_v25 = vadd.f32 %v1649_v21, %v1648_v17  ;;  %v1667_v24 = vrot.slane %v1666_v20, 2 }
 0x2cd   :  { %v1674_v31 = vrot.slane %v1673_v26, 2  ;;  %v1657_v28 = vadd.f32 %v1656_v27, %v1655_v23  ;;  %vm1687_vm1 = vcmp.lt.s32.totalorder %v7180_v18, 32  ;;  %vm1696_vm2 = vcmp.lt.s32.totalorder %v7180_v18, 64 }
 0x2ce   :  { %v1651_v30 = vrot.slane %v1650_v25, 1  ;;  %v1668_v29 = vadd.f32 %v1667_v24, %v1666_v20 }
 0x2cf   :  { %v1675_v35 = vadd.f32 %v1674_v31, %v1673_v26  ;;  %v1658_v19 = vrot.slane %v1657_v28, 1 }
 0x2d0   :  { %v1669_v34 = vrot.slane %v1668_v29, 1  ;;  %v1652_v11 = vadd.f32 %v1651_v30, %v1650_v25 }
 0x2d1   :  { %v1676_v12 = vrot.slane %v1675_v35, 1  ;;  %v1659_v16 = vadd.f32 %v1658_v19, %v1657_v28 }
 0x2d2   :  { %v1670_v4 = vadd.f32 %v1669_v34, %v1668_v29 }
 0x2d3   :  { %v1677_v3 = vadd.f32 %v1676_v12, %v1675_v35 }
 0x2d4   :  { %v1679_v9 = vsel %vm1678_vm0, %v1652_v11, %v1670_v4  ;;  %v1644_v11 = vld [vmem:[%s7705_s3] sm:$0x3] }
 0x2d5   :  { %1681 = vrot.lane.b32.xlu0 %v1679_v9, %s4210_s2  ;;  %v1680_v17 = vsel %vm1678_vm0, %v1659_v16, %v1677_v3  ;;  %v1645_v4 = vld [vmem:[%s7706_s4] sm:$0x3]  ;;  %v4212_v3 = vmov 1983009808  }
 0x2d6   :  { %v1767_v16 = vunpack.c.l.s4 %v4212_v3 }
 0x2d9   :  { %1683 = vrot.lane.b32.xlu0 %v1680_v17, %s4210_s2 }
 0x347   :  { %v1682_v20 = vpop.permute.xlu0 %1681 }
 0x34b   :  { %v1684_v21 = vpop.permute.xlu0 %1683 }
 0x34c   :  { %v1689_v22 = vsel %vm1687_vm1, %v1684_v21, %v1682_v20  ;;  %v1688_v24 = vsel %vm1687_vm1, %v1682_v20, %v1684_v21 }
 0x34d   :  { %v1690_v23 = vadd.f32 %v1689_v22, %v1679_v9  ;;  %v1691_v25 = vadd.f32 %v1688_v24, %v1680_v17  ;;  %v1730_v9 = vrot.slane %v1644_v11, %v7148_v10  ;;  %v1734_v17 = vrot.slane %v1644_v11, %v7154_v1 }
 0x34f   :  { %1692 = vrot.lane.b32.xlu1 %v1690_v23, %s4211_s0 }
 0x353   :  { %1694 = vrot.lane.b32.xlu1 %v1691_v25, %s4211_s0 }
 0x3c1   :  { %v1693_v26 = vpop.permute.xlu1 %1692 }
 0x3c5   :  { %v1695_v27 = vpop.permute.xlu1 %1694 }
 0x3c6   :  { %v1697_v28 = vsel %vm1696_vm2, %v1693_v26, %v1695_v27  ;;  %v1698_v29 = vsel %vm1696_vm2, %v1695_v27, %v1693_v26  ;;  %v1749_v26 = vrot.slane %v1645_v4, %v7154_v1 }
 0x3c7   :  { %v1699_v30 = vadd.f32 %v1698_v29, %v1690_v23  ;;  %v1700_v31 = vadd.f32 %v1697_v28, %v1691_v25  ;;  %v1745_v25 = vrot.slane %v1645_v4, %v7148_v10 }
 0x3c9   :  { %v1701_v34 = vadd.f32 %v1700_v31, %v1699_v30  ;;  %v1768_v31 = vunpack.c.0.s8 %v1767_v16 }
 0x3cb   :  { %v1702_v35 = vmul.f32 0.0078125, %v1701_v34 }
 0x3cd   :  { %v1703_v7 = vmul.f32 %v1702_v35, %v1702_v35  ;;  %v1711_v12 = vrot.slane %v1702_v35, %v7148_v10 }
 0x3cf   :  { %v1705_v14 = vrot.slane %v1703_v7, 7  ;;  %v1712_v20 = vsub.f32 %v7158_v6, %v1711_v12  ;;  %v1713_v21 = vsub.f32 %v7160_v15, %v1711_v12  ;;  %v1714_v22 = vsub.f32 %v7162_v2, %v1711_v12 }
 0x3d0   :  { %v1715_v23 = vsub.f32 %v7164_v13, %v1711_v12  ;;  %v7207_v13 = vsub.s32 %v1768_v31, %v7145_v5 }
 0x3d1   :  { %v1707_v8 = vsub.f32 %v1702_v35, %v1705_v14 }
 0x3d3   :  { %v1716_v0 = vadd.f32 1e-05, %v1707_v8 }
 0x3d5   :  { %4168 = vrsqrt.f32 %v1716_v0 }
 0x3df   :  { %v4169_v19 = vpop.eup %4168 }
 0x3e0   :  { %v1721_v24 = vrot.slane %v4169_v19, %v7154_v1 }
 0x3e2   :  { %v1722_v27 = vmul.f32 %v1721_v24, %v1712_v20  ;;  %v1723_v28 = vmul.f32 %v1721_v24, %v1713_v21  ;;  %v1724_v29 = vmul.f32 %v1721_v24, %v1714_v22  ;;  %v1725_v30 = vmul.f32 %v1721_v24, %v1715_v23 }
 0x3e4   :  { %v1737_v34 = vmul.f32 %v1730_v9, %v1722_v27  ;;  %v1738_v35 = vmul.f32 %v1734_v17, %v1723_v28  ;;  %v1739_v6 = vmul.f32 %v1730_v9, %v1724_v29  ;;  %v1740_v7 = vmul.f32 %v1734_v17, %v1725_v30 }
 0x3e5   :  { %v3752_v27 = vpack.c.bf16 %v4643_v62, %v4633_v60  ;;  %v3754_v28 = vpack.c.bf16 %v4638_v61, %v4628_v58  ;;  %v3756_v29 = vpack.c.bf16 %v4663_v57, %v4653_v56 }
 0x3e6   :  { %v1752_v15 = vadd.f32 %v1745_v25, %v1737_v34  ;;  %v1753_v14 = vadd.f32 %v1749_v26, %v1738_v35  ;;  %v1754_v2 = vadd.f32 %v1745_v25, %v1739_v6  ;;  %v1755_v8 = vadd.f32 %v1749_v26, %v1740_v7 }
 0x3e8   :  { %v1756_v0 = vmax.f32 %v1752_v15, 0.0  ;;  %v1757_v12 = vmax.f32 %v1753_v14, 0.0  ;;  %v1758_v11 = vmax.f32 %v1754_v2, 0.0  ;;  %v1759_v4 = vmax.f32 %v1755_v8, 0.0 }
 0x3ea   :  { %v1764_v19 = vcombine.low %v1756_v0, %v1757_v12  ;;  %v1765_v3 = vcombine.high %v1756_v0, %v1757_v12  ;;  %v1782_v20 = vcombine.low %v1758_v11, %v1759_v4  ;;  %v1783_v21 = vcombine.high %v1758_v11, %v1759_v4 }
 0x3ec   :  { %v1772_v16 = vrot.slane %v1764_v19, %v7207_v13  ;;  %v1779_v9 = vrot.slane %v1765_v3, %v7207_v13  ;;  %v1790_v17 = vrot.slane %v1782_v20, %v7207_v13  ;;  %v1797_v22 = vrot.slane %v1783_v21, %v7207_v13  ;;  %3338 = vst.sshfl [vmem:[#allocation2] sm:$0x33 pattern:$0x76325410] %v1764_v19 }
 0x3ed   :  { %3339 = vst.sshfl [vmem:[#allocation2 + $0x8] sm:$0x33 pattern:$0x76325410] %v1765_v3 }
 0x3ee   :  { %3340 = vst.sshfl [vmem:[#allocation2 + $0x10] sm:$0x33 pattern:$0x76325410] %v1782_v20  ;;  %v1780_v23 = vcombine.high %v1772_v16, %v1772_v16  ;;  %v1781_v24 = vcombine.high %v1779_v9, %v1779_v9  ;;  %v1798_v25 = vcombine.high %v1790_v17, %v1790_v17  ;;  %v1799_v26 = vcombine.high %v1797_v22, %v1797_v22 }
 0x3ef   :  { %3341 = vst.sshfl [vmem:[#allocation2 + $0x18] sm:$0x33 pattern:$0x76325410] %v1783_v21 }
 0x3f0   :  { %1809 = vst [vmem:[#allocation2 + $0x4] sm:$0xf] %v1780_v23  ;;  %1811 = vst [vmem:[#allocation2 + $0xc] sm:$0xf] %v1781_v24 }
 0x3f1   :  { %1813 = vst [vmem:[#allocation2 + $0x14] sm:$0xf] %v1798_v25  ;;  %1815 = vst [vmem:[#allocation2 + $0x1c] sm:$0xf] %v1799_v26 }
 0x3f2   :  { %4201 = dma.done.wait [#allocation7], 32768 }
 0x3f3   :  { %4202 = vsyncadd [#allocation7], 4294934528  ;;  %3753 = vmatprep.subr.bf16.mxu1 %v3752_v27  ;;  %v3758_v30 = vpack.c.bf16 %v4658_v59, %v4648_v63  ;;  %v3760_v31 = vpack.c.bf16 %v4683_v53, %v4673_v52  ;;  %v3762_v60 = vpack.c.bf16 %v4678_v55, %v4668_v54  ;;  %v3764_v56 = vpack.c.bf16 %v4703_v49, %v4693_v48  ;;  %v8085_v54 = vld [vmem:[#allocation86_spill] sm:$0xff]  ;;  %v8087_v55 = vld [vmem:[#allocation85_spill] sm:$0xff] }
 0x3f4   :  { %3755 = vmatpush1.bf16.msra.mxu1 %v3754_v28  ;;  %v3766_v59 = vpack.c.bf16 %v4698_v51, %v4688_v50  ;;  %v3768_v53 = vpack.c.bf16 %v4723_v45, %v4713_v44  ;;  %v3770_v48 = vpack.c.bf16 %v4718_v47, %v4708_v46  ;;  %v3772_v49 = vpack.c.bf16 %v4743_v41, %v4733_v40  ;;  %v8082_v46 = vld [vmem:[#allocation81_spill] sm:$0xff]  ;;  %v8083_v47 = vld [vmem:[#allocation82_spill] sm:$0xff]  ;;  %v8084_v41 = vld [vmem:[#allocation84_spill] sm:$0xff] }
 0x3f5   :  { %3757 = vmatprep.subr.bf16.mxu1 %v3756_v29  ;;  %v3774_v50 = vpack.c.bf16 %v4738_v43, %v4728_v42  ;;  %v3776_v51 = vpack.c.bf16 %v4763_v37, %v4753_v36  ;;  %v3778_v44 = vpack.c.bf16 %v4758_v39, %v4748_v38  ;;  %v3780_v45 = vpack.c.bf16 %v4783_v33, %v4773_v32  ;;  %v8086_v43 = vld [vmem:[#allocation83_spill] sm:$0xff]  ;;  %v8088_v37 = vld [vmem:[#allocation88_spill] sm:$0xff]  ;;  %v8089_v61 = vld [vmem:[#allocation90_spill] sm:$0xff] }
 0x3f6   :  { %v3782_v40 = vpack.c.bf16 %v8083_v47, %v8082_v46  ;;  %v3784_v42 = vpack.c.bf16 %v8085_v54, %v8084_v41  ;;  %v3786_v36 = vpack.c.bf16 %v8087_v55, %v8086_v43  ;;  %v3788_v38 = vpack.c.bf16 %v8089_v61, %v8088_v37  ;;  %v8090_v39 = vld [vmem:[#allocation87_spill] sm:$0xff]  ;;  %v8091_v63 = vld [vmem:[#allocation89_spill] sm:$0xff]  ;;  %v8092_v33 = vld [vmem:[#allocation92_spill] sm:$0xff] }
 0x3f7   :  { %v4170_v62 = vld [vmem:[#allocation2 + $0x4] ss:$8 sps:$4 sm:$0xff]   ;;  %v3790_v32 = vpack.c.bf16 %v8091_v63, %v8090_v39  ;;  %v8093_v34 = vld [vmem:[#allocation94_spill] sm:$0xff]  ;;  %v8095_v7 = vld [vmem:[#allocation93_spill] sm:$0xff]  ;;  %vm2487_vm3 = vcmask 1045504  }
 0x3f8   :  { %3759 = vmatpush1.bf16.msra.mxu1 %v3758_v30  ;;  %v7227_v57 = vld.sshfl [vmem:[#allocation2 + $0x14] sm:$0x33 pattern:$0x76325410]  ;;  %v7230_v58 = vrot.slane %v4170_v62, %v7207_v13  ;;  %v3792_v35 = vpack.c.bf16 %v8093_v34, %v8092_v33  ;;  %v8094_v6 = vld [vmem:[#allocation91_spill] sm:$0xff]  ;;  %v8096_v14 = vld [vmem:[#allocation96_spill] sm:$0xff] }
 0x3f9   :  { %3761 = vmatprep.subr.bf16.mxu1 %v3760_v31  ;;  %v3794_v15 = vpack.c.bf16 %v8095_v7, %v8094_v6  ;;  %v8097_v2 = vld [vmem:[#allocation98_spill] sm:$0xff]  ;;  %v8098_v0 = vld [vmem:[#allocation95_spill] sm:$0xff]  ;;  %v8099_v12 = vld [vmem:[#allocation97_spill] sm:$0xff] }
 0x3fa   :  { %v1976_v52 = vcombine.high %v7230_v58, %v7227_v57  ;;  %v3796_v8 = vpack.c.bf16 %v8097_v2, %v8096_v14  ;;  %v3798_v11 = vpack.c.bf16 %v8099_v12, %v8098_v0  ;;  %v8100_v4 = vld [vmem:[#allocation100_spill] sm:$0xff]  ;;  %v8101_v19 = vld [vmem:[#allocation102_spill] sm:$0xff]  ;;  %v8102_v20 = vld [vmem:[#allocation99_spill] sm:$0xff]  ;;  %v1975_v46 = vcombine.low %v7230_v58, %v7227_v57 }
 0x3fb   :  { %v3800_v3 = vpack.c.bf16 %v8101_v19, %v8100_v4  ;;  %v8103_v21 = vld [vmem:[#allocation101_spill] sm:$0xff]  ;;  %v8104_v9 = vld [vmem:[#allocation104_spill] sm:$0xff]  ;;  %v8105_v17 = vld [vmem:[#allocation106_spill] sm:$0xff] }
 0x3fc   :  { %3763 = vmatpush1.bf16.msra.mxu1 %v3762_v60  ;;  %2043 = vmatprep.mubr.f32.mxu1 %v1976_v52  ;;  %v3802_v16 = vpack.c.bf16 %v8103_v21, %v8102_v20  ;;  %v3804_v22 = vpack.c.bf16 %v8105_v17, %v8104_v9  ;;  %v8106_v23 = vld [vmem:[#allocation103_spill] sm:$0xff]  ;;  %v8107_v24 = vld [vmem:[#allocation105_spill] sm:$0xff]  ;;  %v8108_v26 = vld [vmem:[#allocation108_spill] sm:$0xff] }
 0x3fd   :  { %3765 = vmatprep.subr.bf16.mxu1 %v3764_v56  ;;  %v3806_v25 = vpack.c.bf16 %v8107_v24, %v8106_v23  ;;  %v8109_v27 = vld [vmem:[#allocation110_spill] sm:$0xff]  ;;  %v8110_v29 = vld [vmem:[#allocation107_spill] sm:$0xff]  ;;  %v8111_v30 = vld [vmem:[#allocation109_spill] sm:$0xff] }
 0x3fe   :  { %v3808_v28 = vpack.c.bf16 %v8109_v27, %v8108_v26  ;;  %v3810_v31 = vpack.c.bf16 %v8111_v30, %v8110_v29  ;;  %v4171_v60 = vld [vmem:[#allocation2] ss:$8 sps:$4 sm:$0xff]   ;;  %v8112_v62 = vld [vmem:[#allocation112_spill] sm:$0xff]  ;;  %v8118_v47 = vld [vmem:[#allocation17_spill] sm:$0xff] }
 0x3ff   :  { %v8113_v56 = vld [vmem:[#allocation114_spill] sm:$0xff]  ;;  %v8114_v52 = vld [vmem:[#allocation111_spill] sm:$0xff]  ;;  %v8121_v43 = vld [vmem:[#allocation24_spill] sm:$0xff] }
 0x400   :  { %3767 = vmatpush1.bf16.msra.mxu1 %v3766_v59  ;;  %v3812_v59 = vpack.c.bf16 %v8113_v56, %v8112_v62  ;;  %v8123_v37 = vld [vmem:[#allocation23_spill] sm:$0xff]  ;;  %v8125_v57 = vld [vmem:[#allocation28_spill] sm:$0xff]  ;;  %v8126_v39 = vld [vmem:[#allocation25_spill] sm:$0xff] }
 0x401   :  { %3769 = vmatprep.subr.bf16.mxu1 %v3768_v53  ;;  %v8115_v53 = vld [vmem:[#allocation113_spill] sm:$0xff]  ;;  %v8127_v63 = vld [vmem:[#allocation27_spill] sm:$0xff]  ;;  %v8128_v33 = vld [vmem:[#allocation30_spill] sm:$0xff] }
 0x402   :  { %v8129_v34 = vld [vmem:[#allocation32_spill] sm:$0xff]  ;;  %v8130_v6 = vld [vmem:[#allocation29_spill] sm:$0xff]  ;;  %v8131_v7 = vld [vmem:[#allocation31_spill] sm:$0xff] }
 0x403   :  { %v8132_v14 = vld [vmem:[#allocation34_spill] sm:$0xff]  ;;  %v8133_v2 = vld [vmem:[#allocation36_spill] sm:$0xff]  ;;  %v8134_v0 = vld [vmem:[#allocation33_spill] sm:$0xff] }
 0x404   :  { %3771 = vmatpush1.bf16.msra.mxu1 %v3770_v48  ;;  %v3814_v48 = vpack.c.bf16 %v8115_v53, %v8114_v52  ;;  %v8135_v12 = vld [vmem:[#allocation35_spill] sm:$0xff]  ;;  %v8136_v4 = vld [vmem:[#allocation38_spill] sm:$0xff]  ;;  %v8137_v19 = vld [vmem:[#allocation40_spill] sm:$0xff] }
 0x405   :  { %3773 = vmatprep.subr.bf16.mxu1 %v3772_v49  ;;  %v7285_v49 = vrot.slane %v4171_v60, %v7207_v13  ;;  %v8138_v20 = vld [vmem:[#allocation37_spill] sm:$0xff]  ;;  %v8139_v21 = vld [vmem:[#allocation39_spill] sm:$0xff]  ;;  %v8140_v9 = vld [vmem:[#allocation42_spill] sm:$0xff] }
 0x406   :  { %v8141_v17 = vld [vmem:[#allocation44_spill] sm:$0xff]  ;;  %v8142_v23 = vld [vmem:[#allocation41_spill] sm:$0xff]  ;;  %v8143_v24 = vld [vmem:[#allocation43_spill] sm:$0xff] }
 0x407   :  { %v8144_v26 = vld [vmem:[#allocation46_spill] sm:$0xff]  ;;  %v8145_v27 = vld [vmem:[#allocation48_spill] sm:$0xff]  ;;  %v8146_v29 = vld [vmem:[#allocation45_spill] sm:$0xff] }
 0x408   :  { %3775 = vmatpush1.bf16.msra.mxu1 %v3774_v50  ;;  %v8116_v50 = vld [vmem:[#allocation18_spill] sm:$0xff]  ;;  %v8147_v30 = vld [vmem:[#allocation47_spill] sm:$0xff]  ;;  %v8149_v62 = vld [vmem:[#allocation52_spill] sm:$0xff] }
 0x409   :  { %3777 = vmatprep.subr.bf16.mxu1 %v3776_v51  ;;  %v8117_v51 = vld [vmem:[#allocation20_spill] sm:$0xff]  ;;  %v8148_v60 = vld [vmem:[#allocation50_spill] sm:$0xff]  ;;  %v8151_v52 = vld [vmem:[#allocation51_spill] sm:$0xff] }
 0x40a   :  { %v3848_v56 = vpack.c.bf16 %v8149_v62, %v8148_v60  ;;  %v2486_v18 = vld [vmem:[%s7710_s8] sm:$0x3] }
 0x40c   :  { %3779 = vmatpush1.bf16.msra.mxu1 %v3778_v44  ;;  %v3816_v44 = vpack.c.bf16 %v8117_v51, %v8116_v50  ;;  %v8153_v50 = vld [vmem:[#allocation56_spill] sm:$0xff] }
 0x40d   :  { %3781 = vmatprep.subr.bf16.mxu1 %v3780_v45  ;;  %v7289_v45 = vld.sshfl [vmem:[#allocation2 + $0x10] sm:$0x33 pattern:$0x76325410] }
 0x40e   :  { %v2069_v54 = vcombine.high %v7285_v49, %v7289_v45 }
 0x410   :  { %3783 = vmatpush1.bf16.msra.mxu1 %v3782_v40  ;;  %v8119_v40 = vld [vmem:[#allocation19_spill] sm:$0xff] }
 0x411   :  { %3785 = vmatprep.subr.bf16.mxu1 %v3784_v42  ;;  %v3818_v41 = vpack.c.bf16 %v8119_v40, %v8118_v47  ;;  %v8120_v42 = vld [vmem:[#allocation22_spill] sm:$0xff] }
 0x412   :  { %v3820_v55 = vpack.c.bf16 %v8121_v43, %v8120_v42  ;;  %v8156_v40 = vld [vmem:[#allocation58_spill] sm:$0xff]  ;;  %v8158_v42 = vld [vmem:[#allocation57_spill] sm:$0xff]  ;;  %v8159_v43 = vld [vmem:[#allocation59_spill] sm:$0xff] }
 0x414   :  { %3787 = vmatpush1.bf16.msra.mxu1 %v3786_v36  ;;  %v8122_v36 = vld [vmem:[#allocation21_spill] sm:$0xff] }
 0x415   :  { %3789 = vmatprep.subr.bf16.mxu1 %v3788_v38  ;;  %v3822_v61 = vpack.c.bf16 %v8123_v37, %v8122_v36  ;;  %v8124_v38 = vld [vmem:[#allocation26_spill] sm:$0xff]  ;;  %v8161_v37 = vld [vmem:[#allocation64_spill] sm:$0xff] }
 0x416   :  { %v3824_v58 = vpack.c.bf16 %v8125_v57, %v8124_v38  ;;  %v8160_v36 = vld [vmem:[#allocation62_spill] sm:$0xff]  ;;  %v8162_v38 = vld [vmem:[#allocation61_spill] sm:$0xff]  ;;  %v8163_v57 = vld [vmem:[#allocation63_spill] sm:$0xff] }
 0x418   :  { %3791 = vmatpush1.bf16.msra.mxu1 %v3790_v32  ;;  %v3826_v32 = vpack.c.bf16 %v8127_v63, %v8126_v39  ;;  %v8164_v39 = vld [vmem:[#allocation66_spill] sm:$0xff]  ;;  %v8165_v63 = vld [vmem:[#allocation68_spill] sm:$0xff] }
 0x419   :  { %3793 = vmatprep.subr.bf16.mxu1 %v3792_v35  ;;  %v3828_v35 = vpack.c.bf16 %v8129_v34, %v8128_v33  ;;  %v8166_v33 = vld [vmem:[#allocation65_spill] sm:$0xff]  ;;  %v8167_v34 = vld [vmem:[#allocation67_spill] sm:$0xff] }
 0x41c   :  { %3795 = vmatpush1.bf16.msra.mxu1 %v3794_v15  ;;  %v3830_v15 = vpack.c.bf16 %v8131_v7, %v8130_v6  ;;  %v8168_v6 = vld [vmem:[#allocation70_spill] sm:$0xff]  ;;  %v8169_v7 = vld [vmem:[#allocation72_spill] sm:$0xff] }
 0x41d   :  { %3797 = vmatprep.subr.bf16.mxu1 %v3796_v8  ;;  %v3832_v8 = vpack.c.bf16 %v8133_v2, %v8132_v14  ;;  %v8170_v14 = vld [vmem:[#allocation69_spill] sm:$0xff]  ;;  %v8171_v2 = vld [vmem:[#allocation71_spill] sm:$0xff] }
 0x420   :  { %3799 = vmatpush1.bf16.msra.mxu1 %v3798_v11  ;;  %v3834_v11 = vpack.c.bf16 %v8135_v12, %v8134_v0  ;;  %v8172_v0 = vld [vmem:[#allocation74_spill] sm:$0xff]  ;;  %v8173_v12 = vld [vmem:[#allocation76_spill] sm:$0xff] }
 0x421   :  { %3801 = vmatprep.subr.bf16.mxu1 %v3800_v3  ;;  %v3836_v3 = vpack.c.bf16 %v8137_v19, %v8136_v4  ;;  %v8174_v4 = vld [vmem:[#allocation73_spill] sm:$0xff]  ;;  %v8175_v19 = vld [vmem:[#allocation75_spill] sm:$0xff] }
 0x424   :  { %3803 = vmatpush1.bf16.msra.mxu1 %v3802_v16  ;;  %v3838_v16 = vpack.c.bf16 %v8139_v21, %v8138_v20  ;;  %v4172_v20 = vld [vmem:[#allocation2 + $0x8] ss:$8 sps:$4 sm:$0xff]   ;;  %v8176_v21 = vld [vmem:[#allocation78_spill] sm:$0xff] }
 0x425   :  { %3805 = vmatprep.subr.bf16.mxu1 %v3804_v22  ;;  %v3840_v22 = vpack.c.bf16 %v8141_v17, %v8140_v9  ;;  %v8178_v17 = vld [vmem:[#allocation77_spill] sm:$0xff] }
 0x428   :  { %3807 = vmatpush1.bf16.msra.mxu1 %v3806_v25  ;;  %v3842_v25 = vpack.c.bf16 %v8143_v24, %v8142_v23  ;;  %v7358_v24 = vrot.slane %v4172_v20, %v7207_v13  ;;  %v8212_v20 = vld [vmem:[#allocation148_spill] sm:$0xff] }
 0x429   :  { %3809 = vmatprep.subr.bf16.mxu1 %v3808_v28  ;;  %v3844_v28 = vpack.c.bf16 %v8145_v27, %v8144_v26  ;;  %v8181_v26 = vld [vmem:[#allocation118_spill] sm:$0xff] }
 0x42c   :  { %3811 = vmatpush1.bf16.msra.mxu1 %v3810_v31  ;;  %v3846_v31 = vpack.c.bf16 %v8147_v30, %v8146_v29  ;;  %v2068_v29 = vcombine.low %v7285_v49, %v7289_v45  ;;  %v8182_v30 = vld [vmem:[#allocation115_spill] sm:$0xff]  ;;  %v8189_v49 = vld [vmem:[#allocation126_spill] sm:$0xff] }
 0x42d   :  { %3813 = vmatprep.subr.bf16.mxu1 %v3812_v59  ;;  %v8150_v59 = vld [vmem:[#allocation49_spill] sm:$0xff] }
 0x42e   :  { %v3850_v53 = vpack.c.bf16 %v8151_v52, %v8150_v59  ;;  %v8185_v59 = vld [vmem:[#allocation122_spill] sm:$0xff] }
 0x430   :  { %3815 = vmatpush1.bf16.msra.mxu1 %v3814_v48  ;;  %v8152_v48 = vld [vmem:[#allocation54_spill] sm:$0xff] }
 0x431   :  { %3817 = vmatprep.subr.bf16.mxu1 %v3816_v44  ;;  %v3852_v51 = vpack.c.bf16 %v8153_v50, %v8152_v48  ;;  %v8154_v44 = vld [vmem:[#allocation53_spill] sm:$0xff] }
 0x432   :  { %v8187_v48 = vld [vmem:[#allocation121_spill] sm:$0xff] }
 0x433   :  { %2044 = vmatmul.mubr.f32.vlgmr.msra.gmra.mrb[0].mxu1 %v1975_v46  ;;  %v8155_v46 = vld [vmem:[#allocation55_spill] sm:$0xff] }
 0x434   :  { %3819 = vmatpush1.bf16.msra.mxu1 %v3818_v41  ;;  %2136 = vmatprep.mubr.f32.mxu1 %v2069_v54  ;;  %v3854_v47 = vpack.c.bf16 %v8155_v46, %v8154_v44  ;;  %v8157_v41 = vld [vmem:[#allocation60_spill] sm:$0xff]  ;;  %v8190_v44 = vld [vmem:[#allocation123_spill] sm:$0xff]  ;;  %v8191_v46 = vld [vmem:[#allocation125_spill] sm:$0xff] }
 0x435   :  { %3821 = vmatprep.subr.bf16.mxu1 %v3820_v55  ;;  %v3856_v54 = vpack.c.bf16 %v8157_v41, %v8156_v40  ;;  %v3858_v55 = vpack.c.bf16 %v8159_v43, %v8158_v42  ;;  %v8192_v40 = vld [vmem:[#allocation128_spill] sm:$0xff]  ;;  %v8193_v41 = vld [vmem:[#allocation130_spill] sm:$0xff]  ;;  %v8194_v42 = vld [vmem:[#allocation127_spill] sm:$0xff] }
 0x436   :  { %v8195_v43 = vld [vmem:[#allocation129_spill] sm:$0xff] }
 0x438   :  { %3823 = vmatpush1.bf16.msra.mxu1 %v3822_v61  ;;  %v3860_v61 = vpack.c.bf16 %v8161_v37, %v8160_v36  ;;  %v8196_v36 = vld [vmem:[#allocation132_spill] sm:$0xff]  ;;  %v8197_v37 = vld [vmem:[#allocation134_spill] sm:$0xff] }
 0x439   :  { %3825 = vmatprep.subr.bf16.mxu1 %v3824_v58  ;;  %v3862_v58 = vpack.c.bf16 %v8163_v57, %v8162_v38  ;;  %v8198_v38 = vld [vmem:[#allocation131_spill] sm:$0xff]  ;;  %v8199_v57 = vld [vmem:[#allocation133_spill] sm:$0xff] }
 0x43c   :  { %3827 = vmatpush1.bf16.msra.mxu1 %v3826_v32  ;;  %v3864_v32 = vpack.c.bf16 %v8165_v63, %v8164_v39  ;;  %v8200_v39 = vld [vmem:[#allocation136_spill] sm:$0xff]  ;;  %v8201_v63 = vld [vmem:[#allocation138_spill] sm:$0xff] }
 0x43d   :  { %3829 = vmatprep.subr.bf16.mxu1 %v3828_v35  ;;  %v3866_v35 = vpack.c.bf16 %v8167_v34, %v8166_v33  ;;  %v8202_v33 = vld [vmem:[#allocation135_spill] sm:$0xff]  ;;  %v8203_v34 = vld [vmem:[#allocation137_spill] sm:$0xff] }
 0x440   :  { %3831 = vmatpush1.bf16.msra.mxu1 %v3830_v15  ;;  %v3868_v15 = vpack.c.bf16 %v8169_v7, %v8168_v6  ;;  %v8204_v6 = vld [vmem:[#allocation140_spill] sm:$0xff]  ;;  %v8205_v7 = vld [vmem:[#allocation142_spill] sm:$0xff] }
 0x441   :  { %3833 = vmatprep.subr.bf16.mxu1 %v3832_v8  ;;  %v3870_v8 = vpack.c.bf16 %v8171_v2, %v8170_v14  ;;  %v8206_v14 = vld [vmem:[#allocation139_spill] sm:$0xff]  ;;  %v8207_v2 = vld [vmem:[#allocation141_spill] sm:$0xff] }
 0x444   :  { %3835 = vmatpush1.bf16.msra.mxu1 %v3834_v11  ;;  %v3872_v11 = vpack.c.bf16 %v8173_v12, %v8172_v0  ;;  %v8208_v0 = vld [vmem:[#allocation144_spill] sm:$0xff]  ;;  %v8209_v12 = vld [vmem:[#allocation146_spill] sm:$0xff] }
 0x445   :  { %3837 = vmatprep.subr.bf16.mxu1 %v3836_v3  ;;  %v3874_v3 = vpack.c.bf16 %v8175_v19, %v8174_v4  ;;  %v8210_v4 = vld [vmem:[#allocation143_spill] sm:$0xff]  ;;  %v8211_v19 = vld [vmem:[#allocation145_spill] sm:$0xff] }
 0x448   :  { %3839 = vmatpush1.bf16.msra.mxu1 %v3838_v16  ;;  %v8177_v16 = vld [vmem:[#allocation80_spill] sm:$0xff] }
 0x449   :  { %3841 = vmatprep.subr.bf16.mxu1 %v3840_v22  ;;  %v3876_v9 = vpack.c.bf16 %v8177_v16, %v8176_v21  ;;  %v8179_v22 = vld [vmem:[#allocation79_spill] sm:$0xff]  ;;  %v8213_v21 = vld [vmem:[#allocation150_spill] sm:$0xff] }
 0x44a   :  { %v3878_v23 = vpack.c.bf16 %v8179_v22, %v8178_v17  ;;  %v3912_v16 = vpack.c.bf16 %v8213_v21, %v8212_v20  ;;  %v8215_v17 = vld [vmem:[#allocation149_spill] sm:$0xff] }
 0x44c   :  { %3843 = vmatpush1.bf16.msra.mxu1 %v3842_v25  ;;  %v8180_v25 = vld [vmem:[#allocation116_spill] sm:$0xff] }
 0x44d   :  { %3845 = vmatprep.subr.bf16.mxu1 %v3844_v28  ;;  %v3880_v27 = vpack.c.bf16 %v8181_v26, %v8180_v25  ;;  %v7362_v28 = vld.sshfl [vmem:[#allocation2 + $0x18] sm:$0x33 pattern:$0x76325410]  ;;  %v8217_v25 = vld [vmem:[#allocation154_spill] sm:$0xff] }
 0x44e   :  { %v2231_v62 = vcombine.high %v7358_v24, %v7362_v28 }
 0x450   :  { %3847 = vmatpush1.bf16.msra.mxu1 %v3846_v31  ;;  %v8183_v31 = vld [vmem:[#allocation117_spill] sm:$0xff] }
 0x451   :  { %3849 = vmatprep.subr.bf16.mxu1 %v3848_v56  ;;  %v3882_v60 = vpack.c.bf16 %v8183_v31, %v8182_v30  ;;  %v8184_v56 = vld [vmem:[#allocation120_spill] sm:$0xff] }
 0x452   :  { %v3884_v52 = vpack.c.bf16 %v8185_v59, %v8184_v56  ;;  %v8220_v31 = vld [vmem:[#allocation156_spill] sm:$0xff]  ;;  %v8222_v56 = vld [vmem:[#allocation155_spill] sm:$0xff]  ;;  %v8223_v59 = vld [vmem:[#allocation157_spill] sm:$0xff] }
 0x454   :  { %3851 = vmatpush1.bf16.msra.mxu1 %v3850_v53  ;;  %v8186_v53 = vld [vmem:[#allocation119_spill] sm:$0xff] }
 0x455   :  { %3853 = vmatprep.subr.bf16.mxu1 %v3852_v51  ;;  %v3886_v50 = vpack.c.bf16 %v8187_v48, %v8186_v53  ;;  %v8188_v51 = vld [vmem:[#allocation124_spill] sm:$0xff]  ;;  %v8225_v48 = vld [vmem:[#allocation162_spill] sm:$0xff] }
 0x456   :  { %v3888_v45 = vpack.c.bf16 %v8189_v49, %v8188_v51  ;;  %v8224_v53 = vld [vmem:[#allocation160_spill] sm:$0xff]  ;;  %v8226_v51 = vld [vmem:[#allocation159_spill] sm:$0xff]  ;;  %v8227_v49 = vld [vmem:[#allocation161_spill] sm:$0xff] }
 0x458   :  { %3855 = vmatpush1.bf16.msra.mxu1 %v3854_v47  ;;  %v3890_v47 = vpack.c.bf16 %v8191_v46, %v8190_v44  ;;  %v8228_v44 = vld [vmem:[#allocation164_spill] sm:$0xff]  ;;  %v8229_v46 = vld [vmem:[#allocation166_spill] sm:$0xff] }
 0x459   :  { %3857 = vmatprep.subr.bf16.mxu1 %v3856_v54  ;;  %v3892_v54 = vpack.c.bf16 %v8193_v41, %v8192_v40  ;;  %v8230_v40 = vld [vmem:[#allocation163_spill] sm:$0xff]  ;;  %v8231_v41 = vld [vmem:[#allocation165_spill] sm:$0xff] }
 0x45c   :  { %3859 = vmatpush1.bf16.msra.mxu1 %v3858_v55  ;;  %v3894_v55 = vpack.c.bf16 %v8195_v43, %v8194_v42  ;;  %v8232_v42 = vld [vmem:[#allocation168_spill] sm:$0xff]  ;;  %v8233_v43 = vld [vmem:[#allocation170_spill] sm:$0xff] }
 0x45d   :  { %3861 = vmatprep.subr.bf16.mxu1 %v3860_v61  ;;  %v3896_v61 = vpack.c.bf16 %v8197_v37, %v8196_v36  ;;  %v8234_v36 = vld [vmem:[#allocation167_spill] sm:$0xff]  ;;  %v8235_v37 = vld [vmem:[#allocation169_spill] sm:$0xff] }
 0x460   :  { %3863 = vmatpush1.bf16.msra.mxu1 %v3862_v58  ;;  %v3898_v58 = vpack.c.bf16 %v8199_v57, %v8198_v38  ;;  %v8236_v38 = vld [vmem:[#allocation172_spill] sm:$0xff]  ;;  %v8237_v57 = vld [vmem:[#allocation174_spill] sm:$0xff] }
 0x461   :  { %3865 = vmatprep.subr.bf16.mxu1 %v3864_v32  ;;  %v3900_v32 = vpack.c.bf16 %v8201_v63, %v8200_v39  ;;  %v8238_v39 = vld [vmem:[#allocation171_spill] sm:$0xff]  ;;  %v8239_v63 = vld [vmem:[#allocation173_spill] sm:$0xff] }
 0x464   :  { %3867 = vmatpush1.bf16.msra.mxu1 %v3866_v35  ;;  %v3902_v35 = vpack.c.bf16 %v8203_v34, %v8202_v33  ;;  %v4173_v33 = vld [vmem:[#allocation2 + $0xc] ss:$8 sps:$4 sm:$0xff]  }
 0x465   :  { %3869 = vmatprep.subr.bf16.mxu1 %v3868_v15  ;;  %v3904_v15 = vpack.c.bf16 %v8205_v7, %v8204_v6  ;;  %v8240_v34 = vld [vmem:[#allocation176_spill] sm:$0xff]  ;;  %v8242_v7 = vld [vmem:[#allocation175_spill] sm:$0xff] }
 0x468   :  { %3871 = vmatpush1.bf16.msra.mxu1 %v3870_v8  ;;  %v3906_v8 = vpack.c.bf16 %v8207_v2, %v8206_v14  ;;  %v7431_v2 = vrot.slane %v4173_v33, %v7207_v13  ;;  %v8276_v33 = vld [vmem:[#allocation212_spill] sm:$0xff] }
 0x469   :  { %3873 = vmatprep.subr.bf16.mxu1 %v3872_v11  ;;  %v3908_v11 = vpack.c.bf16 %v8209_v12, %v8208_v0  ;;  %v8245_v0 = vld [vmem:[#allocation182_spill] sm:$0xff] }
 0x46c   :  { %3875 = vmatpush1.bf16.msra.mxu1 %v3874_v3  ;;  %v3910_v3 = vpack.c.bf16 %v8211_v19, %v8210_v4  ;;  %v2230_v4 = vcombine.low %v7358_v24, %v7362_v28  ;;  %v8246_v19 = vld [vmem:[#allocation179_spill] sm:$0xff]  ;;  %v8253_v24 = vld [vmem:[#allocation190_spill] sm:$0xff] }
 0x46d   :  { %3877 = vmatprep.subr.bf16.mxu1 %v3876_v9  ;;  %v8214_v9 = vld [vmem:[#allocation147_spill] sm:$0xff] }
 0x46e   :  { %v3914_v22 = vpack.c.bf16 %v8215_v17, %v8214_v9  ;;  %v8249_v9 = vld [vmem:[#allocation186_spill] sm:$0xff] }
 0x470   :  { %3879 = vmatpush1.bf16.msra.mxu1 %v3878_v23  ;;  %v8216_v23 = vld [vmem:[#allocation152_spill] sm:$0xff] }
 0x471   :  { %3881 = vmatprep.subr.bf16.mxu1 %v3880_v27  ;;  %v3916_v26 = vpack.c.bf16 %v8217_v25, %v8216_v23  ;;  %v8218_v27 = vld [vmem:[#allocation151_spill] sm:$0xff]  ;;  %v8251_v23 = vld [vmem:[#allocation185_spill] sm:$0xff] }
 0x473   :  { %2137 = vmatmul.mubr.f32.vlgmr.msra.gmra.mrb[0].mxu1 %v2068_v29  ;;  %v8219_v29 = vld [vmem:[#allocation153_spill] sm:$0xff] }
 0x474   :  { %3883 = vmatpush1.bf16.msra.mxu1 %v3882_v60  ;;  %2298 = vmatprep.mubr.f32.mxu1 %v2231_v62  ;;  %v3918_v30 = vpack.c.bf16 %v8219_v29, %v8218_v27  ;;  %v8221_v60 = vld [vmem:[#allocation158_spill] sm:$0xff]  ;;  %v8254_v27 = vld [vmem:[#allocation187_spill] sm:$0xff]  ;;  %v8255_v29 = vld [vmem:[#allocation189_spill] sm:$0xff] }
 0x475   :  { %3885 = vmatprep.subr.bf16.mxu1 %v3884_v52  ;;  %v3920_v62 = vpack.c.bf16 %v8221_v60, %v8220_v31  ;;  %v3922_v52 = vpack.c.bf16 %v8223_v59, %v8222_v56  ;;  %v8256_v31 = vld [vmem:[#allocation192_spill] sm:$0xff]  ;;  %v8257_v60 = vld [vmem:[#allocation194_spill] sm:$0xff]  ;;  %v8258_v56 = vld [vmem:[#allocation191_spill] sm:$0xff] }
 0x476   :  { %v8259_v59 = vld [vmem:[#allocation193_spill] sm:$0xff] }
 0x478   :  { %3887 = vmatpush1.bf16.msra.mxu1 %v3886_v50  ;;  %v3924_v50 = vpack.c.bf16 %v8225_v48, %v8224_v53  ;;  %v8260_v53 = vld [vmem:[#allocation196_spill] sm:$0xff]  ;;  %v8261_v48 = vld [vmem:[#allocation198_spill] sm:$0xff] }
 0x479   :  { %3889 = vmatprep.subr.bf16.mxu1 %v3888_v45  ;;  %v3926_v45 = vpack.c.bf16 %v8227_v49, %v8226_v51  ;;  %v8262_v51 = vld [vmem:[#allocation195_spill] sm:$0xff]  ;;  %v8263_v49 = vld [vmem:[#allocation197_spill] sm:$0xff] }
 0x47c   :  { %3891 = vmatpush1.bf16.msra.mxu1 %v3890_v47  ;;  %v3928_v47 = vpack.c.bf16 %v8229_v46, %v8228_v44  ;;  %v8264_v44 = vld [vmem:[#allocation200_spill] sm:$0xff]  ;;  %v8265_v46 = vld [vmem:[#allocation202_spill] sm:$0xff] }
 0x47d   :  { %3893 = vmatprep.subr.bf16.mxu1 %v3892_v54  ;;  %v3930_v54 = vpack.c.bf16 %v8231_v41, %v8230_v40  ;;  %v8266_v40 = vld [vmem:[#allocation199_spill] sm:$0xff]  ;;  %v8267_v41 = vld [vmem:[#allocation201_spill] sm:$0xff] }
 0x480   :  { %3895 = vmatpush1.bf16.msra.mxu1 %v3894_v55  ;;  %v3932_v55 = vpack.c.bf16 %v8233_v43, %v8232_v42  ;;  %v8268_v42 = vld [vmem:[#allocation204_spill] sm:$0xff]  ;;  %v8269_v43 = vld [vmem:[#allocation206_spill] sm:$0xff] }
 0x481   :  { %3897 = vmatprep.subr.bf16.mxu1 %v3896_v61  ;;  %v3934_v61 = vpack.c.bf16 %v8235_v37, %v8234_v36  ;;  %v8270_v36 = vld [vmem:[#allocation203_spill] sm:$0xff]  ;;  %v8271_v37 = vld [vmem:[#allocation205_spill] sm:$0xff] }
 0x484   :  { %3899 = vmatpush1.bf16.msra.mxu1 %v3898_v58  ;;  %v3936_v58 = vpack.c.bf16 %v8237_v57, %v8236_v38  ;;  %v8272_v38 = vld [vmem:[#allocation208_spill] sm:$0xff]  ;;  %v8273_v57 = vld [vmem:[#allocation210_spill] sm:$0xff] }
 0x485   :  { %3901 = vmatprep.subr.bf16.mxu1 %v3900_v32  ;;  %v3938_v32 = vpack.c.bf16 %v8239_v63, %v8238_v39  ;;  %v8274_v39 = vld [vmem:[#allocation207_spill] sm:$0xff]  ;;  %v8275_v63 = vld [vmem:[#allocation209_spill] sm:$0xff] }
 0x488   :  { %3903 = vmatpush1.bf16.msra.mxu1 %v3902_v35  ;;  %v8241_v35 = vld [vmem:[#allocation178_spill] sm:$0xff] }
 0x489   :  { %3905 = vmatprep.subr.bf16.mxu1 %v3904_v15  ;;  %v3940_v6 = vpack.c.bf16 %v8241_v35, %v8240_v34  ;;  %v8243_v15 = vld [vmem:[#allocation177_spill] sm:$0xff]  ;;  %v8277_v34 = vld [vmem:[#allocation214_spill] sm:$0xff] }
 0x48a   :  { %v3942_v14 = vpack.c.bf16 %v8243_v15, %v8242_v7  ;;  %v3976_v35 = vpack.c.bf16 %v8277_v34, %v8276_v33  ;;  %v8279_v7 = vld [vmem:[#allocation213_spill] sm:$0xff] }
 0x48c   :  { %3907 = vmatpush1.bf16.msra.mxu1 %v3906_v8  ;;  %v8244_v8 = vld [vmem:[#allocation180_spill] sm:$0xff] }
 0x48d   :  { %3909 = vmatprep.subr.bf16.mxu1 %v3908_v11  ;;  %v3944_v12 = vpack.c.bf16 %v8245_v0, %v8244_v8  ;;  %v7435_v11 = vld.sshfl [vmem:[#allocation2 + $0x1c] sm:$0x33 pattern:$0x76325410] }
 0x48e   :  { %v2395_v21 = vcombine.high %v7431_v2, %v7435_v11  ;;  %v8281_v8 = vld [vmem:[#allocation218_spill] sm:$0xff] }
 0x490   :  { %3911 = vmatpush1.bf16.msra.mxu1 %v3910_v3  ;;  %v8247_v3 = vld [vmem:[#allocation181_spill] sm:$0xff] }
 0x491   :  { %3913 = vmatprep.subr.bf16.mxu1 %v3912_v16  ;;  %v3946_v20 = vpack.c.bf16 %v8247_v3, %v8246_v19  ;;  %v8248_v16 = vld [vmem:[#allocation184_spill] sm:$0xff] }
 0x492   :  { %v3948_v17 = vpack.c.bf16 %v8249_v9, %v8248_v16  ;;  %v8284_v3 = vld [vmem:[#allocation220_spill] sm:$0xff]  ;;  %v8286_v16 = vld [vmem:[#allocation219_spill] sm:$0xff]  ;;  %v8287_v9 = vld [vmem:[#allocation221_spill] sm:$0xff] }
 0x494   :  { %3915 = vmatpush1.bf16.msra.mxu1 %v3914_v22  ;;  %v8250_v22 = vld [vmem:[#allocation183_spill] sm:$0xff] }
 0x495   :  { %3917 = vmatprep.subr.bf16.mxu1 %v3916_v26  ;;  %v3950_v25 = vpack.c.bf16 %v8251_v23, %v8250_v22  ;;  %v8252_v26 = vld [vmem:[#allocation188_spill] sm:$0xff]  ;;  %v8289_v23 = vld [vmem:[#allocation226_spill] sm:$0xff] }
 0x496   :  { %v3952_v28 = vpack.c.bf16 %v8253_v24, %v8252_v26  ;;  %v8288_v22 = vld [vmem:[#allocation224_spill] sm:$0xff]  ;;  %v8290_v26 = vld [vmem:[#allocation223_spill] sm:$0xff]  ;;  %v8291_v24 = vld [vmem:[#allocation225_spill] sm:$0xff] }
 0x498   :  { %3919 = vmatpush1.bf16.msra.mxu1 %v3918_v30  ;;  %v3954_v30 = vpack.c.bf16 %v8255_v29, %v8254_v27  ;;  %v8292_v27 = vld [vmem:[#allocation228_spill] sm:$0xff]  ;;  %v8293_v29 = vld [vmem:[#allocation230_spill] sm:$0xff] }
 0x499   :  { %3921 = vmatprep.subr.bf16.mxu1 %v3920_v62  ;;  %v3956_v62 = vpack.c.bf16 %v8257_v60, %v8256_v31  ;;  %v8294_v31 = vld [vmem:[#allocation227_spill] sm:$0xff]  ;;  %v8295_v60 = vld [vmem:[#allocation229_spill] sm:$0xff] }
 0x49c   :  { %3923 = vmatpush1.bf16.msra.mxu1 %v3922_v52  ;;  %v3958_v52 = vpack.c.bf16 %v8259_v59, %v8258_v56  ;;  %v8296_v56 = vld [vmem:[#allocation232_spill] sm:$0xff]  ;;  %v8297_v59 = vld [vmem:[#allocation234_spill] sm:$0xff] }
 0x49d   :  { %3925 = vmatprep.subr.bf16.mxu1 %v3924_v50  ;;  %v3960_v50 = vpack.c.bf16 %v8261_v48, %v8260_v53  ;;  %v8298_v53 = vld [vmem:[#allocation231_spill] sm:$0xff]  ;;  %v8299_v48 = vld [vmem:[#allocation233_spill] sm:$0xff] }
 0x4a0   :  { %3927 = vmatpush1.bf16.msra.mxu1 %v3926_v45  ;;  %v3962_v45 = vpack.c.bf16 %v8263_v49, %v8262_v51  ;;  %v8300_v51 = vld [vmem:[#allocation236_spill] sm:$0xff]  ;;  %v8301_v49 = vld [vmem:[#allocation238_spill] sm:$0xff] }
 0x4a1   :  { %3929 = vmatprep.subr.bf16.mxu1 %v3928_v47  ;;  %v3964_v47 = vpack.c.bf16 %v8265_v46, %v8264_v44  ;;  %v8302_v44 = vld [vmem:[#allocation235_spill] sm:$0xff]  ;;  %v8303_v46 = vld [vmem:[#allocation237_spill] sm:$0xff] }
 0x4a4   :  { %3931 = vmatpush1.bf16.msra.mxu1 %v3930_v54  ;;  %v3966_v54 = vpack.c.bf16 %v8267_v41, %v8266_v40  ;;  %v8304_v40 = vld [vmem:[#allocation240_spill] sm:$0xff]  ;;  %v8305_v41 = vld [vmem:[#allocation242_spill] sm:$0xff] }
 0x4a5   :  { %3933 = vmatprep.subr.bf16.mxu1 %v3932_v55  ;;  %v3968_v55 = vpack.c.bf16 %v8269_v43, %v8268_v42  ;;  %v8306_v42 = vld [vmem:[#allocation239_spill] sm:$0xff]  ;;  %v8307_v43 = vld [vmem:[#allocation241_spill] sm:$0xff] }
 0x4a8   :  { %3935 = vmatpush1.bf16.msra.mxu1 %v3934_v61  ;;  %v3970_v61 = vpack.c.bf16 %v8271_v37, %v8270_v36  ;;  %v2394_v36 = vcombine.low %v7431_v2, %v7435_v11  ;;  %v2471_v37 = vld [vmem:[%s7708_s6] sm:$0x3] }
 0x4a9   :  { %3937 = vmatprep.subr.bf16.mxu1 %v3936_v58  ;;  %v3972_v58 = vpack.c.bf16 %v8273_v57, %v8272_v38  ;;  %v2480_v38 = vrot.slane %v2471_v37, %v7154_v1 }
 0x4ac   :  { %3939 = vmatpush1.bf16.msra.mxu1 %v3938_v32  ;;  %v3974_v32 = vpack.c.bf16 %v8275_v63, %v8274_v39 }
 0x4ad   :  { %3941 = vmatprep.subr.bf16.mxu1 %v3940_v6  ;;  %v8278_v6 = vld [vmem:[#allocation211_spill] sm:$0xff] }
 0x4ae   :  { %v3978_v15 = vpack.c.bf16 %v8279_v7, %v8278_v6 }
 0x4b0   :  { %3943 = vmatpush1.bf16.msra.mxu1 %v3942_v14  ;;  %v8280_v14 = vld [vmem:[#allocation216_spill] sm:$0xff] }
 0x4b1   :  { %3945 = vmatprep.subr.bf16.mxu1 %v3944_v12  ;;  %v3980_v0 = vpack.c.bf16 %v8281_v8, %v8280_v14  ;;  %v8282_v12 = vld [vmem:[#allocation215_spill] sm:$0xff] }
 0x4b3   :  { %2299 = vmatmul.mubr.f32.vlgmr.msra.gmra.mrb[0].mxu1 %v2230_v4  ;;  %v8283_v4 = vld [vmem:[#allocation217_spill] sm:$0xff] }
 0x4b4   :  { %3947 = vmatpush1.bf16.msra.mxu1 %v3946_v20  ;;  %2462 = vmatprep.mubr.f32.mxu1 %v2395_v21  ;;  %v3982_v19 = vpack.c.bf16 %v8283_v4, %v8282_v12  ;;  %v8285_v20 = vld [vmem:[#allocation222_spill] sm:$0xff] }
 0x4b5   :  { %3949 = vmatprep.subr.bf16.mxu1 %v3948_v17  ;;  %v3984_v21 = vpack.c.bf16 %v8285_v20, %v8284_v3  ;;  %v3986_v17 = vpack.c.bf16 %v8287_v9, %v8286_v16 }
 0x4b8   :  { %3951 = vmatpush1.bf16.msra.mxu1 %v3950_v25  ;;  %v3988_v25 = vpack.c.bf16 %v8289_v23, %v8288_v22 }
 0x4b9   :  { %3953 = vmatprep.subr.bf16.mxu1 %v3952_v28  ;;  %v3990_v28 = vpack.c.bf16 %v8291_v24, %v8290_v26 }
 0x4bc   :  { %3955 = vmatpush1.bf16.msra.mxu1 %v3954_v30  ;;  %v3992_v30 = vpack.c.bf16 %v8293_v29, %v8292_v27 }
 0x4bd   :  { %3957 = vmatprep.subr.bf16.mxu1 %v3956_v62  ;;  %v3994_v62 = vpack.c.bf16 %v8295_v60, %v8294_v31 }
 0x4c0   :  { %3959 = vmatpush1.bf16.msra.mxu1 %v3958_v52  ;;  %v3996_v52 = vpack.c.bf16 %v8297_v59, %v8296_v56 }
 0x4c1   :  { %3961 = vmatprep.subr.bf16.mxu1 %v3960_v50  ;;  %v3998_v50 = vpack.c.bf16 %v8299_v48, %v8298_v53 }
 0x4c4   :  { %3963 = vmatpush1.bf16.msra.mxu1 %v3962_v45  ;;  %v4000_v45 = vpack.c.bf16 %v8301_v49, %v8300_v51 }
 0x4c5   :  { %3965 = vmatprep.subr.bf16.mxu1 %v3964_v47  ;;  %v4002_v47 = vpack.c.bf16 %v8303_v46, %v8302_v44 }
 0x4c8   :  { %3967 = vmatpush1.bf16.msra.mxu1 %v3966_v54  ;;  %v4004_v54 = vpack.c.bf16 %v8305_v41, %v8304_v40 }
 0x4c9   :  { %3969 = vmatprep.subr.bf16.mxu1 %v3968_v55  ;;  %v4006_v55 = vpack.c.bf16 %v8307_v43, %v8306_v42 }
 0x4cc   :  { %3971 = vmatpush1.bf16.msra.mxu1 %v3970_v61  ;;  %v2476_v61 = vrot.slane %v2471_v37, %v7148_v10  ;;  %v2566_v37 = vrot.slane %v2486_v18, %v7148_v10 }
 0x4cd   :  { %3973 = vmatprep.subr.bf16.mxu1 %v3972_v58 }
 0x4d0   :  { %3975 = vmatpush1.bf16.msra.mxu1 %v3974_v32 }
 0x4d1   :  { %3977 = vmatprep.subr.bf16.mxu1 %v3976_v35 }
 0x4d4   :  { %3979 = vmatpush1.bf16.msra.mxu1 %v3978_v15 }
 0x4d5   :  { %3981 = vmatprep.subr.bf16.mxu1 %v3980_v0 }
 0x4d8   :  { %3983 = vmatpush1.bf16.msra.mxu1 %v3982_v19 }
 0x4d9   :  { %3985 = vmatprep.subr.bf16.mxu1 %v3984_v21 }
 0x4dc   :  { %3987 = vmatpush1.bf16.msra.mxu1 %v3986_v17 }
 0x4dd   :  { %3989 = vmatprep.subr.bf16.mxu1 %v3988_v25 }
 0x4e0   :  { %3991 = vmatpush1.bf16.msra.mxu1 %v3990_v28 }
 0x4e1   :  { %3993 = vmatprep.subr.bf16.mxu1 %v3992_v30 }
 0x4e4   :  { %3995 = vmatpush1.bf16.msra.mxu1 %v3994_v62 }
 0x4e5   :  { %3997 = vmatprep.subr.bf16.mxu1 %v3996_v52 }
 0x4e8   :  { %3999 = vmatpush1.bf16.msra.mxu1 %v3998_v50 }
 0x4e9   :  { %4001 = vmatprep.subr.bf16.mxu1 %v4000_v45 }
 0x4ec   :  { %4003 = vmatpush1.bf16.msra.mxu1 %v4002_v47  ;;  %v2485_v47 = vld [vmem:[%s7709_s7] sm:$0x3] }
 0x4ed   :  { %4005 = vmatprep.subr.bf16.mxu1 %v4004_v54  ;;  %v2553_v54 = vrot.slane %v2485_v47, %v7148_v10  ;;  %v2557_v42 = vrot.slane %v2485_v47, %v7154_v1 }
 0x4f0   :  { %4007 = vmatpush1.bf16.msra.mxu1 %v4006_v55 }
 0x4f3   :  { %2463 = vmatmul.mubr.f32.vlgmr.msra.gmra.mrb[0].mxu1 %v2394_v36 }
 0x5c6   :  { %v2464_v57 = vpop.f32.mrb[0].mxu1 }
 0x5c7   :  { %v2483_v58 = vadd.f32 %v2476_v61, %v2464_v57  ;;  %v2466_v39 = vpop.f32.mrb[1].mxu1  ;;  %v2570_v61 = vrot.slane %v2486_v18, %v7154_v1 }
 0x5c8   :  { %v2484_v63 = vadd.f32 %v2480_v38, %v2466_v39 }
 0x5c9   :  { %v2488_v32 = vsel %vm2487_vm3, %v2483_v58, 0.0  ;;  %v2502_v33 = vmul.f32 %v2483_v58, %v2483_v58 }
 0x5ca   :  { %v2489_v34 = vrot.slane %v2488_v32, 4  ;;  %v2495_v35 = vsel %vm2487_vm3, %v2484_v63, 0.0  ;;  %v2503_v2 = vmul.f32 %v2484_v63, %v2484_v63 }
 0x5cb   :  { %v2504_v11 = vsel %vm2487_vm3, %v2502_v33, 0.0  ;;  %v2496_v6 = vrot.slane %v2495_v35, 4 }
 0x5cc   :  { %v2490_v7 = vadd.f32 %v2489_v34, %v2488_v32  ;;  %v2505_v15 = vrot.slane %v2504_v11, 4  ;;  %v2511_v14 = vsel %vm2487_vm3, %v2503_v2, 0.0 }
 0x5cd   :  { %v2497_v8 = vadd.f32 %v2496_v6, %v2495_v35  ;;  %v2512_v0 = vrot.slane %v2511_v14, 4 }
 0x5ce   :  { %v2491_v12 = vrot.slane %v2490_v7, 2  ;;  %v2506_v4 = vadd.f32 %v2505_v15, %v2504_v11  ;;  %v8309_v15 = vld [vmem:[#allocation292_spill] sm:$0xff] }
 0x5cf   :  { %v2498_v19 = vrot.slane %v2497_v8, 2  ;;  %v2513_v3 = vadd.f32 %v2512_v0, %v2511_v14  ;;  %v8311_v0 = vld [vmem:[#allocation260_spill] sm:$0xff] }
 0x5d0   :  { %v2492_v20 = vadd.f32 %v2491_v12, %v2490_v7  ;;  %v2507_v21 = vrot.slane %v2506_v4, 2 }
 0x5d1   :  { %v2514_v16 = vrot.slane %v2513_v3, 2  ;;  %v2499_v22 = vadd.f32 %v2498_v19, %v2497_v8  ;;  %v8310_v8 = vld [vmem:[#allocation259_spill] sm:$0xff]  ;;  %v8313_v19 = vld [vmem:[#allocation276_spill] sm:$0xff] }
 0x5d2   :  { %v2493_v9 = vrot.slane %v2492_v20, 1  ;;  %v2508_v17 = vadd.f32 %v2507_v21, %v2506_v4  ;;  %v4040_v12 = vpack.c.bf16 %v8311_v0, %v8310_v8  ;;  %v8312_v4 = vld [vmem:[#allocation275_spill] sm:$0xff]  ;;  %v8315_v21 = vld [vmem:[#allocation244_spill] sm:$0xff] }
 0x5d3   :  { %v2515_v23 = vadd.f32 %v2514_v16, %v2513_v3  ;;  %v2500_v27 = vrot.slane %v2499_v22, 1  ;;  %v4010_v3 = vpack.c.bf16 %v8313_v19, %v8312_v4 }
 0x5d4   :  { %v2509_v25 = vrot.slane %v2508_v17, 1  ;;  %v2494_v24 = vadd.f32 %v2493_v9, %v2492_v20  ;;  %v8314_v20 = vld [vmem:[#allocation243_spill] sm:$0xff] }
 0x5d5   :  { %v2516_v26 = vrot.slane %v2515_v23, 1  ;;  %v2501_v31 = vadd.f32 %v2500_v27, %v2499_v22  ;;  %v4042_v16 = vpack.c.bf16 %v8315_v21, %v8314_v20 }
 0x5d6   :  { %v2510_v28 = vadd.f32 %v2509_v25, %v2508_v17 }
 0x5d7   :  { %v2517_v30 = vadd.f32 %v2516_v26, %v2515_v23 }
 0x5d8   :  { %v2518_v29 = vsel %vm1678_vm0, %v2494_v24, %v2510_v28 }
 0x5d9   :  { %2520 = vrot.lane.b32.xlu0 %v2518_v29, %s4211_s0  ;;  %v2519_v60 = vsel %vm1678_vm0, %v2501_v31, %v2517_v30 }
 0x5dd   :  { %2522 = vrot.lane.b32.xlu0 %v2519_v60, %s4211_s0 }
 0x64b   :  { %v2521_v62 = vpop.permute.xlu0 %2520 }
 0x64f   :  { %v2523_v56 = vpop.permute.xlu0 %2522 }
 0x650   :  { %v2524_v59 = vsel %vm1696_vm2, %v2521_v62, %v2523_v56  ;;  %v2525_v52 = vsel %vm1696_vm2, %v2523_v56, %v2521_v62 }
 0x651   :  { %v2526_v53 = vadd.f32 %v2525_v52, %v2518_v29  ;;  %v2527_v48 = vadd.f32 %v2524_v59, %v2519_v60 }
 0x653   :  { %v2528_v50 = vadd.f32 %v2527_v48, %v2526_v53 }
 0x655   :  { %v2529_v51 = vmul.f32 0.055555556, %v2528_v50 }
 0x657   :  { %v2530_v49 = vmul.f32 %v2529_v51, %v2529_v51  ;;  %v2538_v40 = vrot.slane %v2529_v51, %v7148_v10 }
 0x659   :  { %v2532_v45 = vrot.slane %v2530_v49, 7  ;;  %v2539_v43 = vsub.f32 %v2483_v58, %v2538_v40  ;;  %v2540_v55 = vsub.f32 %v2484_v63, %v2538_v40  ;;  %v8308_v63 = vld [vmem:[#allocation291_spill] sm:$0xff] }
 0x65a   :  { %v4008_v14 = vpack.c.bf16 %v8309_v15, %v8308_v63 }
 0x65b   :  { %v2534_v44 = vsub.f32 %v2529_v51, %v2532_v45 }
 0x65d   :  { %v2541_v46 = vadd.f32 1e-05, %v2534_v44 }
 0x65f   :  { %4174 = vrsqrt.f32 %v2541_v46 }
 0x669   :  { %v4175_v41 = vpop.eup %4174 }
 0x66a   :  { %v2546_v36 = vrot.slane %v4175_v41, %v7154_v1 }
 0x66c   :  { %v2547_v38 = vmul.f32 %v2546_v36, %v2539_v43  ;;  %v2548_v57 = vmul.f32 %v2546_v36, %v2540_v55 }
 0x66e   :  { %v2560_v39 = vmul.f32 %v2553_v54, %v2547_v38  ;;  %v2561_v32 = vmul.f32 %v2557_v42, %v2548_v57 }
 0x670   :  { %v2573_v33 = vadd.f32 %v2566_v37, %v2560_v39  ;;  %v2574_v34 = vadd.f32 %v2570_v61, %v2561_v32 }
 0x672   :  { %v2575_v35 = vmax.f32 %v2573_v33, 0.0  ;;  %v2576_v2 = vmax.f32 %v2574_v34, 0.0 }
 0x674   :  { %v2579_v11 = vcombine.low %v2575_v35, %v2576_v2  ;;  %v2580_v6 = vcombine.high %v2575_v35, %v2576_v2 }
 0x676   :  { %v2587_v7 = vrot.slane %v2579_v11, %v7207_v13  ;;  %3346 = vst.sshfl [vmem:[#allocation3] sm:$0x33 pattern:$0x76325410] %v2579_v11 }
 0x677   :  { %3347 = vst.sshfl [vmem:[#allocation3 + $0x8] sm:$0x33 pattern:$0x76325410] %v2580_v6 }
 0x678   :  { %v2595_v58 = vcombine.high %v2587_v7, %v2587_v7 }
 0x67a   :  { %2600 = vst [vmem:[#allocation3 + $0x4] sm:$0xf] %v2595_v58 }
 0x67b   :  { %4203 = dma.done.wait [#allocation7 + $0x1], 12288 }
 0x67c   :  { %4204 = vsyncadd [#allocation7 + $0x1], 4294955008  ;;  %v8316_v9 = vld [vmem:[#allocation293_spill] sm:$0xff]  ;;  %v8317_v17 = vld [vmem:[#allocation294_spill] sm:$0xff]  ;;  %4009 = vmatprep.subr.bf16.mxu1 %v4008_v14  ;;  %4041 = vmatprep.subr.bf16.mxu0 %v4040_v12  ;;  %vm2963_vm4 = vcmask 517120  }
 0x67d   :  { %v4012_v22 = vpack.c.bf16 %v8317_v17, %v8316_v9  ;;  %v8318_v23 = vld [vmem:[#allocation261_spill] sm:$0xff]  ;;  %v8319_v25 = vld [vmem:[#allocation262_spill] sm:$0xff]  ;;  %4011 = vmatpush3.bf16.msra.mxu1 %v4010_v3  ;;  %4043 = vmatpush3.bf16.msra.mxu0 %v4042_v16  ;;  %v8324_v60 = vld [vmem:[#allocation295_spill] sm:$0xff] }
 0x67e   :  { %v4044_v26 = vpack.c.bf16 %v8319_v25, %v8318_v23  ;;  %v8320_v24 = vld [vmem:[#allocation277_spill] sm:$0xff]  ;;  %v8321_v28 = vld [vmem:[#allocation278_spill] sm:$0xff]  ;;  %v8325_v62 = vld [vmem:[#allocation296_spill] sm:$0xff] }
 0x67f   :  { %v4014_v27 = vpack.c.bf16 %v8321_v28, %v8320_v24  ;;  %v8322_v29 = vld [vmem:[#allocation245_spill] sm:$0xff]  ;;  %v8323_v30 = vld [vmem:[#allocation246_spill] sm:$0xff]  ;;  %4013 = vmatprep.subr.bf16.mxu1 %v4012_v22  ;;  %v4016_v56 = vpack.c.bf16 %v8325_v62, %v8324_v60  ;;  %v8326_v59 = vld [vmem:[#allocation263_spill] sm:$0xff] }
 0x680   :  { %v4046_v31 = vpack.c.bf16 %v8323_v30, %v8322_v29  ;;  %4045 = vmatprep.subr.bf16.mxu0 %v4044_v26  ;;  %v8327_v52 = vld [vmem:[#allocation264_spill] sm:$0xff]  ;;  %v8328_v48 = vld [vmem:[#allocation279_spill] sm:$0xff]  ;;  %v8332_v47 = vld [vmem:[#allocation297_spill] sm:$0xff] }
 0x681   :  { %v4048_v53 = vpack.c.bf16 %v8327_v52, %v8326_v59  ;;  %4015 = vmatpush3.bf16.msra.mxu1 %v4014_v27  ;;  %v8329_v50 = vld [vmem:[#allocation280_spill] sm:$0xff]  ;;  %v8330_v49 = vld [vmem:[#allocation247_spill] sm:$0xff]  ;;  %v8333_v40 = vld [vmem:[#allocation298_spill] sm:$0xff] }
 0x682   :  { %4047 = vmatpush3.bf16.msra.mxu0 %v4046_v31  ;;  %v4018_v51 = vpack.c.bf16 %v8329_v50, %v8328_v48  ;;  %v8331_v45 = vld [vmem:[#allocation248_spill] sm:$0xff]  ;;  %v3348_v46 = vld.sshfl [vmem:[#allocation3 + $0x4] sm:$0x33 pattern:$0x76325410]  ;;  %4017 = vmatprep.subr.bf16.mxu1 %v4016_v56  ;;  %v4020_v41 = vpack.c.bf16 %v8333_v40, %v8332_v47  ;;  %v8334_v18 = vld [vmem:[#allocation265_spill] sm:$0xff] }
 0x683   :  { %v4050_v44 = vpack.c.bf16 %v8331_v45, %v8330_v49  ;;  %4049 = vmatprep.subr.bf16.mxu0 %v4048_v53  ;;  %v8335_v54 = vld [vmem:[#allocation266_spill] sm:$0xff]  ;;  %v2682_v55 = vcombine.high %v3348_v46, %v3348_v46  ;;  %v8336_v37 = vld [vmem:[#allocation281_spill] sm:$0xff]  ;;  %v8340_v33 = vld [vmem:[#allocation299_spill] sm:$0xff] }
 0x684   :  { %v4052_v42 = vpack.c.bf16 %v8335_v54, %v8334_v18  ;;  %v3349_v43 = vld.sshfl [vmem:[#allocation3] sm:$0x33 pattern:$0x76325410]  ;;  %v8338_v57 = vld [vmem:[#allocation249_spill] sm:$0xff]  ;;  %v8341_v34 = vld [vmem:[#allocation300_spill] sm:$0xff] }
 0x685   :  { %v2763_v36 = vcombine.high %v3349_v43, %v3349_v43  ;;  %4019 = vmatpush3.bf16.msra.mxu1 %v4018_v51  ;;  %v8337_v61 = vld [vmem:[#allocation282_spill] sm:$0xff]  ;;  %v4024_v35 = vpack.c.bf16 %v8341_v34, %v8340_v33  ;;  %v8342_v2 = vld [vmem:[#allocation267_spill] sm:$0xff]  ;;  %v8343_v11 = vld [vmem:[#allocation268_spill] sm:$0xff]  ;;  %2749 = vmatprep.mubr.f32.mxu1 %v2682_v55 }
 0x686   :  { %4051 = vmatpush3.bf16.msra.mxu0 %v4050_v44  ;;  %v4022_v38 = vpack.c.bf16 %v8337_v61, %v8336_v37  ;;  %v8339_v39 = vld [vmem:[#allocation250_spill] sm:$0xff]  ;;  %4021 = vmatprep.subr.bf16.mxu1 %v4020_v41  ;;  %v4056_v6 = vpack.c.bf16 %v8343_v11, %v8342_v2  ;;  %v8344_v7 = vld [vmem:[#allocation283_spill] sm:$0xff]  ;;  %v8345_v58 = vld [vmem:[#allocation284_spill] sm:$0xff] }
 0x687   :  { %v4054_v32 = vpack.c.bf16 %v8339_v39, %v8338_v57  ;;  %4053 = vmatprep.subr.bf16.mxu0 %v4052_v42  ;;  %2830 = vmatprep.mubr.f32.mxu0 %v2763_v36  ;;  %v4026_v63 = vpack.c.bf16 %v8345_v58, %v8344_v7  ;;  %v8346_v15 = vld [vmem:[#allocation251_spill] sm:$0xff]  ;;  %v8347_v14 = vld [vmem:[#allocation252_spill] sm:$0xff]  ;;  %v8348_v0 = vld [vmem:[#allocation301_spill] sm:$0xff] }
 0x688   :  { %v4058_v8 = vpack.c.bf16 %v8347_v14, %v8346_v15  ;;  %v8349_v12 = vld [vmem:[#allocation302_spill] sm:$0xff]  ;;  %v8350_v19 = vld [vmem:[#allocation269_spill] sm:$0xff]  ;;  %v8356_v25 = vld [vmem:[#allocation303_spill] sm:$0xff] }
 0x689   :  { %4023 = vmatpush3.bf16.msra.mxu1 %v4022_v38  ;;  %v4028_v4 = vpack.c.bf16 %v8349_v12, %v8348_v0  ;;  %v8351_v3 = vld [vmem:[#allocation270_spill] sm:$0xff]  ;;  %v8352_v21 = vld [vmem:[#allocation285_spill] sm:$0xff]  ;;  %v8357_v26 = vld [vmem:[#allocation304_spill] sm:$0xff] }
 0x68a   :  { %4055 = vmatpush3.bf16.msra.mxu0 %v4054_v32  ;;  %4025 = vmatprep.subr.bf16.mxu1 %v4024_v35  ;;  %v4060_v20 = vpack.c.bf16 %v8351_v3, %v8350_v19  ;;  %v8353_v16 = vld [vmem:[#allocation286_spill] sm:$0xff]  ;;  %v8354_v17 = vld [vmem:[#allocation253_spill] sm:$0xff]  ;;  %v4032_v24 = vpack.c.bf16 %v8357_v26, %v8356_v25  ;;  %v8358_v28 = vld [vmem:[#allocation271_spill] sm:$0xff] }
 0x68b   :  { %4057 = vmatprep.subr.bf16.mxu0 %v4056_v6  ;;  %v4030_v9 = vpack.c.bf16 %v8353_v16, %v8352_v21  ;;  %v8355_v22 = vld [vmem:[#allocation254_spill] sm:$0xff]  ;;  %v8359_v27 = vld [vmem:[#allocation272_spill] sm:$0xff]  ;;  %v8360_v30 = vld [vmem:[#allocation287_spill] sm:$0xff] }
 0x68c   :  { %v4062_v23 = vpack.c.bf16 %v8355_v22, %v8354_v17  ;;  %v4064_v29 = vpack.c.bf16 %v8359_v27, %v8358_v28  ;;  %v8361_v31 = vld [vmem:[#allocation288_spill] sm:$0xff]  ;;  %v8362_v62 = vld [vmem:[#allocation255_spill] sm:$0xff]  ;;  %v8364_v52 = vld [vmem:[#allocation305_spill] sm:$0xff] }
 0x68d   :  { %4027 = vmatpush3.bf16.msra.mxu1 %v4026_v63  ;;  %v4034_v60 = vpack.c.bf16 %v8361_v31, %v8360_v30  ;;  %v8363_v56 = vld [vmem:[#allocation256_spill] sm:$0xff]  ;;  %v8365_v53 = vld [vmem:[#allocation306_spill] sm:$0xff]  ;;  %v8366_v50 = vld [vmem:[#allocation273_spill] sm:$0xff] }
 0x68e   :  { %4059 = vmatpush3.bf16.msra.mxu0 %v4058_v8  ;;  %4029 = vmatprep.subr.bf16.mxu1 %v4028_v4  ;;  %v4066_v59 = vpack.c.bf16 %v8363_v56, %v8362_v62  ;;  %v4036_v48 = vpack.c.bf16 %v8365_v53, %v8364_v52  ;;  %v8367_v51 = vld [vmem:[#allocation274_spill] sm:$0xff]  ;;  %v8368_v45 = vld [vmem:[#allocation289_spill] sm:$0xff]  ;;  %v8372_v54 = vld [vmem:[#allocation323_spill] sm:$0xff] }
 0x68f   :  { %4061 = vmatprep.subr.bf16.mxu0 %v4060_v20  ;;  %v4068_v49 = vpack.c.bf16 %v8367_v51, %v8366_v50  ;;  %v8369_v44 = vld [vmem:[#allocation290_spill] sm:$0xff]  ;;  %v8370_v40 = vld [vmem:[#allocation257_spill] sm:$0xff]  ;;  %v8373_v42 = vld [vmem:[#allocation324_spill] sm:$0xff] }
 0x690   :  { %v4038_v47 = vpack.c.bf16 %v8369_v44, %v8368_v45  ;;  %v8371_v41 = vld [vmem:[#allocation258_spill] sm:$0xff]  ;;  %v4072_v55 = vpack.c.bf16 %v8373_v42, %v8372_v54  ;;  %v3350_v36 = vld.sshfl [vmem:[#allocation3 + $0x8] sm:$0x33 pattern:$0x76325410]  ;;  %v8375_v61 = vld [vmem:[#allocation308_spill] sm:$0xff] }
 0x691   :  { %4031 = vmatpush3.bf16.msra.mxu1 %v4030_v9  ;;  %v4070_v18 = vpack.c.bf16 %v8371_v41, %v8370_v40  ;;  %v8374_v37 = vld [vmem:[#allocation307_spill] sm:$0xff]  ;;  %v2879_v57 = vcombine.high %v3350_v36, %v3350_v36  ;;  %v8376_v39 = vld [vmem:[#allocation325_spill] sm:$0xff]  ;;  %v8377_v32 = vld [vmem:[#allocation326_spill] sm:$0xff] }
 0x692   :  { %4063 = vmatpush3.bf16.msra.mxu0 %v4062_v23  ;;  %4033 = vmatprep.subr.bf16.mxu1 %v4032_v24  ;;  %v4074_v38 = vpack.c.bf16 %v8375_v61, %v8374_v37  ;;  %v4076_v33 = vpack.c.bf16 %v8377_v32, %v8376_v39  ;;  %v8378_v34 = vld [vmem:[#allocation309_spill] sm:$0xff]  ;;  %v8379_v35 = vld [vmem:[#allocation310_spill] sm:$0xff]  ;;  %v8380_v11 = vld [vmem:[#allocation327_spill] sm:$0xff] }
 0x693   :  { %4065 = vmatprep.subr.bf16.mxu0 %v4064_v29  ;;  %v4078_v2 = vpack.c.bf16 %v8379_v35, %v8378_v34  ;;  %v8381_v6 = vld [vmem:[#allocation328_spill] sm:$0xff]  ;;  %v8382_v58 = vld [vmem:[#allocation311_spill] sm:$0xff]  ;;  %v8384_v14 = vld [vmem:[#allocation329_spill] sm:$0xff] }
 0x694   :  { %v4080_v7 = vpack.c.bf16 %v8381_v6, %v8380_v11  ;;  %v8383_v63 = vld [vmem:[#allocation312_spill] sm:$0xff]  ;;  %v8385_v8 = vld [vmem:[#allocation330_spill] sm:$0xff]  ;;  %v8388_v4 = vld [vmem:[#allocation331_spill] sm:$0xff] }
 0x695   :  { %4035 = vmatpush3.bf16.msra.mxu1 %v4034_v60  ;;  %v4082_v15 = vpack.c.bf16 %v8383_v63, %v8382_v58  ;;  %v4084_v0 = vpack.c.bf16 %v8385_v8, %v8384_v14  ;;  %v8389_v19 = vld [vmem:[#allocation332_spill] sm:$0xff]  ;;  %v8390_v20 = vld [vmem:[#allocation315_spill] sm:$0xff]  ;;  %v8392_v9 = vld [vmem:[#allocation333_spill] sm:$0xff] }
 0x696   :  { %4067 = vmatpush3.bf16.msra.mxu0 %v4066_v59  ;;  %4037 = vmatprep.subr.bf16.mxu1 %v4036_v48  ;;  %v4088_v3 = vpack.c.bf16 %v8389_v19, %v8388_v4  ;;  %v8391_v21 = vld [vmem:[#allocation316_spill] sm:$0xff]  ;;  %v8393_v17 = vld [vmem:[#allocation334_spill] sm:$0xff]  ;;  %v8394_v23 = vld [vmem:[#allocation317_spill] sm:$0xff] }
 0x697   :  { %4069 = vmatprep.subr.bf16.mxu0 %v4068_v49  ;;  %v4090_v16 = vpack.c.bf16 %v8391_v21, %v8390_v20  ;;  %v4092_v22 = vpack.c.bf16 %v8393_v17, %v8392_v9  ;;  %v8395_v25 = vld [vmem:[#allocation318_spill] sm:$0xff]  ;;  %v8396_v24 = vld [vmem:[#allocation335_spill] sm:$0xff]  ;;  %v8397_v28 = vld [vmem:[#allocation336_spill] sm:$0xff] }
 0x698   :  { %v4094_v26 = vpack.c.bf16 %v8395_v25, %v8394_v23  ;;  %v4096_v27 = vpack.c.bf16 %v8397_v28, %v8396_v24  ;;  %v8398_v29 = vld [vmem:[#allocation319_spill] sm:$0xff]  ;;  %v8399_v30 = vld [vmem:[#allocation320_spill] sm:$0xff]  ;;  %v8400_v60 = vld [vmem:[#allocation337_spill] sm:$0xff] }
 0x699   :  { %4039 = vmatpush3.bf16.msra.mxu1 %v4038_v47  ;;  %v4098_v31 = vpack.c.bf16 %v8399_v30, %v8398_v29  ;;  %v8401_v62 = vld [vmem:[#allocation338_spill] sm:$0xff]  ;;  %v8402_v59 = vld [vmem:[#allocation321_spill] sm:$0xff]  ;;  %v8405_v23 = vld [vmem:[#allocation344_spill] sm:$0xff] }
 0x69a   :  { %4071 = vmatpush3.bf16.msra.mxu0 %v4070_v18  ;;  %4073 = vmatprep.subr.bf16.mxu1 %v4072_v55  ;;  %v4100_v56 = vpack.c.bf16 %v8401_v62, %v8400_v60  ;;  %v8403_v52 = vld [vmem:[#allocation322_spill] sm:$0xff]  ;;  %v8409_v29 = vld [vmem:[#allocation343_spill] sm:$0xff]  ;;  %v8411_v60 = vld [vmem:[#allocation345_spill] sm:$0xff] }
 0x69b   :  { %v4102_v53 = vpack.c.bf16 %v8403_v52, %v8402_v59  ;;  %v3351_v54 = vld [vmem:[%s7712_s10] ss:$0 sm:$0xff] }
 0x69c   :  { %2750 = vmatmul.mubr.f32.vlgmr.msra.gmra.mrb[2].mxu1 %v3348_v46  ;;  %v8386_v46 = vld [vmem:[#allocation313_spill] sm:$0xff]  ;;  %v3353_v21 = vld [vmem:[%s7714_s12] ss:$0 sm:$0xff] }
 0x69d   :  { %2831 = vmatmul.mubr.f32.vlgmr.msra.gmra.mrb[4].mxu0 %v3349_v43  ;;  %4075 = vmatpush3.bf16.msra.mxu1 %v4074_v38  ;;  %v8387_v43 = vld [vmem:[#allocation314_spill] sm:$0xff] }
 0x69e   :  { %2946 = vmatprep.mubr.f32.mxu1 %v2879_v57  ;;  %4077 = vmatprep.subr.bf16.mxu1 %v4076_v33  ;;  %v4086_v12 = vpack.c.bf16 %v8387_v43, %v8386_v46  ;;  %v8407_v24 = vld [vmem:[#allocation346_spill] sm:$0xff] }
 0x6a1   :  { %4079 = vmatpush3.bf16.msra.mxu1 %v4078_v2 }
 0x6a2   :  { %4081 = vmatprep.subr.bf16.mxu1 %v4080_v7 }
 0x6a5   :  { %4083 = vmatpush3.bf16.msra.mxu1 %v4082_v15 }
 0x6a6   :  { %4085 = vmatprep.subr.bf16.mxu1 %v4084_v0 }
 0x6a9   :  { %4087 = vmatpush3.bf16.msra.mxu1 %v4086_v12 }
 0x6aa   :  { %4089 = vmatprep.subr.bf16.mxu1 %v4088_v3  ;;  %v3352_v3 = vld [vmem:[%s7713_s11] ss:$0 sm:$0xff] }
 0x6ad   :  { %4091 = vmatpush3.bf16.msra.mxu1 %v4090_v16 }
 0x6ae   :  { %4093 = vmatprep.subr.bf16.mxu1 %v4092_v22  ;;  %v8404_v22 = vld [vmem:[#allocation340_spill] sm:$0xff] }
 0x6af   :  { %v4104_v25 = vpack.c.bf16 %v8405_v23, %v8404_v22 }
 0x6b1   :  { %4095 = vmatpush3.bf16.msra.mxu1 %v4094_v26  ;;  %v8406_v26 = vld [vmem:[#allocation342_spill] sm:$0xff] }
 0x6b2   :  { %4097 = vmatprep.subr.bf16.mxu1 %v4096_v27  ;;  %v4120_v28 = vpack.c.bf16 %v8407_v24, %v8406_v26  ;;  %v8408_v27 = vld [vmem:[#allocation339_spill] sm:$0xff] }
 0x6b3   :  { %v4106_v30 = vpack.c.bf16 %v8409_v29, %v8408_v27 }
 0x6b5   :  { %4099 = vmatpush3.bf16.msra.mxu1 %v4098_v31  ;;  %v8410_v31 = vld [vmem:[#allocation341_spill] sm:$0xff] }
 0x6b6   :  { %4101 = vmatprep.subr.bf16.mxu1 %v4100_v56  ;;  %v4122_v62 = vpack.c.bf16 %v8411_v60, %v8410_v31  ;;  %v8412_v56 = vmov 0.0  }
 0x6b7   :  { %3149 = vmatprep.mubr.f32.mxu0 %v8412_v56 }
 0x6b9   :  { %4103 = vmatpush3.bf16.msra.mxu1 %v4102_v53 }
 0x6bc   :  { %2947 = vmatmul.mubr.f32.vlgmr.msra.gmra.mrb[4].mxu1 %v3350_v36 }
 0x76f   :  { %v3391_v48 = vpop.f32.mrb[2].mxu1 }
 0x770   :  { %v3426_v50 = vpop.f32.mrb[4].mxu0  ;;  %v3392_v51 = vpop.f32.mrb[3].mxu1 }
 0x771   :  { %v3427_v49 = vpop.f32.mrb[5].mxu0  ;;  %v3393_v45 = vadd.f32 %v3392_v51, %v3391_v48 }
 0x772   :  { %v3428_v44 = vadd.f32 %v3427_v49, %v3426_v50 }
 0x774   :  { %v2833_v47 = vadd.f32 %v3428_v44, %v3393_v45 }
 0x78f   :  { %v3461_v40 = vpop.f32.mrb[4].mxu1 }
 0x790   :  { %v3462_v41 = vpop.f32.mrb[5].mxu1 }
 0x791   :  { %v3463_v18 = vadd.f32 %v3462_v41, %v3461_v40 }
 0x793   :  { %v2952_v42 = vadd.f32 %v3463_v18, %v2833_v47 }
 0x795   :  { %v2960_v55 = vadd.f32 %v3351_v54, %v2952_v42 }
 0x797   :  { %v2964_v37 = vsel %vm2963_vm4, %v2960_v55, 0.0  ;;  %v2971_v61 = vmul.f32 %v2960_v55, %v2960_v55 }
 0x798   :  { %v2965_v36 = vrot.slane %v2964_v37, 4 }
 0x799   :  { %v2972_v38 = vsel %vm2963_vm4, %v2971_v61, 0.0 }
 0x79a   :  { %v2966_v57 = vadd.f32 %v2965_v36, %v2964_v37  ;;  %v2973_v39 = vrot.slane %v2972_v38, 4 }
 0x79c   :  { %v2967_v32 = vrot.slane %v2966_v57, 2  ;;  %v2974_v33 = vadd.f32 %v2973_v39, %v2972_v38 }
 0x79e   :  { %v2968_v34 = vadd.f32 %v2967_v32, %v2966_v57  ;;  %v2975_v35 = vrot.slane %v2974_v33, 2 }
 0x7a0   :  { %v2969_v2 = vrot.slane %v2968_v34, 1  ;;  %v2976_v11 = vadd.f32 %v2975_v35, %v2974_v33 }
 0x7a2   :  { %v2977_v6 = vrot.slane %v2976_v11, 1  ;;  %v2970_v7 = vadd.f32 %v2969_v2, %v2968_v34 }
 0x7a4   :  { %v2978_v58 = vadd.f32 %v2977_v6, %v2976_v11 }
 0x7a6   :  { %v2979_v63 = vsel %vm1678_vm0, %v2970_v7, %v2978_v58 }
 0x7a7   :  { %v2980_v15 = vmul.f32 0.5, %v2979_v63 }
 0x7a9   :  { %v2981_v14 = vmul.f32 %v2980_v15, %v2980_v15  ;;  %v2989_v43 = vrot.slane %v2980_v15, %v7148_v10 }
 0x7ab   :  { %v2983_v8 = vrot.slane %v2981_v14, 7  ;;  %v2990_v4 = vsub.f32 %v2960_v55, %v2989_v43 }
 0x7ad   :  { %v2985_v0 = vsub.f32 %v2980_v15, %v2983_v8 }
 0x7af   :  { %v2991_v46 = vadd.f32 1e-05, %v2985_v0 }
 0x7b1   :  { %4176 = vrsqrt.f32 %v2991_v46 }
 0x7bb   :  { %v4177_v12 = vpop.eup %4176 }
 0x7bc   :  { %v2996_v19 = vrot.slane %v4177_v12, %v7154_v1 }
 0x7be   :  { %v2997_v20 = vmul.f32 %v2996_v19, %v2990_v4 }
 0x7c0   :  { %v3004_v16 = vmul.f32 %v3352_v3, %v2997_v20 }
 0x7c2   :  { %v3011_v9 = vadd.f32 %v3353_v21, %v3004_v16 }
 0x7c4   :  { %v3012_v17 = vmax.f32 %v3011_v9, 0.0 }
 0x7c5   :  { %4205 = dma.done.wait [#allocation7 + $0x2], 4096 }
 0x7c6   :  { %4206 = vsyncadd [#allocation7 + $0x2], 4294963200  ;;  %v8413_v59 = vld [vmem:[#allocation348_spill] sm:$0xff]  ;;  %v8415_v48 = vld [vmem:[#allocation350_spill] sm:$0xff]  ;;  %3220 = vmatprep.mubr.f32.mxu1 %v8412_v56  ;;  %4105 = vmatprep.subr.bf16.mxu0 %v4104_v25  ;;  %v4213_v36 = vmov 0   ;;  %vm3081_vm5 = vcmask 523264  }
 0x7c7   :  { %v8414_v52 = vld [vmem:[#allocation352_spill] sm:$0xff]  ;;  %v8416_v50 = vld [vmem:[#allocation354_spill] sm:$0xff]  ;;  %4121 = vmatprep.subr.bf16.mxu1 %v4120_v28  ;;  %4107 = vmatpush1.bf16.msra.mxu0 %v4106_v30  ;;  %v8417_v49 = vld [vmem:[#allocation347_spill] sm:$0xff]  ;;  %v3067_v12 = vsub.s32 2, %v7145_v5  ;;  %v3071_v19 = vsub.s32 3, %v7145_v5 }
 0x7c8   :  { %v4108_v53 = vpack.c.bf16 %v8414_v52, %v8413_v59  ;;  %v4124_v51 = vpack.c.bf16 %v8416_v50, %v8415_v48  ;;  %4123 = vmatpush1.bf16.msra.mxu1 %v4122_v62  ;;  %v8418_v45 = vld [vmem:[#allocation351_spill] sm:$0xff]  ;;  %v8419_v47 = vld [vmem:[#allocation349_spill] sm:$0xff]  ;;  %v8421_v18 = vld [vmem:[#allocation356_spill] sm:$0xff]  ;;  %4178 = vset.pattern.permute.xlu0 %v4213_v36 }
 0x7c9   :  { %v4110_v44 = vpack.c.bf16 %v8418_v45, %v8417_v49  ;;  %v8420_v40 = vld [vmem:[#allocation353_spill] sm:$0xff]  ;;  %v8422_v54 = vld [vmem:[#allocation360_spill] sm:$0xff]  ;;  %v8423_v55 = vld [vmem:[#allocation358_spill] sm:$0xff] }
 0x7ca   :  { %v4126_v41 = vpack.c.bf16 %v8420_v40, %v8419_v47  ;;  %4109 = vmatprep.subr.bf16.mxu0 %v4108_v53  ;;  %4125 = vmatprep.subr.bf16.mxu1 %v4124_v51  ;;  %v4112_v42 = vpack.c.bf16 %v8422_v54, %v8421_v18  ;;  %v8424_v37 = vld [vmem:[#allocation362_spill] sm:$0xff]  ;;  %v8425_v38 = vld [vmem:[#allocation355_spill] sm:$0xff]  ;;  %v8427_v32 = vld [vmem:[#allocation357_spill] sm:$0xff] }
 0x7cb   :  { %v4128_v61 = vpack.c.bf16 %v8424_v37, %v8423_v55  ;;  %4111 = vmatpush1.bf16.msra.mxu0 %v4110_v44  ;;  %v8426_v57 = vld [vmem:[#allocation359_spill] sm:$0xff]  ;;  %v8428_v33 = vld [vmem:[#allocation361_spill] sm:$0xff]  ;;  %v3049_v35 = vld [vmem:[%s7718_s16] sm:$0x3] }
 0x7cc   :  { %4127 = vmatpush1.bf16.msra.mxu1 %v4126_v41  ;;  %v4114_v39 = vpack.c.bf16 %v8426_v57, %v8425_v38  ;;  %v4130_v34 = vpack.c.bf16 %v8428_v33, %v8427_v32  ;;  %4113 = vmatprep.subr.bf16.mxu0 %v4112_v42  ;;  %v8429_v2 = vld [vmem:[#allocation364_spill] sm:$0xff]  ;;  %v8431_v7 = vld [vmem:[#allocation366_spill] sm:$0xff]  ;;  %v8433_v15 = vld [vmem:[#allocation363_spill] sm:$0xff] }
 0x7cd   :  { %4129 = vmatprep.subr.bf16.mxu1 %v4128_v61  ;;  %v8430_v11 = vld [vmem:[#allocation368_spill] sm:$0xff]  ;;  %v8432_v58 = vld [vmem:[#allocation370_spill] sm:$0xff]  ;;  %3053 = vperm.xlu0 %4178, %v3049_v35   ;;  %v8434_v14 = vld [vmem:[#allocation367_spill] sm:$0xff] }
 0x7ce   :  { %v4116_v6 = vpack.c.bf16 %v8430_v11, %v8429_v2  ;;  %v4132_v63 = vpack.c.bf16 %v8432_v58, %v8431_v7  ;;  %v4118_v8 = vpack.c.bf16 %v8434_v14, %v8433_v15  ;;  %v8435_v0 = vld [vmem:[#allocation365_spill] sm:$0xff]  ;;  %v3050_v4 = vld [vmem:[%s7716_s14] sm:$0xf]  ;;  %s4214_s14 = smov [#allocation8]  }
 0x7cf   :  { %4115 = vmatpush1.bf16.msra.mxu0 %v4114_v39  ;;  %v8436_v46 = vld [vmem:[#allocation369_spill] sm:$0xff]  ;;  %v3060_v3 = vrot.slane %v3050_v4, %v7148_v10  ;;  %v3068_v20 = vrot.slane %v3050_v4, %v3067_v12  ;;  %v3064_v16 = vrot.slane %v3050_v4, %v7154_v1  ;;  %v3072_v9 = vrot.slane %v3050_v4, %v3071_v19  ;;  %v3227_v22 = vld [vmem:[%s7717_s15] sm:$0xf]  ;;  %s3286_s15 = sshll.u32 %s4214_s14, 4  ;;  %s3287_s15 = int_to_ptr.vmem [resolvable:$true] %s3286_s15 }
 0x7d0   :  { %4131 = vmatpush1.bf16.msra.mxu1 %v4130_v34  ;;  %v4134_v43 = vpack.c.bf16 %v8436_v46, %v8435_v0  ;;  %4117 = vmatprep.subr.bf16.mxu0 %v4116_v6  ;;  %v3232_v24 = vrot.slane %v3227_v22, %v7148_v10  ;;  %v3240_v28 = vrot.slane %v3227_v22, %v3067_v12  ;;  %s4179_s21 = scalar_lea.vmem %s3287_s15, 128  ;;  %p4184_p1 = scmp.lt.s32.totalorder %s3287_s15, %s3287_s15 }
 0x7d1   :  { %4133 = vmatprep.subr.bf16.mxu1 %v4132_v63  ;;  %v3236_v29 = vrot.slane %v3227_v22, %v7154_v1  ;;  %v3244_v30 = vrot.slane %v3227_v22, %v3071_v19  ;;  %p4180_p0 = scmp.ne.s32.totalorder %s3287_s15, %s4179_s21  ;;  %p4185_p2 = scmp.lt.s32.totalorder %s4179_s21, %s4179_s21 }
 0x7d3   :  { %4119 = vmatpush1.bf16.msra.mxu0 %v4118_v8  ;;  %p4186_p3 = por %p4185_p2, %p4184_p1 }
 0x7d4   :  { %4135 = vmatpush1.bf16.msra.mxu1 %v4134_v43 }
 0x7d5   :  { %p4187_p4 = pnand %p4186_p3, %p4180_p0 }
 0x7d6   :  { %3354 = vmatmul.mubr.msk.f32.vlgmr.msra.gmra.mrb[6].mxu0 %vm3081_vm5, %v3012_v17 }
 0x7d7   :  { %3355 = vmatmul.mubr.msk.f32.vlgmr.msra.gmra.mrb[6].mxu1 %vm3081_vm5, %v3012_v17 }
 0x84c   :  { %v3054_v21 = vpop.permute.xlu0 %3053 }
 0x84d   :  { %v3077_v17 = vmul.f32 %v3060_v3, %v3054_v21  ;;  %v3079_v23 = vmul.f32 %v3068_v20, %v3054_v21  ;;  %v3078_v25 = vmul.f32 %v3064_v16, %v3054_v21  ;;  %v3080_v26 = vmul.f32 %v3072_v9, %v3054_v21 }
 0x8a9   :  { %v3151_v27 = vpop.f32.mrb[6].mxu0 }
 0x8aa   :  { %v3222_v5 = vpop.f32.mrb[6].mxu1  ;;  %v3152_v31 = vadd.f32 %v3151_v27, %v3077_v17  ;;  %v3153_v62 = vpop.f32.mrb[7].mxu0 }
 0x8ab   :  { %v3223_v60 = vadd.f32 %v3222_v5, %v3079_v23  ;;  %v3224_v56 = vpop.f32.mrb[7].mxu1  ;;  %v3154_v59 = vadd.f32 %v3153_v62, %v3078_v25 }
 0x8ac   :  { %v3225_v52 = vadd.f32 %v3224_v56, %v3080_v26  ;;  %v3249_v53 = vadd.f32 %v3232_v24, %v3152_v31 }
 0x8ad   :  { %v3251_v48 = vadd.f32 %v3240_v28, %v3223_v60  ;;  %v3250_v50 = vadd.f32 %v3236_v29, %v3154_v59 }
 0x8ae   :  { %v3252_v51 = vadd.f32 %v3244_v30, %v3225_v52  ;;  %v3253_v49 = vmax.f32 %v3249_v53, 0.0 }
 0x8af   :  { %v3255_v45 = vmax.f32 %v3251_v48, 0.0  ;;  %v3254_v44 = vmax.f32 %v3250_v50, 0.0 }
 0x8b0   :  { %v3256_v10 = vmax.f32 %v3252_v51, 0.0 }
 0x8b1   :  { %v3261_v47 = vcombine.low %v3253_v49, %v3254_v44 }
 0x8b2   :  { %v3262_v40 = vcombine.low %v3255_v45, %v3256_v10 }
 0x8b3   :  { %v3269_v1 = vrot.slane %v3261_v47, %v7207_v13 }
 0x8b4   :  { %v3276_v41 = vrot.slane %v3262_v40, %v7207_v13 }
 0x8b6   :  { %v3277_v18 = vcombine.low %v3269_v1, %v3276_v41 }
 0x8b8   :  { %3279 = vst [vmem:[#allocation8] sm:$0xff] %v3277_v18 }
 0x8b9   :  { %4190 = shalt.err (!%p4187_p4)
}
 0x8ba   :  { %s4191_s23 = scalar_lea.hbm %s7719_s17, 128 }
 0x8bb   :  { %p4192_p5 = scmp.ne.s32.totalorder %s7719_s17, %s4191_s23  ;;  %p4195_p6 = scmp.lt.u32.totalorder %s4191_s23, %s7719_s17 }
 0x8bd   :  { %p4197_p7 = pnand %p4195_p6, %p4192_p5 }
 0x8bf   :  { %4200 = shalt.err (!%p4197_p7)
}
 0x8c0   :  { %3289 = dma.vmem_to_hbm [thread:$0]  %s3287_s15, 128, %s7719_s17, [#allocation9]  }
 0x8c1   :  { %4207 = dma.done.wait [#allocation9], 128  }
 0x8c2   :  { %4208 = vsyncadd [#allocation9], 4294967168 }
 0x8c3   :  { %3293 = vsyncpa [#allocation9], 1 }
 0x8c4   :  { %3294 = vsyncmov [#allocation7] }
 0x8c7   :  { %s3295_s3 = vpop.sfrf %3294 }
 0x8c8   :  { %p3356_p8 = scmp.ne.s32.totalorder %s3295_s3, 0 }
 0x8ca   :  { %3299 = shalt.err (%p3356_p8)  }
 0x8cb   :  { %3301 = vsyncmov [#allocation7 + $0x1] }
 0x8ce   :  { %s3302_s4 = vpop.sfrf %3301 }
 0x8cf   :  { %p3357_p9 = scmp.ne.s32.totalorder %s3302_s4, 0 }
 0x8d1   :  { %3306 = shalt.err (%p3357_p9)  }
 0x8d2   :  { %3308 = vsyncmov [#allocation7 + $0x2] }
 0x8d5   :  { %s3309_s6 = vpop.sfrf %3308 }
 0x8d6   :  { %p3358_p10 = scmp.ne.s32.totalorder %s3309_s6, 0 }
 0x8d8   :  { %3313 = shalt.err (%p3358_p10)  }

</bundles_post_ra>
